<compile_context>
chip_gen: v5e
topology: v5e:2x2
jax: 0.10.0
libtpu: 0.0.40
codegen_flags: <defaults>
</compile_context>

<pallas_src>
import functools
import math

import jax
import jax.numpy as jnp
import numpy as np
from jax.experimental import pallas as pl
from jax.experimental.pallas import tpu as pltpu

LN_EPS = 1e-5
NEG_INF = -1e9  # additive gate: kills cross-window attention after softmax
VMEM_LIMIT = 32 * 1024 * 1024


# ----------------------------------------------------------------------------
# Tiling heuristics.
# ----------------------------------------------------------------------------
def _mxu_target_rows():
    """Attention rows per grid step: ~256 on v6e/v7x (256-wide MXU), 128 on v5e."""
    try:
        kind = jax.devices()[0].device_kind.lower()
    except Exception:
        return 128
    if "v6" in kind or "v7" in kind or "7x" in kind:
        return 256
    return 128


def _choose_windows_per_block(num_windows_total, n_tok, target_rows, min_steps=2):
    """Largest divisor BW of the window count with BW*N <= target_rows while
    keeping >= min_steps grid steps (keeps both v7x TensorCores busy)."""
    best = 1
    for d in range(1, num_windows_total + 1):
        if num_windows_total % d:
            continue
        if d > 1 and d * n_tok > target_rows:
            continue
        if num_windows_total // d < min_steps and num_windows_total >= min_steps:
            continue
        best = d
    return best


def _choose_row_block(total_rows, max_rows=256, min_steps=2):
    """Row tile for the MLP kernel: multiple of 8 (sublanes), <= max_rows
    (v7x VMEM budget), >= min_steps grid steps when possible."""
    divs = [d for d in range(1, total_rows + 1)
            if total_rows % d == 0 and (d % 8 == 0 or d == total_rows)]
    ok = [d for d in divs if d <= max_rows and total_rows // d >= min_steps]
    if not ok:
        ok = [d for d in divs if d <= max_rows]
    if not ok:
        ok = [total_rows]
    return max(ok)


# ----------------------------------------------------------------------------
# Kernel A: fused LayerNorm(norm1) + W-MSA / SW-MSA for BW windows per step.
# ----------------------------------------------------------------------------
def _window_attn_kernel(x_ref, g1_ref, be1_ref,
                        wq_ref, bq_ref, wk_ref, bk_ref, wt_ref, bo_ref,
                        rel_ref, base_ref, o_ref,
                        *, num_heads, bw, n_tok):
    C = x_ref.shape[-1]
    M = bw * n_tok

    x = x_ref[...].reshape(M, C)                       # (M, C), leading-dim merge

    # LayerNorm (norm1) in f32.  Window partition / roll only permute tokens,
    # so applying it post-partition equals the module's pre-partition norm1.
    mu = jnp.mean(x, axis=-1, keepdims=True)
    xc = x - mu
    var = jnp.mean(xc * xc, axis=-1, keepdims=True)
    xn = xc * jax.lax.rsqrt(var + LN_EPS) * g1_ref[...] + be1_ref[...]
    xn_bf = xn.astype(jnp.bfloat16)                    # MXU operand (f32 accum)

    # (M, M) block-diagonal gate for this step: shift mask inside a window,
    # NEG_INF across windows.  Loaded once per step (tiny vs. the old (H,M,M)).
    gate = base_ref[...]

    def head_body(h, acc):
        # Per-head projections via leading-axis-stacked weights: no lane
        # slicing of a fused qkv result.  q scale and bias are pre-folded.
        q_h = jnp.dot(xn_bf, wq_ref[h],
                      preferred_element_type=jnp.float32) + bq_ref[h]   # (M, hd)
        k_h = jnp.dot(xn_bf, wk_ref[h],
                      preferred_element_type=jnp.float32) + bk_ref[h]   # (M, hd)
        # Pre-projected value: xn @ (Wv_h @ Wproj_h) -> (M, C); the value
        # matmul below then contracts over K = M (full MXU depth).
        vp_h = jnp.dot(xn_bf, wt_ref[h],
                       preferred_element_type=jnp.float32)              # (M, C)

        s = jax.lax.dot_general(q_h.astype(jnp.bfloat16),
                                k_h.astype(jnp.bfloat16),
                                (((1,), (1,)), ((), ())),
                                preferred_element_type=jnp.float32)     # (M, M)
        # Softmax (f32): rel-pos bias tile + shift/window gate, max-subtract,
        # exp, approx-reciprocal normalize (EUP slot).
        s = s + gate + rel_ref[h]
        s = s - jnp.max(s, axis=-1, keepdims=True)
        p = jnp.exp(s)
        p = p * pl.reciprocal(jnp.sum(p, axis=-1, keepdims=True), approx=True)

        return acc + jnp.dot(p.astype(jnp.bfloat16),
                             vp_h.astype(jnp.bfloat16),
                             preferred_element_type=jnp.float32)        # (M, C)

    acc = jax.lax.fori_loop(0, num_heads, head_body,
                            jnp.zeros((M, C), jnp.float32),
                            unroll=num_heads <= 8)

    y = acc + bo_ref[...]                              # bv @ Wproj + bproj
    o_ref[...] = y.reshape(bw, n_tok, C).astype(o_ref.dtype)


def fused_window_attention(x_windows, attn_mask, attn_params, *, num_heads):
    """x_windows: (B*nW, N, C) with the window index innermost in the leading
    dim (standard Swin partition order).  attn_mask: (nW, N, N) or None."""
    b_windows, n_tok, C = x_windows.shape
    assert C % num_heads == 0
    hd = C // num_heads
    scale = hd ** (-0.5)
    (g1, be1, wqkv, bqkv, wproj, bproj, rel_table, rel_index) = attn_params

    # Relative position bias gather (tiny, plain JAX): (H, N, N)
    rel_bias = rel_table[rel_index.reshape(-1)]
    rel_bias = rel_bias.reshape(n_tok, n_tok, num_heads).transpose(2, 0, 1)
    rel_bias = rel_bias.astype(jnp.float32)

    if attn_mask is None:
        shift_mask = jnp.zeros((1, n_tok, n_tok), jnp.float32)
    else:
        shift_mask = attn_mask.astype(jnp.float32)
    n_win_types = shift_mask.shape[0]

    bw = _choose_windows_per_block(b_windows, n_tok, _mxu_target_rows())
    assert b_windows % bw == 0
    m_rows = bw * n_tok
    # Number of distinct shift-mask patterns over grid steps.
    n_patterns = n_win_types // math.gcd(n_win_types, bw)

    # Head-dependent bias, tiled to (H, M, M): constant index_map -> DMA'd once
    # and VMEM-resident across the whole grid.
    rel_tile = jnp.tile(rel_bias, (1, bw, bw))
    # Pattern-dependent gate, (P, M, M): shift mask on diagonal window blocks,
    # NEG_INF off-diagonal.  Only one (M, M) tile is streamed per step.
    base = jnp.full((n_patterns, m_rows, m_rows), NEG_INF, jnp.float32)
    for p_idx in range(n_patterns):
        for j in range(bw):
            w = (p_idx * bw + j) % n_win_types
            base = base.at[p_idx, j * n_tok:(j + 1) * n_tok,
                           j * n_tok:(j + 1) * n_tok].set(shift_mask[w])

    # Weight prep: per-head stacks (H, C, hd)/(H, C, C), bf16 MXU operands,
    # qk scale folded into Wq/bq, Wproj folded into the value weight, and the
    # value/proj biases folded into a single (1, C) additive term.
    wq = wqkv[:, :C].reshape(C, num_heads, hd).transpose(1, 0, 2)
    wk = wqkv[:, C:2 * C].reshape(C, num_heads, hd).transpose(1, 0, 2)
    wv = wqkv[:, 2 * C:].reshape(C, num_heads, hd).transpose(1, 0, 2)
    bq = bqkv[:C].reshape(num_heads, 1, hd)
    bk = bqkv[C:2 * C].reshape(num_heads, 1, hd)
    bv = bqkv[2 * C:]
    wp = wproj.reshape(num_heads, hd, C)

    wq3 = (wq * scale).astype(jnp.bfloat16)
    bq3 = (bq * scale).astype(jnp.float32)
    wk3 = wk.astype(jnp.bfloat16)
    bk3 = bk.astype(jnp.float32)
    wt3 = jnp.einsum('hck,hkd->hcd', wv, wp).astype(jnp.bfloat16)   # Wv_h @ Wproj_h
    bo = (bv @ wproj + bproj).reshape(1, C).astype(jnp.float32)

    kernel = functools.partial(_window_attn_kernel, num_heads=num_heads,
                               bw=bw, n_tok=n_tok)
    const2 = lambda g: (0, 0)
    const3 = lambda g: (0, 0, 0)

    return pl.pallas_call(
        kernel,
        out_shape=jax.ShapeDtypeStruct((b_windows, n_tok, C), x_windows.dtype),
        grid_spec=pltpu.PrefetchScalarGridSpec(
            num_scalar_prefetch=0,
            grid=(b_windows // bw,),
            in_specs=[
                pl.BlockSpec((bw, n_tok, C), lambda g: (g, 0, 0)),    # x windows
                pl.BlockSpec((1, C), const2),                         # gamma1
                pl.BlockSpec((1, C), const2),                         # beta1
                pl.BlockSpec((num_heads, C, hd), const3),             # Wq (scaled, bf16)
                pl.BlockSpec((num_heads, 1, hd), const3),             # bq (scaled)
                pl.BlockSpec((num_heads, C, hd), const3),             # Wk (bf16)
                pl.BlockSpec((num_heads, 1, hd), const3),             # bk
                pl.BlockSpec((num_heads, C, C), const3),              # Wv@Wproj (bf16)
                pl.BlockSpec((1, C), const2),                         # bv@Wproj + bproj
                pl.BlockSpec((num_heads, m_rows, m_rows), const3),    # rel-pos tile
                pl.BlockSpec((None, m_rows, m_rows),                  # shift/window gate
                             lambda g: (g % n_patterns, 0, 0)),
            ],
            out_specs=pl.BlockSpec((bw, n_tok, C), lambda g: (g, 0, 0)),
        ),
        compiler_params=pltpu.CompilerParams(
            dimension_semantics=("parallel",),
            vmem_limit_bytes=VMEM_LIMIT),
    )(x_windows, g1.reshape(1, C), be1.reshape(1, C),
      wq3, bq3, wk3, bk3, wt3, bo, rel_tile, base)


# ----------------------------------------------------------------------------
# Kernel B: residual add + LayerNorm(norm2) + MLP(GELU) + residual add.
# ----------------------------------------------------------------------------
def _mlp_block_kernel(a_ref, b_ref, g2_ref, be2_ref, w1_ref, b1_ref,
                      w2_ref, b2_ref, o_ref):
    x = a_ref[...] + b_ref[...]                        # shortcut + attention branch
    mu = jnp.mean(x, axis=-1, keepdims=True)
    xc = x - mu
    var = jnp.mean(xc * xc, axis=-1, keepdims=True)
    xn = xc * jax.lax.rsqrt(var + LN_EPS) * g2_ref[...] + be2_ref[...]
    h = jnp.dot(xn.astype(jnp.bfloat16), w1_ref[...],
                preferred_element_type=jnp.float32) + b1_ref[...]
    # TODO(synk): PyTorch nn.GELU defaults to exact erf; tanh approximation is
    # used here (and in the reference) for a guaranteed TPU (EUP) lowering.
    h = jax.nn.gelu(h, approximate=True)
    y = jnp.dot(h.astype(jnp.bfloat16), w2_ref[...],
                preferred_element_type=jnp.float32) + b2_ref[...]
    o_ref[...] = (x + y).astype(o_ref.dtype)


def fused_mlp_block(shortcut_2d, attn_2d, mlp_params):
    total_rows, C = shortcut_2d.shape
    g2, be2, w1, b1, w2, b2 = mlp_params
    hidden = w1.shape[1]
    tb = _choose_row_block(total_rows)
    const = lambda r: (0, 0)

    # TODO(synk): for real Swin widths (C=768, hidden=3072) on v7x add an inner
    # grid axis over `hidden` with a VMEM accumulator so the resident fc
    # weights + (tb, hidden) GELU intermediate fit the 64 MiB VMEM.
    return pl.pallas_call(
        _mlp_block_kernel,
        out_shape=jax.ShapeDtypeStruct((total_rows, C), shortcut_2d.dtype),
        grid_spec=pltpu.PrefetchScalarGridSpec(
            num_scalar_prefetch=0,
            grid=(total_rows // tb,),
            in_specs=[
                pl.BlockSpec((tb, C), lambda r: (r, 0)),   # shortcut rows
                pl.BlockSpec((tb, C), lambda r: (r, 0)),   # attention branch rows
                pl.BlockSpec((1, C), const),               # gamma2
                pl.BlockSpec((1, C), const),               # beta2
                pl.BlockSpec((C, hidden), const),          # fc1 weight (bf16)
                pl.BlockSpec((1, hidden), const),          # fc1 bias
                pl.BlockSpec((hidden, C), const),          # fc2 weight (bf16)
                pl.BlockSpec((1, C), const),               # fc2 bias
            ],
            out_specs=pl.BlockSpec((tb, C), lambda r: (r, 0)),
        ),
        compiler_params=pltpu.CompilerParams(
            dimension_semantics=("parallel",),
            vmem_limit_bytes=VMEM_LIMIT),
    )(shortcut_2d, attn_2d, g2.reshape(1, C), be2.reshape(1, C),
      w1.astype(jnp.bfloat16), b1.reshape(1, hidden),
      w2.astype(jnp.bfloat16), b2.reshape(1, C))


# ----------------------------------------------------------------------------
# Static helpers (exact replicas of the PyTorch buffers).
# ----------------------------------------------------------------------------
def make_relative_position_index(window_size):
    Wh, Ww = window_size
    coords = np.stack(np.meshgrid(np.arange(Wh), np.arange(Ww), indexing='ij'))
    coords_flatten = coords.reshape(2, -1)
    rel = coords_flatten[:, :, None] - coords_flatten[:, None, :]
    rel = np.transpose(rel, (1, 2, 0)).copy()
    rel[:, :, 0] += Wh - 1
    rel[:, :, 1] += Ww - 1
    rel[:, :, 0] *= 2 * Ww - 1
    return jnp.asarray(rel.sum(-1), dtype=jnp.int32)


def make_shift_attn_mask(h_res, w_res, window_size, shift_size):
    """(nW, N, N) additive SW-MSA mask (0 / -100) or None when shift == 0."""
    if shift_size == 0:
        return None
    ws = window_size
    img = np.zeros((1, h_res, w_res, 1), np.float32)
    slices = (slice(0, -ws), slice(-ws, -shift_size), slice(-shift_size, None))
    cnt = 0
    for hs in slices:
        for wsl in slices:
            img[:, hs, wsl, :] = cnt
            cnt += 1
    mw = img.reshape(1, h_res // ws, ws, w_res // ws, ws, 1)
    mw = mw.transpose(0, 1, 3, 2, 4, 5).reshape(-1, ws * ws)
    am = mw[:, None, :] - mw[:, :, None]
    am = np.where(am != 0, -100.0, 0.0).astype(np.float32)
    return jnp.asarray(am)


# ----------------------------------------------------------------------------
# SwinTransformerBlock forward (Pallas kernels + layout glue).
# ----------------------------------------------------------------------------
def swin_block_forward(x, params, *, input_resolution, num_heads,
                       window_size, shift_size):
    B, L, C = x.shape
    h_res, w_res = input_resolution
    assert L == h_res * w_res, 'input feature has wrong size'
    if min(input_resolution) <= window_size:
        shift_size = 0
        window_size = min(input_resolution)
    assert 0 <= shift_size < window_size
    assert h_res % window_size == 0 and w_res % window_size == 0

    (g1, be1, wqkv, bqkv, wproj, bproj, rel_table, rel_index,
     g2, be2, w1, b1, w2, b2) = params

    ws = window_size
    n_tok = ws * ws
    n_win = (h_res // ws) * (w_res // ws)

    # --- layout glue (pure token permutations), plain JAX -------------------
    # TODO(synk): the cyclic shift wraps around the image edge, so folding it
    # (and the partition/reverse transposes) into the kernels' index_maps would
    # need manual wrap-around DMA; kept as XLA copies here.
    xs = x.reshape(B, h_res, w_res, C)
    if shift_size > 0:
        xs = jnp.roll(xs, shift=(-shift_size, -shift_size), axis=(1, 2))
    xw = xs.reshape(B, h_res // ws, ws, w_res // ws, ws, C)
    xw = xw.transpose(0, 1, 3, 2, 4, 5).reshape(B * n_win, n_tok, C)

    attn_mask = make_shift_attn_mask(h_res, w_res, ws, shift_size)

    # --- Kernel A: norm1 + window attention ----------------------------------
    attn_windows = fused_window_attention(
        xw, attn_mask,
        (g1, be1, wqkv, bqkv, wproj, bproj, rel_table, rel_index),
        num_heads=num_heads)

    # --- layout glue: window reverse + reverse shift --------------------------
    xr = attn_windows.reshape(B, h_res // ws, w_res // ws, ws, ws, C)
    xr = xr.transpose(0, 1, 3, 2, 4, 5).reshape(B, h_res, w_res, C)
    if shift_size > 0:
        xr = jnp.roll(xr, shift=(shift_size, shift_size), axis=(1, 2))
    attn_tokens = xr.reshape(B * L, C)

    # --- Kernel B: residual + norm2 + MLP + residual --------------------------
    out = fused_mlp_block(x.reshape(B * L, C), attn_tokens,
                          (g2, be2, w1, b1, w2, b2))
    return out.reshape(B, L, C)


# ----------------------------------------------------------------------------
# Pure-JAX reference mirroring the PyTorch forward, for validation.
# ----------------------------------------------------------------------------
def _layernorm_ref(x, gamma, beta):
    mu = jnp.mean(x, axis=-1, keepdims=True)
    xc = x - mu
    var = jnp.mean(xc * xc, axis=-1, keepdims=True)
    return xc * jax.lax.rsqrt(var + LN_EPS) * gamma + beta


def reference_swin_block(x, params, *, input_resolution, num_heads,
                         window_size, shift_size):
    B, L, C = x.shape
    h_res, w_res = input_resolution
    if min(input_resolution) <= window_size:
        shift_size = 0
        window_size = min(input_resolution)
    ws = window_size
    n_tok = ws * ws
    n_win = (h_res // ws) * (w_res // ws)
    head_dim = C // num_heads
    scale = head_dim ** (-0.5)

    (g1, be1, wqkv, bqkv, wproj, bproj, rel_table, rel_index,
     g2, be2, w1, b1, w2, b2) = params

    shortcut = x
    xn = _layernorm_ref(x, g1, be1)
    xs = xn.reshape(B, h_res, w_res, C)
    if shift_size > 0:
        xs = jnp.roll(xs, shift=(-shift_size, -shift_size), axis=(1, 2))
    xw = xs.reshape(B, h_res // ws, ws, w_res // ws, ws, C)
    xw = xw.transpose(0, 1, 3, 2, 4, 5).reshape(B * n_win, n_tok, C)

    qkv = (xw @ wqkv + bqkv).reshape(B * n_win, n_tok, 3, num_heads, head_dim)
    qkv = jnp.transpose(qkv, (2, 0, 3, 1, 4))
    q, k, v = qkv[0] * scale, qkv[1], qkv[2]
    attn = jnp.einsum('bhnd,bhmd->bhnm', q, k)

    rel_bias = rel_table[rel_index.reshape(-1)].reshape(n_tok, n_tok, num_heads)
    rel_bias = jnp.transpose(rel_bias, (2, 0, 1))
    attn = attn + rel_bias[None]

    attn_mask = make_shift_attn_mask(h_res, w_res, ws, shift_size)
    if attn_mask is not None:
        attn = (attn.reshape(B, n_win, num_heads, n_tok, n_tok)
                + attn_mask[None, :, None])
        attn = attn.reshape(-1, num_heads, n_tok, n_tok)
    attn = jax.nn.softmax(attn, axis=-1)
    out = jnp.einsum('bhnm,bhmd->bhnd', attn, v)
    out = jnp.transpose(out, (0, 2, 1, 3)).reshape(B * n_win, n_tok, C)
    out = out @ wproj + bproj

    xr = out.reshape(B, h_res // ws, w_res // ws, ws, ws, C)
    xr = xr.transpose(0, 1, 3, 2, 4, 5).reshape(B, h_res, w_res, C)
    if shift_size > 0:
        xr = jnp.roll(xr, shift=(shift_size, shift_size), axis=(1, 2))
    x_res = shortcut + xr.reshape(B, L, C)

    h = _layernorm_ref(x_res, g2, be2)
    h = jax.nn.gelu(h @ w1 + b1, approximate=True)
    return x_res + (h @ w2 + b2)


# ----------------------------------------------------------------------------
# Parameter init (deterministic, small random values).
# ----------------------------------------------------------------------------
def init_params(key, dim, window_size, num_heads, mlp_ratio=4.0):
    Wh, Ww = window_size
    hidden = int(dim * mlp_ratio)
    ks = jax.random.split(key, 13)
    table_size = (2 * Wh - 1) * (2 * Ww - 1)
    g1 = 1.0 + 0.1 * jax.random.normal(ks[0], (dim,), jnp.float32)
    be1 = 0.1 * jax.random.normal(ks[1], (dim,), jnp.float32)
    wqkv = 0.05 * jax.random.normal(ks[2], (dim, 3 * dim), jnp.float32)
    bqkv = 0.01 * jax.random.normal(ks[3], (3 * dim,), jnp.float32)
    wproj = 0.05 * jax.random.normal(ks[4], (dim, dim), jnp.float32)
    bproj = 0.01 * jax.random.normal(ks[5], (dim,), jnp.float32)
    rel_table = 0.02 * jax.random.truncated_normal(
        ks[6], -2.0, 2.0, (table_size, num_heads), jnp.float32)
    rel_index = make_relative_position_index(window_size)
    g2 = 1.0 + 0.1 * jax.random.normal(ks[7], (dim,), jnp.float32)
    be2 = 0.1 * jax.random.normal(ks[8], (dim,), jnp.float32)
    w1 = 0.05 * jax.random.normal(ks[9], (dim, hidden), jnp.float32)
    b1 = 0.01 * jax.random.normal(ks[10], (hidden,), jnp.float32)
    w2 = 0.05 * jax.random.normal(ks[11], (hidden, dim), jnp.float32)
    b2 = 0.01 * jax.random.normal(ks[12], (dim,), jnp.float32)
    return (g1, be1, wqkv, bqkv, wproj, bproj, rel_table, rel_index,
            g2, be2, w1, b1, w2, b2)


if __name__ == "__main__":
    key = jax.random.PRNGKey(0)

    dim = 32
    num_heads = 4
    input_resolution = (8, 8)
    window_size = 4
    mlp_ratio = 4.0
    batch = 2
    seq_len = input_resolution[0] * input_resolution[1]   # 64 tokens

    k_param, k_x = jax.random.split(key)
    params = init_params(k_param, dim, (window_size, window_size), num_heads,
                         mlp_ratio)
    x = jax.random.normal(k_x, (batch, seq_len, dim), dtype=jnp.float32)

    # SW-MSA (shifted, masked) and W-MSA (no shift) variants of the block.
    fwd_shift = jax.jit(functools.partial(
        swin_block_forward, input_resolution=input_resolution,
        num_heads=num_heads, window_size=window_size,
        shift_size=window_size // 2))
    fwd_plain = jax.jit(functools.partial(
        swin_block_forward, input_resolution=input_resolution,
        num_heads=num_heads, window_size=window_size, shift_size=0))

    y_shift = fwd_shift(x, params)
    y_plain = fwd_plain(x, params)
    jax.block_until_ready((y_shift, y_plain))

    ref_shift = reference_swin_block(
        x, params, input_resolution=input_resolution, num_heads=num_heads,
        window_size=window_size, shift_size=window_size // 2)
    ref_plain = reference_swin_block(
        x, params, input_resolution=input_resolution, num_heads=num_heads,
        window_size=window_size, shift_size=0)

    # Looser tolerance than the pure-f32 version: MXU inputs are bf16
    # (f32 accumulation), per the performance review.
    np.testing.assert_allclose(np.asarray(y_shift), np.asarray(ref_shift),
                               atol=2e-2, rtol=2e-2)
    np.testing.assert_allclose(np.asarray(y_plain), np.asarray(ref_plain),
                               atol=2e-2, rtol=2e-2)

    print("KERNEL_OK")
</pallas_src>

<mosaic_0001>
module attributes {stable_mosaic.version = 11 : i64} {
  func.func @_window_attn_kernel(%arg0: i32, %arg1: memref<4x16x32xf32, #tpu.memory_space<vmem>>, %arg2: memref<1x32xf32, #tpu.memory_space<vmem>>, %arg3: memref<1x32xf32, #tpu.memory_space<vmem>>, %arg4: memref<4x32x8xbf16, #tpu.memory_space<vmem>>, %arg5: memref<4x1x8xf32, #tpu.memory_space<vmem>>, %arg6: memref<4x32x8xbf16, #tpu.memory_space<vmem>>, %arg7: memref<4x1x8xf32, #tpu.memory_space<vmem>>, %arg8: memref<4x32x32xbf16, #tpu.memory_space<vmem>>, %arg9: memref<1x32xf32, #tpu.memory_space<vmem>>, %arg10: memref<4x64x64xf32, #tpu.memory_space<vmem>>, %arg11: memref<1x64x64xf32, #tpu.memory_space<vmem>>, %arg12: memref<4x16x32xf32, #tpu.memory_space<vmem>>) attributes {dimension_semantics = [#tpu.dimension_semantics<parallel>], iteration_bounds = array<i64: 2>, scalar_prefetch = 0 : i64, scratch_operands = 0 : i64, tpu.core_type = #tpu.core_type<tc>, window_params = [{transform_indices = @transform_0, window_bounds = array<i64: 4, 16, 32>}, {pipeline_mode = #tpu.pipeline_mode<synchronous>, transform_indices = @transform_1, window_bounds = array<i64: 1, 32>}, {pipeline_mode = #tpu.pipeline_mode<synchronous>, transform_indices = @transform_2, window_bounds = array<i64: 1, 32>}, {pipeline_mode = #tpu.pipeline_mode<synchronous>, transform_indices = @transform_3, window_bounds = array<i64: 4, 32, 8>}, {pipeline_mode = #tpu.pipeline_mode<synchronous>, transform_indices = @transform_4, window_bounds = array<i64: 4, 1, 8>}, {pipeline_mode = #tpu.pipeline_mode<synchronous>, transform_indices = @transform_5, window_bounds = array<i64: 4, 32, 8>}, {pipeline_mode = #tpu.pipeline_mode<synchronous>, transform_indices = @transform_6, window_bounds = array<i64: 4, 1, 8>}, {pipeline_mode = #tpu.pipeline_mode<synchronous>, transform_indices = @transform_7, window_bounds = array<i64: 4, 32, 32>}, {pipeline_mode = #tpu.pipeline_mode<synchronous>, transform_indices = @transform_8, window_bounds = array<i64: 1, 32>}, {pipeline_mode = #tpu.pipeline_mode<synchronous>, transform_indices = @transform_9, window_bounds = array<i64: 4, 64, 64>}, {transform_indices = @transform_10, window_bounds = array<i64: 1, 64, 64>}, {transform_indices = @transform_11, window_bounds = array<i64: 4, 16, 32>}]} {
    %c0 = arith.constant 0 : index
    %c0_0 = arith.constant 0 : index
    %c0_1 = arith.constant 0 : index
    %0 = vector.load %arg1[%c0, %c0_0, %c0_1] : memref<4x16x32xf32, #tpu.memory_space<vmem>>, vector<4x16x32xf32>
    %1 = vector.shape_cast %0 : vector<4x16x32xf32> to vector<64x32xf32>
    %cst = arith.constant dense<0.000000e+00> : vector<64xf32>
    %2 = vector.multi_reduction <add>, %1, %cst [1] : vector<64x32xf32> to vector<64xf32>
    %3 = vector.shape_cast %2 : vector<64xf32> to vector<64x1xf32>
    %cst_2 = arith.constant 3.200000e+01 : f32
    %4 = vector.broadcast %cst_2 : f32 to vector<64x1xf32>
    %5 = arith.divf %3, %4 : vector<64x1xf32>
    %6 = vector.broadcast %5 : vector<64x1xf32> to vector<64x32xf32>
    %7 = arith.subf %1, %6 : vector<64x32xf32>
    %8 = arith.mulf %7, %7 : vector<64x32xf32>
    %cst_3 = arith.constant dense<0.000000e+00> : vector<64xf32>
    %9 = vector.multi_reduction <add>, %8, %cst_3 [1] : vector<64x32xf32> to vector<64xf32>
    %10 = vector.shape_cast %9 : vector<64xf32> to vector<64x1xf32>
    %cst_4 = arith.constant 3.200000e+01 : f32
    %11 = vector.broadcast %cst_4 : f32 to vector<64x1xf32>
    %12 = arith.divf %10, %11 : vector<64x1xf32>
    %cst_5 = arith.constant 9.99999974E-6 : f32
    %13 = vector.broadcast %cst_5 : f32 to vector<64x1xf32>
    %14 = arith.addf %12, %13 : vector<64x1xf32>
    %15 = math.rsqrt %14 : vector<64x1xf32>
    %16 = vector.broadcast %15 : vector<64x1xf32> to vector<64x32xf32>
    %17 = arith.mulf %7, %16 : vector<64x32xf32>
    %c0_6 = arith.constant 0 : index
    %c0_7 = arith.constant 0 : index
    %18 = vector.load %arg2[%c0_6, %c0_7] : memref<1x32xf32, #tpu.memory_space<vmem>>, vector<1x32xf32>
    %19 = vector.broadcast %18 : vector<1x32xf32> to vector<64x32xf32>
    %20 = arith.mulf %17, %19 : vector<64x32xf32>
    %c0_8 = arith.constant 0 : index
    %c0_9 = arith.constant 0 : index
    %21 = vector.load %arg3[%c0_8, %c0_9] : memref<1x32xf32, #tpu.memory_space<vmem>>, vector<1x32xf32>
    %22 = vector.broadcast %21 : vector<1x32xf32> to vector<64x32xf32>
    %23 = arith.addf %20, %22 : vector<64x32xf32>
    %24 = arith.truncf %23 : vector<64x32xf32> to vector<64x32xbf16>
    %c0_10 = arith.constant 0 : index
    %c0_11 = arith.constant 0 : index
    %c0_12 = arith.constant 0 : index
    %25 = vector.load %arg11[%c0_10, %c0_11, %c0_12] : memref<1x64x64xf32, #tpu.memory_space<vmem>>, vector<1x64x64xf32>
    %26 = vector.shape_cast %25 : vector<1x64x64xf32> to vector<64x64xf32>
    %cst_13 = arith.constant 0.000000e+00 : f32
    %27 = vector.broadcast %cst_13 : f32 to vector<64x32xf32>
    %c0_i32 = arith.constant 0 : i32
    %28 = arith.index_cast %c0_i32 : i32 to index
    %c0_14 = arith.constant 0 : index
    %c0_15 = arith.constant 0 : index
    %29 = vector.load %arg4[%28, %c0_14, %c0_15] : memref<4x32x8xbf16, #tpu.memory_space<vmem>>, vector<1x32x8xbf16>
    %30 = vector.shape_cast %29 : vector<1x32x8xbf16> to vector<32x8xbf16>
    %cst_16 = arith.constant dense<0.000000e+00> : vector<64x8xf32>
    %31 = tpu.matmul %24, %30, %cst_16 {dimension_numbers = #tpu.dot_dimension_numbers<[1], [0], [0], [1], [0, 0, 1, 1], [], []>} : vector<64x32xbf16>, vector<32x8xbf16>, vector<64x8xf32> -> vector<64x8xf32>
    %32 = arith.index_cast %c0_i32 : i32 to index
    %c0_17 = arith.constant 0 : index
    %c0_18 = arith.constant 0 : index
    %33 = vector.load %arg5[%32, %c0_17, %c0_18] : memref<4x1x8xf32, #tpu.memory_space<vmem>>, vector<1x1x8xf32>
    %34 = vector.shape_cast %33 : vector<1x1x8xf32> to vector<1x8xf32>
    %35 = vector.broadcast %34 : vector<1x8xf32> to vector<64x8xf32>
    %36 = arith.addf %31, %35 : vector<64x8xf32>
    %37 = arith.index_cast %c0_i32 : i32 to index
    %c0_19 = arith.constant 0 : index
    %c0_20 = arith.constant 0 : index
    %38 = vector.load %arg6[%37, %c0_19, %c0_20] : memref<4x32x8xbf16, #tpu.memory_space<vmem>>, vector<1x32x8xbf16>
    %39 = vector.shape_cast %38 : vector<1x32x8xbf16> to vector<32x8xbf16>
    %cst_21 = arith.constant dense<0.000000e+00> : vector<64x8xf32>
    %40 = tpu.matmul %24, %39, %cst_21 {dimension_numbers = #tpu.dot_dimension_numbers<[1], [0], [0], [1], [0, 0, 1, 1], [], []>} : vector<64x32xbf16>, vector<32x8xbf16>, vector<64x8xf32> -> vector<64x8xf32>
    %41 = arith.index_cast %c0_i32 : i32 to index
    %c0_22 = arith.constant 0 : index
    %c0_23 = arith.constant 0 : index
    %42 = vector.load %arg7[%41, %c0_22, %c0_23] : memref<4x1x8xf32, #tpu.memory_space<vmem>>, vector<1x1x8xf32>
    %43 = vector.shape_cast %42 : vector<1x1x8xf32> to vector<1x8xf32>
    %44 = vector.broadcast %43 : vector<1x8xf32> to vector<64x8xf32>
    %45 = arith.addf %40, %44 : vector<64x8xf32>
    %46 = arith.index_cast %c0_i32 : i32 to index
    %c0_24 = arith.constant 0 : index
    %c0_25 = arith.constant 0 : index
    %47 = vector.load %arg8[%46, %c0_24, %c0_25] : memref<4x32x32xbf16, #tpu.memory_space<vmem>>, vector<1x32x32xbf16>
    %48 = vector.shape_cast %47 : vector<1x32x32xbf16> to vector<32x32xbf16>
    %cst_26 = arith.constant dense<0.000000e+00> : vector<64x32xf32>
    %49 = tpu.matmul %24, %48, %cst_26 {dimension_numbers = #tpu.dot_dimension_numbers<[1], [0], [0], [1], [0, 0, 1, 1], [], []>} : vector<64x32xbf16>, vector<32x32xbf16>, vector<64x32xf32> -> vector<64x32xf32>
    %50 = arith.truncf %36 : vector<64x8xf32> to vector<64x8xbf16>
    %51 = arith.truncf %45 : vector<64x8xf32> to vector<64x8xbf16>
    %cst_27 = arith.constant dense<0.000000e+00> : vector<64x64xf32>
    %52 = tpu.matmul %50, %51, %cst_27 {dimension_numbers = #tpu.dot_dimension_numbers<[1], [1], [0], [0], [0, 0, 1, 0], [], []>} : vector<64x8xbf16>, vector<64x8xbf16>, vector<64x64xf32> -> vector<64x64xf32>
    %53 = arith.addf %52, %26 : vector<64x64xf32>
    %54 = arith.index_cast %c0_i32 : i32 to index
    %c0_28 = arith.constant 0 : index
    %c0_29 = arith.constant 0 : index
    %55 = vector.load %arg10[%54, %c0_28, %c0_29] : memref<4x64x64xf32, #tpu.memory_space<vmem>>, vector<1x64x64xf32>
    %56 = vector.shape_cast %55 : vector<1x64x64xf32> to vector<64x64xf32>
    %57 = arith.addf %53, %56 : vector<64x64xf32>
    %cst_30 = arith.constant dense<0xFF800000> : vector<64xf32>
    %58 = vector.multi_reduction <maximumf>, %57, %cst_30 [1] : vector<64x64xf32> to vector<64xf32>
    %59 = vector.shape_cast %58 : vector<64xf32> to vector<64x1xf32>
    %60 = vector.broadcast %59 : vector<64x1xf32> to vector<64x64xf32>
    %61 = arith.subf %57, %60 : vector<64x64xf32>
    %62 = math.exp %61 : vector<64x64xf32>
    %cst_31 = arith.constant dense<0.000000e+00> : vector<64xf32>
    %63 = vector.multi_reduction <add>, %62, %cst_31 [1] : vector<64x64xf32> to vector<64xf32>
    %64 = vector.shape_cast %63 : vector<64xf32> to vector<64x1xf32>
    %65 = tpu.reciprocal %64 {approx = true} : vector<64x1xf32> -> vector<64x1xf32>
    %66 = vector.broadcast %65 : vector<64x1xf32> to vector<64x64xf32>
    %67 = arith.mulf %62, %66 : vector<64x64xf32>
    %68 = arith.truncf %67 : vector<64x64xf32> to vector<64x64xbf16>
    %69 = arith.truncf %49 : vector<64x32xf32> to vector<64x32xbf16>
    %cst_32 = arith.constant dense<0.000000e+00> : vector<64x32xf32>
    %70 = tpu.matmul %68, %69, %cst_32 {dimension_numbers = #tpu.dot_dimension_numbers<[1], [0], [0], [1], [0, 0, 1, 1], [], []>} : vector<64x64xbf16>, vector<64x32xbf16>, vector<64x32xf32> -> vector<64x32xf32>
    %71 = arith.addf %27, %70 : vector<64x32xf32>
    %c1_i32 = arith.constant 1 : i32
    %72 = arith.index_cast %c1_i32 : i32 to index
    %c0_33 = arith.constant 0 : index
    %c0_34 = arith.constant 0 : index
    %73 = vector.load %arg4[%72, %c0_33, %c0_34] : memref<4x32x8xbf16, #tpu.memory_space<vmem>>, vector<1x32x8xbf16>
    %74 = vector.shape_cast %73 : vector<1x32x8xbf16> to vector<32x8xbf16>
    %cst_35 = arith.constant dense<0.000000e+00> : vector<64x8xf32>
    %75 = tpu.matmul %24, %74, %cst_35 {dimension_numbers = #tpu.dot_dimension_numbers<[1], [0], [0], [1], [0, 0, 1, 1], [], []>} : vector<64x32xbf16>, vector<32x8xbf16>, vector<64x8xf32> -> vector<64x8xf32>
    %76 = arith.index_cast %c1_i32 : i32 to index
    %c0_36 = arith.constant 0 : index
    %c0_37 = arith.constant 0 : index
    %77 = vector.load %arg5[%76, %c0_36, %c0_37] : memref<4x1x8xf32, #tpu.memory_space<vmem>>, vector<1x1x8xf32>
    %78 = vector.shape_cast %77 : vector<1x1x8xf32> to vector<1x8xf32>
    %79 = vector.broadcast %78 : vector<1x8xf32> to vector<64x8xf32>
    %80 = arith.addf %75, %79 : vector<64x8xf32>
    %81 = arith.index_cast %c1_i32 : i32 to index
    %c0_38 = arith.constant 0 : index
    %c0_39 = arith.constant 0 : index
    %82 = vector.load %arg6[%81, %c0_38, %c0_39] : memref<4x32x8xbf16, #tpu.memory_space<vmem>>, vector<1x32x8xbf16>
    %83 = vector.shape_cast %82 : vector<1x32x8xbf16> to vector<32x8xbf16>
    %cst_40 = arith.constant dense<0.000000e+00> : vector<64x8xf32>
    %84 = tpu.matmul %24, %83, %cst_40 {dimension_numbers = #tpu.dot_dimension_numbers<[1], [0], [0], [1], [0, 0, 1, 1], [], []>} : vector<64x32xbf16>, vector<32x8xbf16>, vector<64x8xf32> -> vector<64x8xf32>
    %85 = arith.index_cast %c1_i32 : i32 to index
    %c0_41 = arith.constant 0 : index
    %c0_42 = arith.constant 0 : index
    %86 = vector.load %arg7[%85, %c0_41, %c0_42] : memref<4x1x8xf32, #tpu.memory_space<vmem>>, vector<1x1x8xf32>
    %87 = vector.shape_cast %86 : vector<1x1x8xf32> to vector<1x8xf32>
    %88 = vector.broadcast %87 : vector<1x8xf32> to vector<64x8xf32>
    %89 = arith.addf %84, %88 : vector<64x8xf32>
    %90 = arith.index_cast %c1_i32 : i32 to index
    %c0_43 = arith.constant 0 : index
    %c0_44 = arith.constant 0 : index
    %91 = vector.load %arg8[%90, %c0_43, %c0_44] : memref<4x32x32xbf16, #tpu.memory_space<vmem>>, vector<1x32x32xbf16>
    %92 = vector.shape_cast %91 : vector<1x32x32xbf16> to vector<32x32xbf16>
    %cst_45 = arith.constant dense<0.000000e+00> : vector<64x32xf32>
    %93 = tpu.matmul %24, %92, %cst_45 {dimension_numbers = #tpu.dot_dimension_numbers<[1], [0], [0], [1], [0, 0, 1, 1], [], []>} : vector<64x32xbf16>, vector<32x32xbf16>, vector<64x32xf32> -> vector<64x32xf32>
    %94 = arith.truncf %80 : vector<64x8xf32> to vector<64x8xbf16>
    %95 = arith.truncf %89 : vector<64x8xf32> to vector<64x8xbf16>
    %cst_46 = arith.constant dense<0.000000e+00> : vector<64x64xf32>
    %96 = tpu.matmul %94, %95, %cst_46 {dimension_numbers = #tpu.dot_dimension_numbers<[1], [1], [0], [0], [0, 0, 1, 0], [], []>} : vector<64x8xbf16>, vector<64x8xbf16>, vector<64x64xf32> -> vector<64x64xf32>
    %97 = arith.addf %96, %26 : vector<64x64xf32>
    %98 = arith.index_cast %c1_i32 : i32 to index
    %c0_47 = arith.constant 0 : index
    %c0_48 = arith.constant 0 : index
    %99 = vector.load %arg10[%98, %c0_47, %c0_48] : memref<4x64x64xf32, #tpu.memory_space<vmem>>, vector<1x64x64xf32>
    %100 = vector.shape_cast %99 : vector<1x64x64xf32> to vector<64x64xf32>
    %101 = arith.addf %97, %100 : vector<64x64xf32>
    %cst_49 = arith.constant dense<0xFF800000> : vector<64xf32>
    %102 = vector.multi_reduction <maximumf>, %101, %cst_49 [1] : vector<64x64xf32> to vector<64xf32>
    %103 = vector.shape_cast %102 : vector<64xf32> to vector<64x1xf32>
    %104 = vector.broadcast %103 : vector<64x1xf32> to vector<64x64xf32>
    %105 = arith.subf %101, %104 : vector<64x64xf32>
    %106 = math.exp %105 : vector<64x64xf32>
    %cst_50 = arith.constant dense<0.000000e+00> : vector<64xf32>
    %107 = vector.multi_reduction <add>, %106, %cst_50 [1] : vector<64x64xf32> to vector<64xf32>
    %108 = vector.shape_cast %107 : vector<64xf32> to vector<64x1xf32>
    %109 = tpu.reciprocal %108 {approx = true} : vector<64x1xf32> -> vector<64x1xf32>
    %110 = vector.broadcast %109 : vector<64x1xf32> to vector<64x64xf32>
    %111 = arith.mulf %106, %110 : vector<64x64xf32>
    %112 = arith.truncf %111 : vector<64x64xf32> to vector<64x64xbf16>
    %113 = arith.truncf %93 : vector<64x32xf32> to vector<64x32xbf16>
    %cst_51 = arith.constant dense<0.000000e+00> : vector<64x32xf32>
    %114 = tpu.matmul %112, %113, %cst_51 {dimension_numbers = #tpu.dot_dimension_numbers<[1], [0], [0], [1], [0, 0, 1, 1], [], []>} : vector<64x64xbf16>, vector<64x32xbf16>, vector<64x32xf32> -> vector<64x32xf32>
    %115 = arith.addf %71, %114 : vector<64x32xf32>
    %c2_i32 = arith.constant 2 : i32
    %116 = arith.index_cast %c2_i32 : i32 to index
    %c0_52 = arith.constant 0 : index
    %c0_53 = arith.constant 0 : index
    %117 = vector.load %arg4[%116, %c0_52, %c0_53] : memref<4x32x8xbf16, #tpu.memory_space<vmem>>, vector<1x32x8xbf16>
    %118 = vector.shape_cast %117 : vector<1x32x8xbf16> to vector<32x8xbf16>
    %cst_54 = arith.constant dense<0.000000e+00> : vector<64x8xf32>
    %119 = tpu.matmul %24, %118, %cst_54 {dimension_numbers = #tpu.dot_dimension_numbers<[1], [0], [0], [1], [0, 0, 1, 1], [], []>} : vector<64x32xbf16>, vector<32x8xbf16>, vector<64x8xf32> -> vector<64x8xf32>
    %120 = arith.index_cast %c2_i32 : i32 to index
    %c0_55 = arith.constant 0 : index
    %c0_56 = arith.constant 0 : index
    %121 = vector.load %arg5[%120, %c0_55, %c0_56] : memref<4x1x8xf32, #tpu.memory_space<vmem>>, vector<1x1x8xf32>
    %122 = vector.shape_cast %121 : vector<1x1x8xf32> to vector<1x8xf32>
    %123 = vector.broadcast %122 : vector<1x8xf32> to vector<64x8xf32>
    %124 = arith.addf %119, %123 : vector<64x8xf32>
    %125 = arith.index_cast %c2_i32 : i32 to index
    %c0_57 = arith.constant 0 : index
    %c0_58 = arith.constant 0 : index
    %126 = vector.load %arg6[%125, %c0_57, %c0_58] : memref<4x32x8xbf16, #tpu.memory_space<vmem>>, vector<1x32x8xbf16>
    %127 = vector.shape_cast %126 : vector<1x32x8xbf16> to vector<32x8xbf16>
    %cst_59 = arith.constant dense<0.000000e+00> : vector<64x8xf32>
    %128 = tpu.matmul %24, %127, %cst_59 {dimension_numbers = #tpu.dot_dimension_numbers<[1], [0], [0], [1], [0, 0, 1, 1], [], []>} : vector<64x32xbf16>, vector<32x8xbf16>, vector<64x8xf32> -> vector<64x8xf32>
    %129 = arith.index_cast %c2_i32 : i32 to index
    %c0_60 = arith.constant 0 : index
    %c0_61 = arith.constant 0 : index
    %130 = vector.load %arg7[%129, %c0_60, %c0_61] : memref<4x1x8xf32, #tpu.memory_space<vmem>>, vector<1x1x8xf32>
    %131 = vector.shape_cast %130 : vector<1x1x8xf32> to vector<1x8xf32>
    %132 = vector.broadcast %131 : vector<1x8xf32> to vector<64x8xf32>
    %133 = arith.addf %128, %132 : vector<64x8xf32>
    %134 = arith.index_cast %c2_i32 : i32 to index
    %c0_62 = arith.constant 0 : index
    %c0_63 = arith.constant 0 : index
    %135 = vector.load %arg8[%134, %c0_62, %c0_63] : memref<4x32x32xbf16, #tpu.memory_space<vmem>>, vector<1x32x32xbf16>
    %136 = vector.shape_cast %135 : vector<1x32x32xbf16> to vector<32x32xbf16>
    %cst_64 = arith.constant dense<0.000000e+00> : vector<64x32xf32>
    %137 = tpu.matmul %24, %136, %cst_64 {dimension_numbers = #tpu.dot_dimension_numbers<[1], [0], [0], [1], [0, 0, 1, 1], [], []>} : vector<64x32xbf16>, vector<32x32xbf16>, vector<64x32xf32> -> vector<64x32xf32>
    %138 = arith.truncf %124 : vector<64x8xf32> to vector<64x8xbf16>
    %139 = arith.truncf %133 : vector<64x8xf32> to vector<64x8xbf16>
    %cst_65 = arith.constant dense<0.000000e+00> : vector<64x64xf32>
    %140 = tpu.matmul %138, %139, %cst_65 {dimension_numbers = #tpu.dot_dimension_numbers<[1], [1], [0], [0], [0, 0, 1, 0], [], []>} : vector<64x8xbf16>, vector<64x8xbf16>, vector<64x64xf32> -> vector<64x64xf32>
    %141 = arith.addf %140, %26 : vector<64x64xf32>
    %142 = arith.index_cast %c2_i32 : i32 to index
    %c0_66 = arith.constant 0 : index
    %c0_67 = arith.constant 0 : index
    %143 = vector.load %arg10[%142, %c0_66, %c0_67] : memref<4x64x64xf32, #tpu.memory_space<vmem>>, vector<1x64x64xf32>
    %144 = vector.shape_cast %143 : vector<1x64x64xf32> to vector<64x64xf32>
    %145 = arith.addf %141, %144 : vector<64x64xf32>
    %cst_68 = arith.constant dense<0xFF800000> : vector<64xf32>
    %146 = vector.multi_reduction <maximumf>, %145, %cst_68 [1] : vector<64x64xf32> to vector<64xf32>
    %147 = vector.shape_cast %146 : vector<64xf32> to vector<64x1xf32>
    %148 = vector.broadcast %147 : vector<64x1xf32> to vector<64x64xf32>
    %149 = arith.subf %145, %148 : vector<64x64xf32>
    %150 = math.exp %149 : vector<64x64xf32>
    %cst_69 = arith.constant dense<0.000000e+00> : vector<64xf32>
    %151 = vector.multi_reduction <add>, %150, %cst_69 [1] : vector<64x64xf32> to vector<64xf32>
    %152 = vector.shape_cast %151 : vector<64xf32> to vector<64x1xf32>
    %153 = tpu.reciprocal %152 {approx = true} : vector<64x1xf32> -> vector<64x1xf32>
    %154 = vector.broadcast %153 : vector<64x1xf32> to vector<64x64xf32>
    %155 = arith.mulf %150, %154 : vector<64x64xf32>
    %156 = arith.truncf %155 : vector<64x64xf32> to vector<64x64xbf16>
    %157 = arith.truncf %137 : vector<64x32xf32> to vector<64x32xbf16>
    %cst_70 = arith.constant dense<0.000000e+00> : vector<64x32xf32>
    %158 = tpu.matmul %156, %157, %cst_70 {dimension_numbers = #tpu.dot_dimension_numbers<[1], [0], [0], [1], [0, 0, 1, 1], [], []>} : vector<64x64xbf16>, vector<64x32xbf16>, vector<64x32xf32> -> vector<64x32xf32>
    %159 = arith.addf %115, %158 : vector<64x32xf32>
    %c3_i32 = arith.constant 3 : i32
    %160 = arith.index_cast %c3_i32 : i32 to index
    %c0_71 = arith.constant 0 : index
    %c0_72 = arith.constant 0 : index
    %161 = vector.load %arg4[%160, %c0_71, %c0_72] : memref<4x32x8xbf16, #tpu.memory_space<vmem>>, vector<1x32x8xbf16>
    %162 = vector.shape_cast %161 : vector<1x32x8xbf16> to vector<32x8xbf16>
    %cst_73 = arith.constant dense<0.000000e+00> : vector<64x8xf32>
    %163 = tpu.matmul %24, %162, %cst_73 {dimension_numbers = #tpu.dot_dimension_numbers<[1], [0], [0], [1], [0, 0, 1, 1], [], []>} : vector<64x32xbf16>, vector<32x8xbf16>, vector<64x8xf32> -> vector<64x8xf32>
    %164 = arith.index_cast %c3_i32 : i32 to index
    %c0_74 = arith.constant 0 : index
    %c0_75 = arith.constant 0 : index
    %165 = vector.load %arg5[%164, %c0_74, %c0_75] : memref<4x1x8xf32, #tpu.memory_space<vmem>>, vector<1x1x8xf32>
    %166 = vector.shape_cast %165 : vector<1x1x8xf32> to vector<1x8xf32>
    %167 = vector.broadcast %166 : vector<1x8xf32> to vector<64x8xf32>
    %168 = arith.addf %163, %167 : vector<64x8xf32>
    %169 = arith.index_cast %c3_i32 : i32 to index
    %c0_76 = arith.constant 0 : index
    %c0_77 = arith.constant 0 : index
    %170 = vector.load %arg6[%169, %c0_76, %c0_77] : memref<4x32x8xbf16, #tpu.memory_space<vmem>>, vector<1x32x8xbf16>
    %171 = vector.shape_cast %170 : vector<1x32x8xbf16> to vector<32x8xbf16>
    %cst_78 = arith.constant dense<0.000000e+00> : vector<64x8xf32>
    %172 = tpu.matmul %24, %171, %cst_78 {dimension_numbers = #tpu.dot_dimension_numbers<[1], [0], [0], [1], [0, 0, 1, 1], [], []>} : vector<64x32xbf16>, vector<32x8xbf16>, vector<64x8xf32> -> vector<64x8xf32>
    %173 = arith.index_cast %c3_i32 : i32 to index
    %c0_79 = arith.constant 0 : index
    %c0_80 = arith.constant 0 : index
    %174 = vector.load %arg7[%173, %c0_79, %c0_80] : memref<4x1x8xf32, #tpu.memory_space<vmem>>, vector<1x1x8xf32>
    %175 = vector.shape_cast %174 : vector<1x1x8xf32> to vector<1x8xf32>
    %176 = vector.broadcast %175 : vector<1x8xf32> to vector<64x8xf32>
    %177 = arith.addf %172, %176 : vector<64x8xf32>
    %178 = arith.index_cast %c3_i32 : i32 to index
    %c0_81 = arith.constant 0 : index
    %c0_82 = arith.constant 0 : index
    %179 = vector.load %arg8[%178, %c0_81, %c0_82] : memref<4x32x32xbf16, #tpu.memory_space<vmem>>, vector<1x32x32xbf16>
    %180 = vector.shape_cast %179 : vector<1x32x32xbf16> to vector<32x32xbf16>
    %cst_83 = arith.constant dense<0.000000e+00> : vector<64x32xf32>
    %181 = tpu.matmul %24, %180, %cst_83 {dimension_numbers = #tpu.dot_dimension_numbers<[1], [0], [0], [1], [0, 0, 1, 1], [], []>} : vector<64x32xbf16>, vector<32x32xbf16>, vector<64x32xf32> -> vector<64x32xf32>
    %182 = arith.truncf %168 : vector<64x8xf32> to vector<64x8xbf16>
    %183 = arith.truncf %177 : vector<64x8xf32> to vector<64x8xbf16>
    %cst_84 = arith.constant dense<0.000000e+00> : vector<64x64xf32>
    %184 = tpu.matmul %182, %183, %cst_84 {dimension_numbers = #tpu.dot_dimension_numbers<[1], [1], [0], [0], [0, 0, 1, 0], [], []>} : vector<64x8xbf16>, vector<64x8xbf16>, vector<64x64xf32> -> vector<64x64xf32>
    %185 = arith.addf %184, %26 : vector<64x64xf32>
    %186 = arith.index_cast %c3_i32 : i32 to index
    %c0_85 = arith.constant 0 : index
    %c0_86 = arith.constant 0 : index
    %187 = vector.load %arg10[%186, %c0_85, %c0_86] : memref<4x64x64xf32, #tpu.memory_space<vmem>>, vector<1x64x64xf32>
    %188 = vector.shape_cast %187 : vector<1x64x64xf32> to vector<64x64xf32>
    %189 = arith.addf %185, %188 : vector<64x64xf32>
    %cst_87 = arith.constant dense<0xFF800000> : vector<64xf32>
    %190 = vector.multi_reduction <maximumf>, %189, %cst_87 [1] : vector<64x64xf32> to vector<64xf32>
    %191 = vector.shape_cast %190 : vector<64xf32> to vector<64x1xf32>
    %192 = vector.broadcast %191 : vector<64x1xf32> to vector<64x64xf32>
    %193 = arith.subf %189, %192 : vector<64x64xf32>
    %194 = math.exp %193 : vector<64x64xf32>
    %cst_88 = arith.constant dense<0.000000e+00> : vector<64xf32>
    %195 = vector.multi_reduction <add>, %194, %cst_88 [1] : vector<64x64xf32> to vector<64xf32>
    %196 = vector.shape_cast %195 : vector<64xf32> to vector<64x1xf32>
    %197 = tpu.reciprocal %196 {approx = true} : vector<64x1xf32> -> vector<64x1xf32>
    %198 = vector.broadcast %197 : vector<64x1xf32> to vector<64x64xf32>
    %199 = arith.mulf %194, %198 : vector<64x64xf32>
    %200 = arith.truncf %199 : vector<64x64xf32> to vector<64x64xbf16>
    %201 = arith.truncf %181 : vector<64x32xf32> to vector<64x32xbf16>
    %cst_89 = arith.constant dense<0.000000e+00> : vector<64x32xf32>
    %202 = tpu.matmul %200, %201, %cst_89 {dimension_numbers = #tpu.dot_dimension_numbers<[1], [0], [0], [1], [0, 0, 1, 1], [], []>} : vector<64x64xbf16>, vector<64x32xbf16>, vector<64x32xf32> -> vector<64x32xf32>
    %203 = arith.addf %159, %202 : vector<64x32xf32>
    %c4_i32 = arith.constant 4 : i32
    %c0_90 = arith.constant 0 : index
    %c0_91 = arith.constant 0 : index
    %204 = vector.load %arg9[%c0_90, %c0_91] : memref<1x32xf32, #tpu.memory_space<vmem>>, vector<1x32xf32>
    %205 = vector.broadcast %204 : vector<1x32xf32> to vector<64x32xf32>
    %206 = arith.addf %203, %205 : vector<64x32xf32>
    %207 = vector.shape_cast %206 : vector<64x32xf32> to vector<4x16x32xf32>
    %c0_92 = arith.constant 0 : index
    %c0_93 = arith.constant 0 : index
    %c0_94 = arith.constant 0 : index
    %208 = vector.load %arg12[%c0_92, %c0_93, %c0_94] : memref<4x16x32xf32, #tpu.memory_space<vmem>>, vector<4x16x32xf32>
    tpu.vector_store %arg12[%c0_92, %c0_93, %c0_94], %207 {strides = array<i32>} : memref<4x16x32xf32, #tpu.memory_space<vmem>>, vector<4x16x32xf32>,
    return
  }
  func.func @transform_0(%arg0: i32) -> (i32, i32, i32) {
    %c0_i32 = arith.constant 0 : i32
    %c0_i32_0 = arith.constant 0 : i32
    %c0_i32_1 = arith.constant 0 : i32
    return %arg0, %c0_i32, %c0_i32_0 : i32, i32, i32
  }
  func.func @transform_1(%arg0: i32) -> (i32, i32) {
    %c0_i32 = arith.constant 0 : i32
    %c0_i32_0 = arith.constant 0 : i32
    %c0_i32_1 = arith.constant 0 : i32
    return %c0_i32, %c0_i32_0 : i32, i32
  }
  func.func @transform_2(%arg0: i32) -> (i32, i32) {
    %c0_i32 = arith.constant 0 : i32
    %c0_i32_0 = arith.constant 0 : i32
    %c0_i32_1 = arith.constant 0 : i32
    return %c0_i32, %c0_i32_0 : i32, i32
  }
  func.func @transform_3(%arg0: i32) -> (i32, i32, i32) {
    %c0_i32 = arith.constant 0 : i32
    %c0_i32_0 = arith.constant 0 : i32
    %c0_i32_1 = arith.constant 0 : i32
    %c0_i32_2 = arith.constant 0 : i32
    return %c0_i32, %c0_i32_0, %c0_i32_1 : i32, i32, i32
  }
  func.func @transform_4(%arg0: i32) -> (i32, i32, i32) {
    %c0_i32 = arith.constant 0 : i32
    %c0_i32_0 = arith.constant 0 : i32
    %c0_i32_1 = arith.constant 0 : i32
    %c0_i32_2 = arith.constant 0 : i32
    return %c0_i32, %c0_i32_0, %c0_i32_1 : i32, i32, i32
  }
  func.func @transform_5(%arg0: i32) -> (i32, i32, i32) {
    %c0_i32 = arith.constant 0 : i32
    %c0_i32_0 = arith.constant 0 : i32
    %c0_i32_1 = arith.constant 0 : i32
    %c0_i32_2 = arith.constant 0 : i32
    return %c0_i32, %c0_i32_0, %c0_i32_1 : i32, i32, i32
  }
  func.func @transform_6(%arg0: i32) -> (i32, i32, i32) {
    %c0_i32 = arith.constant 0 : i32
    %c0_i32_0 = arith.constant 0 : i32
    %c0_i32_1 = arith.constant 0 : i32
    %c0_i32_2 = arith.constant 0 : i32
    return %c0_i32, %c0_i32_0, %c0_i32_1 : i32, i32, i32
  }
  func.func @transform_7(%arg0: i32) -> (i32, i32, i32) {
    %c0_i32 = arith.constant 0 : i32
    %c0_i32_0 = arith.constant 0 : i32
    %c0_i32_1 = arith.constant 0 : i32
    %c0_i32_2 = arith.constant 0 : i32
    return %c0_i32, %c0_i32_0, %c0_i32_1 : i32, i32, i32
  }
  func.func @transform_8(%arg0: i32) -> (i32, i32) {
    %c0_i32 = arith.constant 0 : i32
    %c0_i32_0 = arith.constant 0 : i32
    %c0_i32_1 = arith.constant 0 : i32
    return %c0_i32, %c0_i32_0 : i32, i32
  }
  func.func @transform_9(%arg0: i32) -> (i32, i32, i32) {
    %c0_i32 = arith.constant 0 : i32
    %c0_i32_0 = arith.constant 0 : i32
    %c0_i32_1 = arith.constant 0 : i32
    %c0_i32_2 = arith.constant 0 : i32
    return %c0_i32, %c0_i32_0, %c0_i32_1 : i32, i32, i32
  }
  func.func @transform_10(%arg0: i32) -> (i32, i32, i32) {
    %c1_i32 = arith.constant 1 : i32
    %c0_i32 = arith.constant 0 : i32
    %0 = arith.cmpi eq, %c1_i32, %c0_i32 : i32
    %c1_i32_0 = arith.constant 1 : i32
    %1 = arith.select %0, %c1_i32_0, %c1_i32 : i32
    %2 = arith.remsi %arg0, %1 : i32
    %c0_i32_1 = arith.constant 0 : i32
    %3 = arith.cmpi ne, %2, %c0_i32_1 : i32
    %c0_i32_2 = arith.constant 0 : i32
    %4 = arith.cmpi slt, %2, %c0_i32_2 : i32
    %c0_i32_3 = arith.constant 0 : i32
    %5 = arith.cmpi slt, %1, %c0_i32_3 : i32
    %6 = arith.xori %4, %5 : i1
    %7 = arith.andi %6, %3 : i1
    %8 = arith.addi %2, %1 : i32
    %9 = arith.select %7, %8, %2 : i32
    %c0_i32_4 = arith.constant 0 : i32
    %c0_i32_5 = arith.constant 0 : i32
    %c0_i32_6 = arith.constant 0 : i32
    return %9, %c0_i32_4, %c0_i32_5 : i32, i32, i32
  }
  func.func @transform_11(%arg0: i32) -> (i32, i32, i32) {
    %c0_i32 = arith.constant 0 : i32
    %c0_i32_0 = arith.constant 0 : i32
    %c0_i32_1 = arith.constant 0 : i32
    return %arg0, %c0_i32, %c0_i32_0 : i32, i32, i32
  }
}

module attributes {stable_mosaic.version = 11 : i64} {
  func.func @_mlp_block_kernel(%arg0: i32, %arg1: memref<64x32xf32, #tpu.memory_space<vmem>>, %arg2: memref<64x32xf32, #tpu.memory_space<vmem>>, %arg3: memref<1x32xf32, #tpu.memory_space<vmem>>, %arg4: memref<1x32xf32, #tpu.memory_space<vmem>>, %arg5: memref<32x128xbf16, #tpu.memory_space<vmem>>, %arg6: memref<1x128xf32, #tpu.memory_space<vmem>>, %arg7: memref<128x32xbf16, #tpu.memory_space<vmem>>, %arg8: memref<1x32xf32, #tpu.memory_space<vmem>>, %arg9: memref<64x32xf32, #tpu.memory_space<vmem>>) attributes {dimension_semantics = [#tpu.dimension_semantics<parallel>], iteration_bounds = array<i64: 2>, scalar_prefetch = 0 : i64, scratch_operands = 0 : i64, tpu.core_type = #tpu.core_type<tc>, window_params = [{transform_indices = @transform_0, window_bounds = array<i64: 64, 32>}, {transform_indices = @transform_1, window_bounds = array<i64: 64, 32>}, {pipeline_mode = #tpu.pipeline_mode<synchronous>, transform_indices = @transform_2, window_bounds = array<i64: 1, 32>}, {pipeline_mode = #tpu.pipeline_mode<synchronous>, transform_indices = @transform_3, window_bounds = array<i64: 1, 32>}, {pipeline_mode = #tpu.pipeline_mode<synchronous>, transform_indices = @transform_4, window_bounds = array<i64: 32, 128>}, {pipeline_mode = #tpu.pipeline_mode<synchronous>, transform_indices = @transform_5, window_bounds = array<i64: 1, 128>}, {pipeline_mode = #tpu.pipeline_mode<synchronous>, transform_indices = @transform_6, window_bounds = array<i64: 128, 32>}, {pipeline_mode = #tpu.pipeline_mode<synchronous>, transform_indices = @transform_7, window_bounds = array<i64: 1, 32>}, {transform_indices = @transform_8, window_bounds = array<i64: 64, 32>}]} {
    %c0 = arith.constant 0 : index
    %c0_0 = arith.constant 0 : index
    %0 = vector.load %arg1[%c0, %c0_0] : memref<64x32xf32, #tpu.memory_space<vmem>>, vector<64x32xf32>
    %c0_1 = arith.constant 0 : index
    %c0_2 = arith.constant 0 : index
    %1 = vector.load %arg2[%c0_1, %c0_2] : memref<64x32xf32, #tpu.memory_space<vmem>>, vector<64x32xf32>
    %2 = arith.addf %0, %1 : vector<64x32xf32>
    %cst = arith.constant dense<0.000000e+00> : vector<64xf32>
    %3 = vector.multi_reduction <add>, %2, %cst [1] : vector<64x32xf32> to vector<64xf32>
    %4 = vector.shape_cast %3 : vector<64xf32> to vector<64x1xf32>
    %cst_3 = arith.constant 3.200000e+01 : f32
    %5 = vector.broadcast %cst_3 : f32 to vector<64x1xf32>
    %6 = arith.divf %4, %5 : vector<64x1xf32>
    %7 = vector.broadcast %6 : vector<64x1xf32> to vector<64x32xf32>
    %8 = arith.subf %2, %7 : vector<64x32xf32>
    %9 = arith.mulf %8, %8 : vector<64x32xf32>
    %cst_4 = arith.constant dense<0.000000e+00> : vector<64xf32>
    %10 = vector.multi_reduction <add>, %9, %cst_4 [1] : vector<64x32xf32> to vector<64xf32>
    %11 = vector.shape_cast %10 : vector<64xf32> to vector<64x1xf32>
    %cst_5 = arith.constant 3.200000e+01 : f32
    %12 = vector.broadcast %cst_5 : f32 to vector<64x1xf32>
    %13 = arith.divf %11, %12 : vector<64x1xf32>
    %cst_6 = arith.constant 9.99999974E-6 : f32
    %14 = vector.broadcast %cst_6 : f32 to vector<64x1xf32>
    %15 = arith.addf %13, %14 : vector<64x1xf32>
    %16 = math.rsqrt %15 : vector<64x1xf32>
    %17 = vector.broadcast %16 : vector<64x1xf32> to vector<64x32xf32>
    %18 = arith.mulf %8, %17 : vector<64x32xf32>
    %c0_7 = arith.constant 0 : index
    %c0_8 = arith.constant 0 : index
    %19 = vector.load %arg3[%c0_7, %c0_8] : memref<1x32xf32, #tpu.memory_space<vmem>>, vector<1x32xf32>
    %20 = vector.broadcast %19 : vector<1x32xf32> to vector<64x32xf32>
    %21 = arith.mulf %18, %20 : vector<64x32xf32>
    %c0_9 = arith.constant 0 : index
    %c0_10 = arith.constant 0 : index
    %22 = vector.load %arg4[%c0_9, %c0_10] : memref<1x32xf32, #tpu.memory_space<vmem>>, vector<1x32xf32>
    %23 = vector.broadcast %22 : vector<1x32xf32> to vector<64x32xf32>
    %24 = arith.addf %21, %23 : vector<64x32xf32>
    %25 = arith.truncf %24 : vector<64x32xf32> to vector<64x32xbf16>
    %c0_11 = arith.constant 0 : index
    %c0_12 = arith.constant 0 : index
    %26 = vector.load %arg5[%c0_11, %c0_12] : memref<32x128xbf16, #tpu.memory_space<vmem>>, vector<32x128xbf16>
    %cst_13 = arith.constant dense<0.000000e+00> : vector<64x128xf32>
    %27 = tpu.matmul %25, %26, %cst_13 {dimension_numbers = #tpu.dot_dimension_numbers<[1], [0], [0], [1], [0, 0, 1, 1], [], []>} : vector<64x32xbf16>, vector<32x128xbf16>, vector<64x128xf32> -> vector<64x128xf32>
    %c0_14 = arith.constant 0 : index
    %c0_15 = arith.constant 0 : index
    %28 = vector.load %arg6[%c0_14, %c0_15] : memref<1x128xf32, #tpu.memory_space<vmem>>, vector<1x128xf32>
    %29 = vector.broadcast %28 : vector<1x128xf32> to vector<64x128xf32>
    %30 = arith.addf %27, %29 : vector<64x128xf32>
    %31 = arith.mulf %30, %30 : vector<64x128xf32>
    %32 = arith.mulf %30, %31 : vector<64x128xf32>
    %cst_16 = arith.constant 4.471500e-02 : f32
    %33 = vector.broadcast %cst_16 : f32 to vector<64x128xf32>
    %34 = arith.mulf %33, %32 : vector<64x128xf32>
    %35 = arith.addf %30, %34 : vector<64x128xf32>
    %cst_17 = arith.constant 0.797884583 : f32
    %36 = vector.broadcast %cst_17 : f32 to vector<64x128xf32>
    %37 = arith.mulf %36, %35 : vector<64x128xf32>
    %38 = math.tanh %37 : vector<64x128xf32>
    %cst_18 = arith.constant 1.000000e+00 : f32
    %39 = vector.broadcast %cst_18 : f32 to vector<64x128xf32>
    %40 = arith.addf %39, %38 : vector<64x128xf32>
    %cst_19 = arith.constant 5.000000e-01 : f32
    %41 = vector.broadcast %cst_19 : f32 to vector<64x128xf32>
    %42 = arith.mulf %41, %40 : vector<64x128xf32>
    %43 = arith.mulf %30, %42 : vector<64x128xf32>
    %44 = arith.truncf %43 : vector<64x128xf32> to vector<64x128xbf16>
    %c0_20 = arith.constant 0 : index
    %c0_21 = arith.constant 0 : index
    %45 = vector.load %arg7[%c0_20, %c0_21] : memref<128x32xbf16, #tpu.memory_space<vmem>>, vector<128x32xbf16>
    %cst_22 = arith.constant dense<0.000000e+00> : vector<64x32xf32>
    %46 = tpu.matmul %44, %45, %cst_22 {dimension_numbers = #tpu.dot_dimension_numbers<[1], [0], [0], [1], [0, 0, 1, 1], [], []>} : vector<64x128xbf16>, vector<128x32xbf16>, vector<64x32xf32> -> vector<64x32xf32>
    %c0_23 = arith.constant 0 : index
    %c0_24 = arith.constant 0 : index
    %47 = vector.load %arg8[%c0_23, %c0_24] : memref<1x32xf32, #tpu.memory_space<vmem>>, vector<1x32xf32>
    %48 = vector.broadcast %47 : vector<1x32xf32> to vector<64x32xf32>
    %49 = arith.addf %46, %48 : vector<64x32xf32>
    %50 = arith.addf %2, %49 : vector<64x32xf32>
    %c0_25 = arith.constant 0 : index
    %c0_26 = arith.constant 0 : index
    %51 = vector.load %arg9[%c0_25, %c0_26] : memref<64x32xf32, #tpu.memory_space<vmem>>, vector<64x32xf32>
    tpu.vector_store %arg9[%c0_25, %c0_26], %50 {strides = array<i32>} : memref<64x32xf32, #tpu.memory_space<vmem>>, vector<64x32xf32>,
    return
  }
  func.func @transform_0(%arg0: i32) -> (i32, i32) {
    %c0_i32 = arith.constant 0 : i32
    %c0_i32_0 = arith.constant 0 : i32
    return %arg0, %c0_i32 : i32, i32
  }
  func.func @transform_1(%arg0: i32) -> (i32, i32) {
    %c0_i32 = arith.constant 0 : i32
    %c0_i32_0 = arith.constant 0 : i32
    return %arg0, %c0_i32 : i32, i32
  }
  func.func @transform_2(%arg0: i32) -> (i32, i32) {
    %c0_i32 = arith.constant 0 : i32
    %c0_i32_0 = arith.constant 0 : i32
    %c0_i32_1 = arith.constant 0 : i32
    return %c0_i32, %c0_i32_0 : i32, i32
  }
  func.func @transform_3(%arg0: i32) -> (i32, i32) {
    %c0_i32 = arith.constant 0 : i32
    %c0_i32_0 = arith.constant 0 : i32
    %c0_i32_1 = arith.constant 0 : i32
    return %c0_i32, %c0_i32_0 : i32, i32
  }
  func.func @transform_4(%arg0: i32) -> (i32, i32) {
    %c0_i32 = arith.constant 0 : i32
    %c0_i32_0 = arith.constant 0 : i32
    %c0_i32_1 = arith.constant 0 : i32
    return %c0_i32, %c0_i32_0 : i32, i32
  }
  func.func @transform_5(%arg0: i32) -> (i32, i32) {
    %c0_i32 = arith.constant 0 : i32
    %c0_i32_0 = arith.constant 0 : i32
    %c0_i32_1 = arith.constant 0 : i32
    return %c0_i32, %c0_i32_0 : i32, i32
  }
  func.func @transform_6(%arg0: i32) -> (i32, i32) {
    %c0_i32 = arith.constant 0 : i32
    %c0_i32_0 = arith.constant 0 : i32
    %c0_i32_1 = arith.constant 0 : i32
    return %c0_i32, %c0_i32_0 : i32, i32
  }
  func.func @transform_7(%arg0: i32) -> (i32, i32) {
    %c0_i32 = arith.constant 0 : i32
    %c0_i32_0 = arith.constant 0 : i32
    %c0_i32_1 = arith.constant 0 : i32
    return %c0_i32, %c0_i32_0 : i32, i32
  }
  func.func @transform_8(%arg0: i32) -> (i32, i32) {
    %c0_i32 = arith.constant 0 : i32
    %c0_i32_0 = arith.constant 0 : i32
    return %arg0, %c0_i32 : i32, i32
  }
}

</mosaic_0001>

<bundles_post_ra>
// kernel: tile.9
= control target key start
LH: loop header
LB: loop body
LE: loop exit
PB: predicated region body
PF: predicated region fallthrough
CT: control target
= control target key end

     0   :  { %vm1028_vm0 = vcmask 1047556   ;;  %s2746_s15 = smov 48   ;;  %s2747_s18 = smov 32   ;;  %vm1030_vm1 = vcmask 130048   ;;  %vm1319_vm2 = vcmask 523648   ;;  %vm1670_vm3 = vcmask 392448   ;;  %s4278_s0 = inlined_call_operand.vmem [shape: f32[4,4,16,4,16], index: 0, kind: input, shape index: {}]   ;;  %s4279_s1 = inlined_call_operand.vmem [shape: f32[4,64,64], index: 1, kind: output, shape index: {}]  }
   0x1   :  { %v2612_v0 = vld [vmem:[%s4278_s0 + $0x1c] sm:$0xf]  ;;  %v2613_v1 = vld [vmem:[%s4278_s0 + $0x18] sm:$0xf]  ;;  %v2614_v2 = vld [vmem:[%s4278_s0 + $0x14] sm:$0xf] }
   0x2   :  { %999 = vst [vmem:[#allocation0 + $0x38] sm:$0xf] %v2612_v0  ;;  %v2615_v3 = vld [vmem:[%s4278_s0 + $0x10] sm:$0xf]  ;;  %v2616_v4 = vld [vmem:[%s4278_s0 + $0xc] sm:$0xf] }
   0x3   :  { %1003 = vst [vmem:[#allocation0 + $0x30] sm:$0xf] %v2613_v1  ;;  %v2617_v5 = vld [vmem:[%s4278_s0 + $0x8] sm:$0xf]  ;;  %v2618_v6 = vld [vmem:[%s4278_s0 + $0x4] sm:$0xf] }
   0x4   :  { %1007 = vst [vmem:[#allocation0 + $0x28] sm:$0xf] %v2614_v2  ;;  %v1024_v7 = vld [vmem:[%s4278_s0] sm:$0xf]  ;;  %v2548_v8 = vld [vmem:[%s4278_s0 + $0x11c] sm:$0xf] }
   0x5   :  { %1011 = vst [vmem:[#allocation0 + $0x20] sm:$0xf] %v2615_v3  ;;  %v2549_v9 = vld [vmem:[%s4278_s0 + $0x118] sm:$0xf]  ;;  %v2550_v10 = vld [vmem:[%s4278_s0 + $0x114] sm:$0xf] }
   0x6   :  { %1015 = vst [vmem:[#allocation0 + $0x18] sm:$0xf] %v2616_v4  ;;  %v2551_v11 = vld [vmem:[%s4278_s0 + $0x110] sm:$0xf]  ;;  %v2552_v12 = vld [vmem:[%s4278_s0 + $0x10c] sm:$0xf] }
   0x7   :  { %1019 = vst [vmem:[#allocation0 + $0x10] sm:$0xf] %v2617_v5  ;;  %v2553_v13 = vld [vmem:[%s4278_s0 + $0x108] sm:$0xf]  ;;  %v2554_v14 = vld [vmem:[%s4278_s0 + $0x104] sm:$0xf] }
   0x8   :  { %1023 = vst [vmem:[#allocation0 + $0x8] sm:$0xf] %v2618_v6  ;;  %v2555_v15 = vld [vmem:[%s4278_s0 + $0x100] sm:$0xf]  ;;  %v2580_v17 = vld [vmem:[%s4278_s0 + $0x9c] sm:$0xf] }
   0x9   :  { %1025 = vst [vmem:[#allocation0] sm:$0xf] %v1024_v7  ;;  %v2581_v18 = vld [vmem:[%s4278_s0 + $0x98] sm:$0xf]  ;;  %v2582_v21 = vld [vmem:[%s4278_s0 + $0x94] sm:$0xf] }
   0xa   :  { %743 = vst [vmem:[#allocation0 + $0x238] sm:$0xf] %v2548_v8  ;;  %v2583_v22 = vld [vmem:[%s4278_s0 + $0x90] sm:$0xf]  ;;  %v2584_v23 = vld [vmem:[%s4278_s0 + $0x8c] sm:$0xf] }
   0xb   :  { %747 = vst [vmem:[#allocation0 + $0x230] sm:$0xf] %v2549_v9  ;;  %v2585_v24 = vld [vmem:[%s4278_s0 + $0x88] sm:$0xf]  ;;  %v2586_v25 = vld [vmem:[%s4278_s0 + $0x84] sm:$0xf] }
   0xc   :  { %751 = vst [vmem:[#allocation0 + $0x228] sm:$0xf] %v2550_v10  ;;  %v1314_v16 = vld [vmem:[#allocation0 + $0x3] ss:$8 sm:$0xf0]   ;;  %s2748_s22 = smov 16  }
   0xd   :  { %755 = vst [vmem:[#allocation0 + $0x220] sm:$0xf] %v2551_v11  ;;  %v2587_v26 = vld [vmem:[%s4278_s0 + $0x80] sm:$0xf]  ;;  %v2516_v28 = vld [vmem:[%s4278_s0 + $0x19c] sm:$0xf] }
   0xe   :  { %759 = vst [vmem:[#allocation0 + $0x218] sm:$0xf] %v2552_v12  ;;  %v2517_v29 = vld [vmem:[%s4278_s0 + $0x198] sm:$0xf]  ;;  %v2518_v32 = vld [vmem:[%s4278_s0 + $0x194] sm:$0xf] }
   0xf   :  { %763 = vst [vmem:[#allocation0 + $0x210] sm:$0xf] %v2553_v13  ;;  %v2519_v33 = vld [vmem:[%s4278_s0 + $0x190] sm:$0xf]  ;;  %v2520_v34 = vld [vmem:[%s4278_s0 + $0x18c] sm:$0xf] }
  0x10   :  { %v1312_v19 = vld [vmem:[#allocation0 + $0x3] ss:$8 sm:$0xf]   ;;  %767 = vst [vmem:[#allocation0 + $0x208] sm:$0xf] %v2554_v14  ;;  %vm2021_vm4 = vcmask 261248  }
  0x11   :  { %v1316_v20 = vsel %vm1028_vm0, %v1314_v16, %v1312_v19  ;;  %771 = vst [vmem:[#allocation0 + $0x200] sm:$0xf] %v2555_v15  ;;  %v2521_v35 = vld [vmem:[%s4278_s0 + $0x188] sm:$0xf]  ;;  %v2522_v36 = vld [vmem:[%s4278_s0 + $0x184] sm:$0xf] }
  0x12   :  { %1317 = vrot.lane.b32.xlu0 %v1316_v20, %s2746_s15  ;;  %871 = vst [vmem:[#allocation0 + $0x138] sm:$0xf] %v2580_v17  ;;  %v2523_v37 = vld [vmem:[%s4278_s0 + $0x180] sm:$0xf]  ;;  %v2420_v39 = vld [vmem:[%s4278_s0 + $0x31c] sm:$0xf] }
  0x13   :  { %875 = vst [vmem:[#allocation0 + $0x130] sm:$0xf] %v2581_v18  ;;  %v2421_v40 = vld [vmem:[%s4278_s0 + $0x318] sm:$0xf]  ;;  %v2422_v43 = vld [vmem:[%s4278_s0 + $0x314] sm:$0xf] }
  0x14   :  { %879 = vst [vmem:[#allocation0 + $0x128] sm:$0xf] %v2582_v21  ;;  %v1335_v27 = vld [vmem:[#allocation0 + $0x203] ss:$8 sm:$0xf0]  }
  0x15   :  { %883 = vst [vmem:[#allocation0 + $0x120] sm:$0xf] %v2583_v22  ;;  %v2423_v44 = vld [vmem:[%s4278_s0 + $0x310] sm:$0xf]  ;;  %v2424_v45 = vld [vmem:[%s4278_s0 + $0x30c] sm:$0xf] }
  0x16   :  { %887 = vst [vmem:[#allocation0 + $0x118] sm:$0xf] %v2584_v23  ;;  %v2425_v46 = vld [vmem:[%s4278_s0 + $0x308] sm:$0xf]  ;;  %v2426_v47 = vld [vmem:[%s4278_s0 + $0x304] sm:$0xf] }
  0x17   :  { %891 = vst [vmem:[#allocation0 + $0x110] sm:$0xf] %v2585_v24  ;;  %v2427_v48 = vld [vmem:[%s4278_s0 + $0x300] sm:$0xf]  ;;  %v2388_v50 = vld [vmem:[%s4278_s0 + $0x39c] sm:$0xf] }
  0x18   :  { %v1333_v30 = vld [vmem:[#allocation0 + $0x203] ss:$8 sm:$0xf]   ;;  %895 = vst [vmem:[#allocation0 + $0x108] sm:$0xf] %v2586_v25 }
  0x19   :  { %v1337_v31 = vsel %vm1028_vm0, %v1335_v27, %v1333_v30  ;;  %899 = vst [vmem:[#allocation0 + $0x100] sm:$0xf] %v2587_v26  ;;  %v2389_v51 = vld [vmem:[%s4278_s0 + $0x398] sm:$0xf]  ;;  %v2390_v54 = vld [vmem:[%s4278_s0 + $0x394] sm:$0xf] }
  0x1a   :  { %1338 = vrot.lane.b32.xlu1 %v1337_v31, %s2746_s15  ;;  %615 = vst [vmem:[#allocation0 + $0x338] sm:$0xf] %v2516_v28  ;;  %v2391_v55 = vld [vmem:[%s4278_s0 + $0x390] sm:$0xf]  ;;  %v2392_v56 = vld [vmem:[%s4278_s0 + $0x38c] sm:$0xf] }
  0x1b   :  { %619 = vst [vmem:[#allocation0 + $0x330] sm:$0xf] %v2517_v29  ;;  %v2393_v57 = vld [vmem:[%s4278_s0 + $0x388] sm:$0xf]  ;;  %v2394_v58 = vld [vmem:[%s4278_s0 + $0x384] sm:$0xf] }
  0x1c   :  { %623 = vst [vmem:[#allocation0 + $0x328] sm:$0xf] %v2518_v32  ;;  %v1324_v38 = vld [vmem:[#allocation0 + $0x103] ss:$8 sm:$0xf0]  }
  0x1d   :  { %627 = vst [vmem:[#allocation0 + $0x320] sm:$0xf] %v2519_v33  ;;  %v2395_v59 = vld [vmem:[%s4278_s0 + $0x380] sm:$0xf]  ;;  %v2484_v61 = vld [vmem:[%s4278_s0 + $0x21c] sm:$0xf] }
  0x1e   :  { %631 = vst [vmem:[#allocation0 + $0x318] sm:$0xf] %v2520_v34  ;;  %v2485_v62 = vld [vmem:[%s4278_s0 + $0x218] sm:$0xf]  ;;  %v2486_v1 = vld [vmem:[%s4278_s0 + $0x214] sm:$0xf] }
  0x1f   :  { %635 = vst [vmem:[#allocation0 + $0x310] sm:$0xf] %v2521_v35  ;;  %v2487_v2 = vld [vmem:[%s4278_s0 + $0x210] sm:$0xf]  ;;  %v2488_v3 = vld [vmem:[%s4278_s0 + $0x20c] sm:$0xf] }
  0x20   :  { %v1322_v41 = vld [vmem:[#allocation0 + $0x103] ss:$8 sm:$0xf]   ;;  %639 = vst [vmem:[#allocation0 + $0x308] sm:$0xf] %v2522_v36 }
  0x21   :  { %v1326_v42 = vsel %vm1028_vm0, %v1324_v38, %v1322_v41  ;;  %643 = vst [vmem:[#allocation0 + $0x300] sm:$0xf] %v2523_v37  ;;  %v2489_v4 = vld [vmem:[%s4278_s0 + $0x208] sm:$0xf]  ;;  %v2490_v5 = vld [vmem:[%s4278_s0 + $0x204] sm:$0xf] }
  0x22   :  { %1327 = vrot.lane.b32.xlu0 %v1326_v42, %s2746_s15  ;;  %231 = vst [vmem:[#allocation0 + $0x638] sm:$0xf] %v2420_v39  ;;  %v2491_v6 = vld [vmem:[%s4278_s0 + $0x200] sm:$0xf]  ;;  %v2572_v8 = vld [vmem:[%s4278_s0 + $0xbc] sm:$0xf] }
  0x23   :  { %235 = vst [vmem:[#allocation0 + $0x630] sm:$0xf] %v2421_v40  ;;  %v2573_v9 = vld [vmem:[%s4278_s0 + $0xb8] sm:$0xf]  ;;  %v2574_v12 = vld [vmem:[%s4278_s0 + $0xb4] sm:$0xf] }
  0x24   :  { %239 = vst [vmem:[#allocation0 + $0x628] sm:$0xf] %v2422_v43  ;;  %v1346_v49 = vld [vmem:[#allocation0 + $0x303] ss:$8 sm:$0xf0]  }
  0x25   :  { %243 = vst [vmem:[#allocation0 + $0x620] sm:$0xf] %v2423_v44  ;;  %v2575_v13 = vld [vmem:[%s4278_s0 + $0xb0] sm:$0xf]  ;;  %v2576_v14 = vld [vmem:[%s4278_s0 + $0xac] sm:$0xf] }
  0x26   :  { %247 = vst [vmem:[#allocation0 + $0x618] sm:$0xf] %v2424_v45  ;;  %v2577_v15 = vld [vmem:[%s4278_s0 + $0xa8] sm:$0xf]  ;;  %v2578_v16 = vld [vmem:[%s4278_s0 + $0xa4] sm:$0xf] }
  0x27   :  { %251 = vst [vmem:[#allocation0 + $0x610] sm:$0xf] %v2425_v46  ;;  %v2579_v17 = vld [vmem:[%s4278_s0 + $0xa0] sm:$0xf]  ;;  %v2540_v19 = vld [vmem:[%s4278_s0 + $0x13c] sm:$0xf] }
  0x28   :  { %v1344_v52 = vld [vmem:[#allocation0 + $0x303] ss:$8 sm:$0xf]   ;;  %255 = vst [vmem:[#allocation0 + $0x608] sm:$0xf] %v2426_v47 }
  0x29   :  { %v1348_v53 = vsel %vm1028_vm0, %v1346_v49, %v1344_v52  ;;  %259 = vst [vmem:[#allocation0 + $0x600] sm:$0xf] %v2427_v48  ;;  %v2541_v20 = vld [vmem:[%s4278_s0 + $0x138] sm:$0xf]  ;;  %v2542_v23 = vld [vmem:[%s4278_s0 + $0x134] sm:$0xf] }
  0x2a   :  { %1349 = vrot.lane.b32.xlu1 %v1348_v53, %s2746_s15  ;;  %103 = vst [vmem:[#allocation0 + $0x738] sm:$0xf] %v2388_v50  ;;  %v2543_v24 = vld [vmem:[%s4278_s0 + $0x130] sm:$0xf]  ;;  %v2544_v25 = vld [vmem:[%s4278_s0 + $0x12c] sm:$0xf] }
  0x2b   :  { %107 = vst [vmem:[#allocation0 + $0x730] sm:$0xf] %v2389_v51  ;;  %v2545_v26 = vld [vmem:[%s4278_s0 + $0x128] sm:$0xf]  ;;  %v2546_v27 = vld [vmem:[%s4278_s0 + $0x124] sm:$0xf] }
  0x2c   :  { %111 = vst [vmem:[#allocation0 + $0x728] sm:$0xf] %v2390_v54  ;;  %v1379_v60 = vld [vmem:[#allocation0 + $0x603] ss:$8 sm:$0xf0]  }
  0x2d   :  { %115 = vst [vmem:[#allocation0 + $0x720] sm:$0xf] %v2391_v55  ;;  %v2547_v28 = vld [vmem:[%s4278_s0 + $0x120] sm:$0xf]  ;;  %v2452_v30 = vld [vmem:[%s4278_s0 + $0x29c] sm:$0xf] }
  0x2e   :  { %119 = vst [vmem:[#allocation0 + $0x718] sm:$0xf] %v2392_v56  ;;  %v2453_v31 = vld [vmem:[%s4278_s0 + $0x298] sm:$0xf]  ;;  %v2454_v34 = vld [vmem:[%s4278_s0 + $0x294] sm:$0xf] }
  0x2f   :  { %123 = vst [vmem:[#allocation0 + $0x710] sm:$0xf] %v2393_v57  ;;  %v2455_v35 = vld [vmem:[%s4278_s0 + $0x290] sm:$0xf]  ;;  %v2456_v36 = vld [vmem:[%s4278_s0 + $0x28c] sm:$0xf] }
  0x30   :  { %v1377_v63 = vld [vmem:[#allocation0 + $0x603] ss:$8 sm:$0xf]   ;;  %127 = vst [vmem:[#allocation0 + $0x708] sm:$0xf] %v2394_v58 }
  0x31   :  { %v1381_v0 = vsel %vm1028_vm0, %v1379_v60, %v1377_v63  ;;  %131 = vst [vmem:[#allocation0 + $0x700] sm:$0xf] %v2395_v59  ;;  %v2457_v37 = vld [vmem:[%s4278_s0 + $0x288] sm:$0xf]  ;;  %v2458_v38 = vld [vmem:[%s4278_s0 + $0x284] sm:$0xf] }
  0x32   :  { %1382 = vrot.lane.b32.xlu0 %v1381_v0, %s2746_s15  ;;  %487 = vst [vmem:[#allocation0 + $0x438] sm:$0xf] %v2484_v61  ;;  %v2459_v39 = vld [vmem:[%s4278_s0 + $0x280] sm:$0xf]  ;;  %v2476_v41 = vld [vmem:[%s4278_s0 + $0x23c] sm:$0xf] }
  0x33   :  { %491 = vst [vmem:[#allocation0 + $0x430] sm:$0xf] %v2485_v62  ;;  %v2477_v42 = vld [vmem:[%s4278_s0 + $0x238] sm:$0xf]  ;;  %v2478_v45 = vld [vmem:[%s4278_s0 + $0x234] sm:$0xf] }
  0x34   :  { %495 = vst [vmem:[#allocation0 + $0x428] sm:$0xf] %v2486_v1  ;;  %v1390_v7 = vld [vmem:[#allocation0 + $0x703] ss:$8 sm:$0xf0]  }
  0x35   :  { %499 = vst [vmem:[#allocation0 + $0x420] sm:$0xf] %v2487_v2  ;;  %v2479_v46 = vld [vmem:[%s4278_s0 + $0x230] sm:$0xf]  ;;  %v2480_v47 = vld [vmem:[%s4278_s0 + $0x22c] sm:$0xf] }
  0x36   :  { %503 = vst [vmem:[#allocation0 + $0x418] sm:$0xf] %v2488_v3  ;;  %v2481_v48 = vld [vmem:[%s4278_s0 + $0x228] sm:$0xf]  ;;  %v2482_v49 = vld [vmem:[%s4278_s0 + $0x224] sm:$0xf] }
  0x37   :  { %507 = vst [vmem:[#allocation0 + $0x410] sm:$0xf] %v2489_v4  ;;  %v2483_v50 = vld [vmem:[%s4278_s0 + $0x220] sm:$0xf]  ;;  %v2444_v52 = vld [vmem:[%s4278_s0 + $0x2bc] sm:$0xf] }
  0x38   :  { %v1388_v10 = vld [vmem:[#allocation0 + $0x703] ss:$8 sm:$0xf]   ;;  %511 = vst [vmem:[#allocation0 + $0x408] sm:$0xf] %v2490_v5 }
  0x39   :  { %v1392_v11 = vsel %vm1028_vm0, %v1390_v7, %v1388_v10  ;;  %515 = vst [vmem:[#allocation0 + $0x400] sm:$0xf] %v2491_v6  ;;  %v2445_v53 = vld [vmem:[%s4278_s0 + $0x2b8] sm:$0xf]  ;;  %v2446_v56 = vld [vmem:[%s4278_s0 + $0x2b4] sm:$0xf] }
  0x3a   :  { %1393 = vrot.lane.b32.xlu1 %v1392_v11, %s2746_s15  ;;  %839 = vst [vmem:[#allocation0 + $0x178] sm:$0xf] %v2572_v8  ;;  %v2447_v57 = vld [vmem:[%s4278_s0 + $0x2b0] sm:$0xf]  ;;  %v2448_v58 = vld [vmem:[%s4278_s0 + $0x2ac] sm:$0xf] }
  0x3b   :  { %843 = vst [vmem:[#allocation0 + $0x170] sm:$0xf] %v2573_v9  ;;  %v2449_v59 = vld [vmem:[%s4278_s0 + $0x2a8] sm:$0xf]  ;;  %v2450_v60 = vld [vmem:[%s4278_s0 + $0x2a4] sm:$0xf] }
  0x3c   :  { %847 = vst [vmem:[#allocation0 + $0x168] sm:$0xf] %v2574_v12  ;;  %v1357_v18 = vld [vmem:[#allocation0 + $0x403] ss:$8 sm:$0xf0]  }
  0x3d   :  { %851 = vst [vmem:[#allocation0 + $0x160] sm:$0xf] %v2575_v13  ;;  %v2451_v61 = vld [vmem:[%s4278_s0 + $0x2a0] sm:$0xf]  ;;  %v2604_v63 = vld [vmem:[%s4278_s0 + $0x3c] sm:$0xf] }
  0x3e   :  { %855 = vst [vmem:[#allocation0 + $0x158] sm:$0xf] %v2576_v14  ;;  %v2605_v0 = vld [vmem:[%s4278_s0 + $0x38] sm:$0xf]  ;;  %v2606_v3 = vld [vmem:[%s4278_s0 + $0x34] sm:$0xf] }
  0x3f   :  { %859 = vst [vmem:[#allocation0 + $0x150] sm:$0xf] %v2577_v15  ;;  %v2607_v4 = vld [vmem:[%s4278_s0 + $0x30] sm:$0xf]  ;;  %v2608_v5 = vld [vmem:[%s4278_s0 + $0x2c] sm:$0xf] }
  0x40   :  { %v1355_v21 = vld [vmem:[#allocation0 + $0x403] ss:$8 sm:$0xf]   ;;  %863 = vst [vmem:[#allocation0 + $0x148] sm:$0xf] %v2578_v16 }
  0x41   :  { %v1359_v22 = vsel %vm1028_vm0, %v1357_v18, %v1355_v21  ;;  %867 = vst [vmem:[#allocation0 + $0x140] sm:$0xf] %v2579_v17  ;;  %v2609_v6 = vld [vmem:[%s4278_s0 + $0x28] sm:$0xf]  ;;  %v2610_v7 = vld [vmem:[%s4278_s0 + $0x24] sm:$0xf] }
  0x42   :  { %1360 = vrot.lane.b32.xlu2 %v1359_v22, %s2746_s15  ;;  %711 = vst [vmem:[#allocation0 + $0x278] sm:$0xf] %v2540_v19  ;;  %v2611_v8 = vld [vmem:[%s4278_s0 + $0x20] sm:$0xf]  ;;  %v2596_v10 = vld [vmem:[%s4278_s0 + $0x5c] sm:$0xf] }
  0x43   :  { %715 = vst [vmem:[#allocation0 + $0x270] sm:$0xf] %v2541_v20  ;;  %v2597_v11 = vld [vmem:[%s4278_s0 + $0x58] sm:$0xf]  ;;  %v2598_v14 = vld [vmem:[%s4278_s0 + $0x54] sm:$0xf] }
  0x44   :  { %719 = vst [vmem:[#allocation0 + $0x268] sm:$0xf] %v2542_v23  ;;  %v1412_v29 = vld [vmem:[#allocation0 + $0x143] ss:$8 sm:$0xf0]  }
  0x45   :  { %723 = vst [vmem:[#allocation0 + $0x260] sm:$0xf] %v2543_v24  ;;  %v2599_v15 = vld [vmem:[%s4278_s0 + $0x50] sm:$0xf]  ;;  %v2600_v16 = vld [vmem:[%s4278_s0 + $0x4c] sm:$0xf] }
  0x46   :  { %727 = vst [vmem:[#allocation0 + $0x258] sm:$0xf] %v2544_v25  ;;  %v2601_v17 = vld [vmem:[%s4278_s0 + $0x48] sm:$0xf]  ;;  %v2602_v18 = vld [vmem:[%s4278_s0 + $0x44] sm:$0xf] }
  0x47   :  { %731 = vst [vmem:[#allocation0 + $0x250] sm:$0xf] %v2545_v26  ;;  %v2603_v19 = vld [vmem:[%s4278_s0 + $0x40] sm:$0xf]  ;;  %v2380_v21 = vld [vmem:[%s4278_s0 + $0x3bc] sm:$0xf] }
  0x48   :  { %v1410_v32 = vld [vmem:[#allocation0 + $0x143] ss:$8 sm:$0xf]   ;;  %735 = vst [vmem:[#allocation0 + $0x248] sm:$0xf] %v2546_v27 }
  0x49   :  { %v1414_v33 = vsel %vm1028_vm0, %v1412_v29, %v1410_v32  ;;  %739 = vst [vmem:[#allocation0 + $0x240] sm:$0xf] %v2547_v28  ;;  %v2381_v22 = vld [vmem:[%s4278_s0 + $0x3b8] sm:$0xf]  ;;  %v2382_v25 = vld [vmem:[%s4278_s0 + $0x3b4] sm:$0xf] }
  0x4a   :  { %1415 = vrot.lane.b32.xlu0 %v1414_v33, %s2746_s15  ;;  %359 = vst [vmem:[#allocation0 + $0x538] sm:$0xf] %v2452_v30  ;;  %v2383_v26 = vld [vmem:[%s4278_s0 + $0x3b0] sm:$0xf]  ;;  %v2384_v27 = vld [vmem:[%s4278_s0 + $0x3ac] sm:$0xf] }
  0x4b   :  { %363 = vst [vmem:[#allocation0 + $0x530] sm:$0xf] %v2453_v31  ;;  %v2385_v28 = vld [vmem:[%s4278_s0 + $0x3a8] sm:$0xf]  ;;  %v2386_v29 = vld [vmem:[%s4278_s0 + $0x3a4] sm:$0xf] }
  0x4c   :  { %367 = vst [vmem:[#allocation0 + $0x528] sm:$0xf] %v2454_v34  ;;  %v1423_v40 = vld [vmem:[#allocation0 + $0x243] ss:$8 sm:$0xf0]  }
  0x4d   :  { %371 = vst [vmem:[#allocation0 + $0x520] sm:$0xf] %v2455_v35  ;;  %v2387_v30 = vld [vmem:[%s4278_s0 + $0x3a0] sm:$0xf]  ;;  %v2508_v32 = vld [vmem:[%s4278_s0 + $0x1bc] sm:$0xf] }
  0x4e   :  { %375 = vst [vmem:[#allocation0 + $0x518] sm:$0xf] %v2456_v36  ;;  %v2509_v33 = vld [vmem:[%s4278_s0 + $0x1b8] sm:$0xf]  ;;  %v2510_v36 = vld [vmem:[%s4278_s0 + $0x1b4] sm:$0xf] }
  0x4f   :  { %379 = vst [vmem:[#allocation0 + $0x510] sm:$0xf] %v2457_v37  ;;  %v2511_v37 = vld [vmem:[%s4278_s0 + $0x1b0] sm:$0xf] }
  0x50   :  { %v1421_v43 = vld [vmem:[#allocation0 + $0x243] ss:$8 sm:$0xf]   ;;  %383 = vst [vmem:[#allocation0 + $0x508] sm:$0xf] %v2458_v38 }
  0x51   :  { %v1425_v44 = vsel %vm1028_vm0, %v1423_v40, %v1421_v43  ;;  %387 = vst [vmem:[#allocation0 + $0x500] sm:$0xf] %v2459_v39  ;;  %v2512_v38 = vld [vmem:[%s4278_s0 + $0x1ac] sm:$0xf]  ;;  %v2513_v39 = vld [vmem:[%s4278_s0 + $0x1a8] sm:$0xf] }
  0x52   :  { %1426 = vrot.lane.b32.xlu1 %v1425_v44, %s2746_s15  ;;  %455 = vst [vmem:[#allocation0 + $0x478] sm:$0xf] %v2476_v41  ;;  %v2514_v40 = vld [vmem:[%s4278_s0 + $0x1a4] sm:$0xf]  ;;  %v2515_v41 = vld [vmem:[%s4278_s0 + $0x1a0] sm:$0xf] }
  0x53   :  { %459 = vst [vmem:[#allocation0 + $0x470] sm:$0xf] %v2477_v42  ;;  %v2500_v43 = vld [vmem:[%s4278_s0 + $0x1dc] sm:$0xf]  ;;  %v2501_v44 = vld [vmem:[%s4278_s0 + $0x1d8] sm:$0xf] }
  0x54   :  { %463 = vst [vmem:[#allocation0 + $0x468] sm:$0xf] %v2478_v45  ;;  %v1368_v51 = vld [vmem:[#allocation0 + $0x503] ss:$8 sm:$0xf0]  }
  0x55   :  { %467 = vst [vmem:[#allocation0 + $0x460] sm:$0xf] %v2479_v46 }
  0x56   :  { %471 = vst [vmem:[#allocation0 + $0x458] sm:$0xf] %v2480_v47  ;;  %v2502_v47 = vld [vmem:[%s4278_s0 + $0x1d4] sm:$0xf] }
  0x57   :  { %475 = vst [vmem:[#allocation0 + $0x450] sm:$0xf] %v2481_v48  ;;  %v2503_v48 = vld [vmem:[%s4278_s0 + $0x1d0] sm:$0xf] }
  0x58   :  { %v1366_v54 = vld [vmem:[#allocation0 + $0x503] ss:$8 sm:$0xf]   ;;  %479 = vst [vmem:[#allocation0 + $0x448] sm:$0xf] %v2482_v49 }
  0x59   :  { %v1370_v55 = vsel %vm1028_vm0, %v1368_v51, %v1366_v54  ;;  %483 = vst [vmem:[#allocation0 + $0x440] sm:$0xf] %v2483_v50  ;;  %v2504_v49 = vld [vmem:[%s4278_s0 + $0x1cc] sm:$0xf]  ;;  %v2505_v50 = vld [vmem:[%s4278_s0 + $0x1c8] sm:$0xf] }
  0x5a   :  { %1371 = vrot.lane.b32.xlu2 %v1370_v55, %s2746_s15  ;;  %327 = vst [vmem:[#allocation0 + $0x578] sm:$0xf] %v2444_v52  ;;  %v2506_v51 = vld [vmem:[%s4278_s0 + $0x1c4] sm:$0xf]  ;;  %v2507_v52 = vld [vmem:[%s4278_s0 + $0x1c0] sm:$0xf] }
  0x5b   :  { %331 = vst [vmem:[#allocation0 + $0x570] sm:$0xf] %v2445_v53  ;;  %v2532_v54 = vld [vmem:[%s4278_s0 + $0x15c] sm:$0xf]  ;;  %v2533_v55 = vld [vmem:[%s4278_s0 + $0x158] sm:$0xf] }
  0x5c   :  { %335 = vst [vmem:[#allocation0 + $0x568] sm:$0xf] %v2446_v56  ;;  %v1445_v62 = vld [vmem:[#allocation0 + $0x443] ss:$8 sm:$0xf0]  }
  0x5d   :  { %339 = vst [vmem:[#allocation0 + $0x560] sm:$0xf] %v2447_v57 }
  0x5e   :  { %343 = vst [vmem:[#allocation0 + $0x558] sm:$0xf] %v2448_v58  ;;  %v2534_v58 = vld [vmem:[%s4278_s0 + $0x154] sm:$0xf] }
  0x5f   :  { %347 = vst [vmem:[#allocation0 + $0x550] sm:$0xf] %v2449_v59  ;;  %v2535_v59 = vld [vmem:[%s4278_s0 + $0x150] sm:$0xf] }
  0x60   :  { %v1443_v1 = vld [vmem:[#allocation0 + $0x443] ss:$8 sm:$0xf]   ;;  %351 = vst [vmem:[#allocation0 + $0x548] sm:$0xf] %v2450_v60 }
  0x61   :  { %v1447_v2 = vsel %vm1028_vm0, %v1445_v62, %v1443_v1  ;;  %355 = vst [vmem:[#allocation0 + $0x540] sm:$0xf] %v2451_v61  ;;  %v2536_v60 = vld [vmem:[%s4278_s0 + $0x14c] sm:$0xf]  ;;  %v2537_v61 = vld [vmem:[%s4278_s0 + $0x148] sm:$0xf] }
  0x62   :  { %1448 = vrot.lane.b32.xlu0 %v1447_v2, %s2746_s15  ;;  %967 = vst [vmem:[#allocation0 + $0x78] sm:$0xf] %v2604_v63  ;;  %v2538_v62 = vld [vmem:[%s4278_s0 + $0x144] sm:$0xf]  ;;  %v2539_v63 = vld [vmem:[%s4278_s0 + $0x140] sm:$0xf] }
  0x63   :  { %971 = vst [vmem:[#allocation0 + $0x70] sm:$0xf] %v2605_v0  ;;  %v2412_v1 = vld [vmem:[%s4278_s0 + $0x33c] sm:$0xf]  ;;  %v2413_v2 = vld [vmem:[%s4278_s0 + $0x338] sm:$0xf] }
  0x64   :  { %975 = vst [vmem:[#allocation0 + $0x68] sm:$0xf] %v2606_v3  ;;  %v1456_v9 = vld [vmem:[#allocation0 + $0x543] ss:$8 sm:$0xf0]  }
  0x65   :  { %979 = vst [vmem:[#allocation0 + $0x60] sm:$0xf] %v2607_v4 }
  0x66   :  { %983 = vst [vmem:[#allocation0 + $0x58] sm:$0xf] %v2608_v5  ;;  %v2414_v5 = vld [vmem:[%s4278_s0 + $0x334] sm:$0xf] }
  0x67   :  { %987 = vst [vmem:[#allocation0 + $0x50] sm:$0xf] %v2609_v6  ;;  %v2415_v6 = vld [vmem:[%s4278_s0 + $0x330] sm:$0xf] }
  0x68   :  { %v1454_v12 = vld [vmem:[#allocation0 + $0x543] ss:$8 sm:$0xf]   ;;  %991 = vst [vmem:[#allocation0 + $0x48] sm:$0xf] %v2610_v7 }
  0x69   :  { %v1458_v13 = vsel %vm1028_vm0, %v1456_v9, %v1454_v12  ;;  %995 = vst [vmem:[#allocation0 + $0x40] sm:$0xf] %v2611_v8  ;;  %v2416_v7 = vld [vmem:[%s4278_s0 + $0x32c] sm:$0xf]  ;;  %v2417_v8 = vld [vmem:[%s4278_s0 + $0x328] sm:$0xf] }
  0x6a   :  { %1459 = vrot.lane.b32.xlu1 %v1458_v13, %s2746_s15  ;;  %935 = vst [vmem:[#allocation0 + $0xb8] sm:$0xf] %v2596_v10  ;;  %v2418_v9 = vld [vmem:[%s4278_s0 + $0x324] sm:$0xf]  ;;  %v2419_v10 = vld [vmem:[%s4278_s0 + $0x320] sm:$0xf] }
  0x6b   :  { %939 = vst [vmem:[#allocation0 + $0xb0] sm:$0xf] %v2597_v11  ;;  %v2404_v12 = vld [vmem:[%s4278_s0 + $0x35c] sm:$0xf]  ;;  %v2405_v13 = vld [vmem:[%s4278_s0 + $0x358] sm:$0xf] }
  0x6c   :  { %943 = vst [vmem:[#allocation0 + $0xa8] sm:$0xf] %v2598_v14  ;;  %v1401_v20 = vld [vmem:[#allocation0 + $0x43] ss:$8 sm:$0xf0]  }
  0x6d   :  { %947 = vst [vmem:[#allocation0 + $0xa0] sm:$0xf] %v2599_v15 }
  0x6e   :  { %951 = vst [vmem:[#allocation0 + $0x98] sm:$0xf] %v2600_v16  ;;  %v2406_v16 = vld [vmem:[%s4278_s0 + $0x354] sm:$0xf] }
  0x6f   :  { %955 = vst [vmem:[#allocation0 + $0x90] sm:$0xf] %v2601_v17  ;;  %v2407_v17 = vld [vmem:[%s4278_s0 + $0x350] sm:$0xf] }
  0x70   :  { %v1399_v23 = vld [vmem:[#allocation0 + $0x43] ss:$8 sm:$0xf]   ;;  %959 = vst [vmem:[#allocation0 + $0x88] sm:$0xf] %v2602_v18 }
  0x71   :  { %v1403_v24 = vsel %vm1028_vm0, %v1401_v20, %v1399_v23  ;;  %963 = vst [vmem:[#allocation0 + $0x80] sm:$0xf] %v2603_v19  ;;  %v2408_v18 = vld [vmem:[%s4278_s0 + $0x34c] sm:$0xf]  ;;  %v2409_v19 = vld [vmem:[%s4278_s0 + $0x348] sm:$0xf] }
  0x72   :  { %1404 = vrot.lane.b32.xlu2 %v1403_v24, %s2746_s15  ;;  %71 = vst [vmem:[#allocation0 + $0x778] sm:$0xf] %v2380_v21  ;;  %v2410_v20 = vld [vmem:[%s4278_s0 + $0x344] sm:$0xf]  ;;  %v2411_v21 = vld [vmem:[%s4278_s0 + $0x340] sm:$0xf] }
  0x73   :  { %75 = vst [vmem:[#allocation0 + $0x770] sm:$0xf] %v2381_v22  ;;  %v2436_v23 = vld [vmem:[%s4278_s0 + $0x2dc] sm:$0xf]  ;;  %v2437_v24 = vld [vmem:[%s4278_s0 + $0x2d8] sm:$0xf] }
  0x74   :  { %79 = vst [vmem:[#allocation0 + $0x768] sm:$0xf] %v2382_v25  ;;  %v1489_v31 = vld [vmem:[#allocation0 + $0x83] ss:$8 sm:$0xf0]  }
  0x75   :  { %83 = vst [vmem:[#allocation0 + $0x760] sm:$0xf] %v2383_v26 }
  0x76   :  { %87 = vst [vmem:[#allocation0 + $0x758] sm:$0xf] %v2384_v27  ;;  %v2438_v27 = vld [vmem:[%s4278_s0 + $0x2d4] sm:$0xf] }
  0x77   :  { %91 = vst [vmem:[#allocation0 + $0x750] sm:$0xf] %v2385_v28  ;;  %v2439_v28 = vld [vmem:[%s4278_s0 + $0x2d0] sm:$0xf] }
  0x78   :  { %v1487_v34 = vld [vmem:[#allocation0 + $0x83] ss:$8 sm:$0xf]   ;;  %95 = vst [vmem:[#allocation0 + $0x748] sm:$0xf] %v2386_v29 }
  0x79   :  { %v1491_v35 = vsel %vm1028_vm0, %v1489_v31, %v1487_v34  ;;  %99 = vst [vmem:[#allocation0 + $0x740] sm:$0xf] %v2387_v30  ;;  %v2440_v29 = vld [vmem:[%s4278_s0 + $0x2cc] sm:$0xf]  ;;  %v2441_v30 = vld [vmem:[%s4278_s0 + $0x2c8] sm:$0xf] }
  0x7a   :  { %1492 = vrot.lane.b32.xlu1 %v1491_v35, %s2746_s15  ;;  %583 = vst [vmem:[#allocation0 + $0x378] sm:$0xf] %v2508_v32  ;;  %v2442_v31 = vld [vmem:[%s4278_s0 + $0x2c4] sm:$0xf]  ;;  %v2443_v32 = vld [vmem:[%s4278_s0 + $0x2c0] sm:$0xf] }
  0x7b   :  { %587 = vst [vmem:[#allocation0 + $0x370] sm:$0xf] %v2509_v33  ;;  %v2564_v34 = vld [vmem:[%s4278_s0 + $0xdc] sm:$0xf]  ;;  %v2565_v35 = vld [vmem:[%s4278_s0 + $0xd8] sm:$0xf] }
  0x7c   :  { %591 = vst [vmem:[#allocation0 + $0x368] sm:$0xf] %v2510_v36  ;;  %v1478_v42 = vld [vmem:[#allocation0 + $0x743] ss:$8 sm:$0xf0]  }
  0x7d   :  { %595 = vst [vmem:[#allocation0 + $0x360] sm:$0xf] %v2511_v37 }
  0x7e   :  { %599 = vst [vmem:[#allocation0 + $0x358] sm:$0xf] %v2512_v38  ;;  %v2566_v38 = vld [vmem:[%s4278_s0 + $0xd4] sm:$0xf] }
  0x7f   :  { %603 = vst [vmem:[#allocation0 + $0x350] sm:$0xf] %v2513_v39  ;;  %v2567_v39 = vld [vmem:[%s4278_s0 + $0xd0] sm:$0xf] }
  0x80   :  { %v1476_v45 = vld [vmem:[#allocation0 + $0x743] ss:$8 sm:$0xf]   ;;  %607 = vst [vmem:[#allocation0 + $0x348] sm:$0xf] %v2514_v40 }
  0x81   :  { %v1480_v46 = vsel %vm1028_vm0, %v1478_v42, %v1476_v45  ;;  %611 = vst [vmem:[#allocation0 + $0x340] sm:$0xf] %v2515_v41  ;;  %v2568_v40 = vld [vmem:[%s4278_s0 + $0xcc] sm:$0xf]  ;;  %v2569_v41 = vld [vmem:[%s4278_s0 + $0xc8] sm:$0xf] }
  0x82   :  { %1481 = vrot.lane.b32.xlu0 %v1480_v46, %s2746_s15  ;;  %551 = vst [vmem:[#allocation0 + $0x3b8] sm:$0xf] %v2500_v43  ;;  %v2570_v42 = vld [vmem:[%s4278_s0 + $0xc4] sm:$0xf]  ;;  %v2571_v43 = vld [vmem:[%s4278_s0 + $0xc0] sm:$0xf] }
  0x83   :  { %555 = vst [vmem:[#allocation0 + $0x3b0] sm:$0xf] %v2501_v44  ;;  %v2556_v45 = vld [vmem:[%s4278_s0 + $0xfc] sm:$0xf]  ;;  %v2557_v46 = vld [vmem:[%s4278_s0 + $0xf8] sm:$0xf] }
  0x84   :  { %559 = vst [vmem:[#allocation0 + $0x3a8] sm:$0xf] %v2502_v47  ;;  %v1434_v53 = vld [vmem:[#allocation0 + $0x343] ss:$8 sm:$0xf0]  }
  0x85   :  { %563 = vst [vmem:[#allocation0 + $0x3a0] sm:$0xf] %v2503_v48 }
  0x86   :  { %567 = vst [vmem:[#allocation0 + $0x398] sm:$0xf] %v2504_v49  ;;  %v2558_v49 = vld [vmem:[%s4278_s0 + $0xf4] sm:$0xf] }
  0x87   :  { %571 = vst [vmem:[#allocation0 + $0x390] sm:$0xf] %v2505_v50  ;;  %v2559_v50 = vld [vmem:[%s4278_s0 + $0xf0] sm:$0xf] }
  0x88   :  { %v1432_v56 = vld [vmem:[#allocation0 + $0x343] ss:$8 sm:$0xf]   ;;  %575 = vst [vmem:[#allocation0 + $0x388] sm:$0xf] %v2506_v51 }
  0x89   :  { %v1436_v57 = vsel %vm1028_vm0, %v1434_v53, %v1432_v56  ;;  %579 = vst [vmem:[#allocation0 + $0x380] sm:$0xf] %v2507_v52  ;;  %v2560_v51 = vld [vmem:[%s4278_s0 + $0xec] sm:$0xf]  ;;  %v2561_v52 = vld [vmem:[%s4278_s0 + $0xe8] sm:$0xf] }
  0x8a   :  { %1437 = vrot.lane.b32.xlu2 %v1436_v57, %s2746_s15  ;;  %679 = vst [vmem:[#allocation0 + $0x2b8] sm:$0xf] %v2532_v54  ;;  %v2562_v53 = vld [vmem:[%s4278_s0 + $0xe4] sm:$0xf]  ;;  %v2563_v54 = vld [vmem:[%s4278_s0 + $0xe0] sm:$0xf] }
  0x8b   :  { %683 = vst [vmem:[#allocation0 + $0x2b0] sm:$0xf] %v2533_v55  ;;  %v2588_v56 = vld [vmem:[%s4278_s0 + $0x7c] sm:$0xf]  ;;  %v2589_v57 = vld [vmem:[%s4278_s0 + $0x78] sm:$0xf] }
  0x8c   :  { %687 = vst [vmem:[#allocation0 + $0x2a8] sm:$0xf] %v2534_v58  ;;  %v1522_v0 = vld [vmem:[#allocation0 + $0x383] ss:$8 sm:$0xf0]  }
  0x8d   :  { %691 = vst [vmem:[#allocation0 + $0x2a0] sm:$0xf] %v2535_v59 }
  0x8e   :  { %695 = vst [vmem:[#allocation0 + $0x298] sm:$0xf] %v2536_v60  ;;  %v2590_v60 = vld [vmem:[%s4278_s0 + $0x74] sm:$0xf] }
  0x8f   :  { %699 = vst [vmem:[#allocation0 + $0x290] sm:$0xf] %v2537_v61  ;;  %v2591_v61 = vld [vmem:[%s4278_s0 + $0x70] sm:$0xf] }
  0x90   :  { %v1520_v3 = vld [vmem:[#allocation0 + $0x383] ss:$8 sm:$0xf]   ;;  %703 = vst [vmem:[#allocation0 + $0x288] sm:$0xf] %v2538_v62 }
  0x91   :  { %v1524_v4 = vsel %vm1028_vm0, %v1522_v0, %v1520_v3  ;;  %707 = vst [vmem:[#allocation0 + $0x280] sm:$0xf] %v2539_v63  ;;  %v2592_v62 = vld [vmem:[%s4278_s0 + $0x6c] sm:$0xf]  ;;  %v2593_v63 = vld [vmem:[%s4278_s0 + $0x68] sm:$0xf] }
  0x92   :  { %1525 = vrot.lane.b32.xlu1 %v1524_v4, %s2746_s15  ;;  %199 = vst [vmem:[#allocation0 + $0x678] sm:$0xf] %v2412_v1  ;;  %v2594_v0 = vld [vmem:[%s4278_s0 + $0x64] sm:$0xf]  ;;  %v2595_v1 = vld [vmem:[%s4278_s0 + $0x60] sm:$0xf] }
  0x93   :  { %203 = vst [vmem:[#allocation0 + $0x670] sm:$0xf] %v2413_v2  ;;  %v2468_v3 = vld [vmem:[%s4278_s0 + $0x25c] sm:$0xf]  ;;  %v2469_v4 = vld [vmem:[%s4278_s0 + $0x258] sm:$0xf] }
  0x94   :  { %207 = vst [vmem:[#allocation0 + $0x668] sm:$0xf] %v2414_v5  ;;  %v1511_v11 = vld [vmem:[#allocation0 + $0x283] ss:$8 sm:$0xf0]  }
  0x95   :  { %211 = vst [vmem:[#allocation0 + $0x660] sm:$0xf] %v2415_v6 }
  0x96   :  { %215 = vst [vmem:[#allocation0 + $0x658] sm:$0xf] %v2416_v7  ;;  %v2470_v7 = vld [vmem:[%s4278_s0 + $0x254] sm:$0xf] }
  0x97   :  { %219 = vst [vmem:[#allocation0 + $0x650] sm:$0xf] %v2417_v8  ;;  %v2471_v8 = vld [vmem:[%s4278_s0 + $0x250] sm:$0xf] }
  0x98   :  { %v1509_v14 = vld [vmem:[#allocation0 + $0x283] ss:$8 sm:$0xf]   ;;  %223 = vst [vmem:[#allocation0 + $0x648] sm:$0xf] %v2418_v9 }
  0x99   :  { %v1513_v15 = vsel %vm1028_vm0, %v1511_v11, %v1509_v14  ;;  %227 = vst [vmem:[#allocation0 + $0x640] sm:$0xf] %v2419_v10  ;;  %v2472_v9 = vld [vmem:[%s4278_s0 + $0x24c] sm:$0xf]  ;;  %v2473_v10 = vld [vmem:[%s4278_s0 + $0x248] sm:$0xf] }
  0x9a   :  { %1514 = vrot.lane.b32.xlu0 %v1513_v15, %s2746_s15  ;;  %167 = vst [vmem:[#allocation0 + $0x6b8] sm:$0xf] %v2404_v12  ;;  %v2474_v11 = vld [vmem:[%s4278_s0 + $0x244] sm:$0xf]  ;;  %v2475_v12 = vld [vmem:[%s4278_s0 + $0x240] sm:$0xf] }
  0x9b   :  { %171 = vst [vmem:[#allocation0 + $0x6b0] sm:$0xf] %v2405_v13  ;;  %v2460_v14 = vld [vmem:[%s4278_s0 + $0x27c] sm:$0xf]  ;;  %v2461_v15 = vld [vmem:[%s4278_s0 + $0x278] sm:$0xf] }
  0x9c   :  { %175 = vst [vmem:[#allocation0 + $0x6a8] sm:$0xf] %v2406_v16  ;;  %v1467_v22 = vld [vmem:[#allocation0 + $0x643] ss:$8 sm:$0xf0]  }
  0x9d   :  { %179 = vst [vmem:[#allocation0 + $0x6a0] sm:$0xf] %v2407_v17 }
  0x9e   :  { %183 = vst [vmem:[#allocation0 + $0x698] sm:$0xf] %v2408_v18  ;;  %v2462_v18 = vld [vmem:[%s4278_s0 + $0x274] sm:$0xf] }
  0x9f   :  { %187 = vst [vmem:[#allocation0 + $0x690] sm:$0xf] %v2409_v19  ;;  %v2463_v19 = vld [vmem:[%s4278_s0 + $0x270] sm:$0xf] }
  0xa0   :  { %v1465_v25 = vld [vmem:[#allocation0 + $0x643] ss:$8 sm:$0xf]   ;;  %191 = vst [vmem:[#allocation0 + $0x688] sm:$0xf] %v2410_v20 }
  0xa1   :  { %v1469_v26 = vsel %vm1028_vm0, %v1467_v22, %v1465_v25  ;;  %195 = vst [vmem:[#allocation0 + $0x680] sm:$0xf] %v2411_v21  ;;  %v2464_v20 = vld [vmem:[%s4278_s0 + $0x26c] sm:$0xf]  ;;  %v2465_v21 = vld [vmem:[%s4278_s0 + $0x268] sm:$0xf] }
  0xa2   :  { %1470 = vrot.lane.b32.xlu2 %v1469_v26, %s2746_s15  ;;  %295 = vst [vmem:[#allocation0 + $0x5b8] sm:$0xf] %v2436_v23  ;;  %v2466_v22 = vld [vmem:[%s4278_s0 + $0x264] sm:$0xf]  ;;  %v2467_v23 = vld [vmem:[%s4278_s0 + $0x260] sm:$0xf] }
  0xa3   :  { %299 = vst [vmem:[#allocation0 + $0x5b0] sm:$0xf] %v2437_v24  ;;  %v2492_v25 = vld [vmem:[%s4278_s0 + $0x1fc] sm:$0xf]  ;;  %v2493_v26 = vld [vmem:[%s4278_s0 + $0x1f8] sm:$0xf] }
  0xa4   :  { %303 = vst [vmem:[#allocation0 + $0x5a8] sm:$0xf] %v2438_v27  ;;  %v1555_v33 = vld [vmem:[#allocation0 + $0x683] ss:$8 sm:$0xf0]  }
  0xa5   :  { %307 = vst [vmem:[#allocation0 + $0x5a0] sm:$0xf] %v2439_v28 }
  0xa6   :  { %311 = vst [vmem:[#allocation0 + $0x598] sm:$0xf] %v2440_v29  ;;  %v2494_v29 = vld [vmem:[%s4278_s0 + $0x1f4] sm:$0xf] }
  0xa7   :  { %315 = vst [vmem:[#allocation0 + $0x590] sm:$0xf] %v2441_v30  ;;  %v2495_v30 = vld [vmem:[%s4278_s0 + $0x1f0] sm:$0xf] }
  0xa8   :  { %v1553_v36 = vld [vmem:[#allocation0 + $0x683] ss:$8 sm:$0xf]   ;;  %319 = vst [vmem:[#allocation0 + $0x588] sm:$0xf] %v2442_v31 }
  0xa9   :  { %v1557_v37 = vsel %vm1028_vm0, %v1555_v33, %v1553_v36  ;;  %323 = vst [vmem:[#allocation0 + $0x580] sm:$0xf] %v2443_v32  ;;  %v2496_v31 = vld [vmem:[%s4278_s0 + $0x1ec] sm:$0xf]  ;;  %v2497_v32 = vld [vmem:[%s4278_s0 + $0x1e8] sm:$0xf] }
  0xaa   :  { %1558 = vrot.lane.b32.xlu1 %v1557_v37, %s2746_s15  ;;  %807 = vst [vmem:[#allocation0 + $0x1b8] sm:$0xf] %v2564_v34  ;;  %v2498_v33 = vld [vmem:[%s4278_s0 + $0x1e4] sm:$0xf]  ;;  %v2499_v34 = vld [vmem:[%s4278_s0 + $0x1e0] sm:$0xf] }
  0xab   :  { %811 = vst [vmem:[#allocation0 + $0x1b0] sm:$0xf] %v2565_v35  ;;  %v2396_v36 = vld [vmem:[%s4278_s0 + $0x37c] sm:$0xf]  ;;  %v2397_v37 = vld [vmem:[%s4278_s0 + $0x378] sm:$0xf] }
  0xac   :  { %815 = vst [vmem:[#allocation0 + $0x1a8] sm:$0xf] %v2566_v38  ;;  %v1544_v44 = vld [vmem:[#allocation0 + $0x583] ss:$8 sm:$0xf0]  }
  0xad   :  { %819 = vst [vmem:[#allocation0 + $0x1a0] sm:$0xf] %v2567_v39 }
  0xae   :  { %823 = vst [vmem:[#allocation0 + $0x198] sm:$0xf] %v2568_v40  ;;  %v2398_v40 = vld [vmem:[%s4278_s0 + $0x374] sm:$0xf] }
  0xaf   :  { %827 = vst [vmem:[#allocation0 + $0x190] sm:$0xf] %v2569_v41  ;;  %v2399_v41 = vld [vmem:[%s4278_s0 + $0x370] sm:$0xf] }
  0xb0   :  { %v1542_v47 = vld [vmem:[#allocation0 + $0x583] ss:$8 sm:$0xf]   ;;  %831 = vst [vmem:[#allocation0 + $0x188] sm:$0xf] %v2570_v42 }
  0xb1   :  { %v1546_v48 = vsel %vm1028_vm0, %v1544_v44, %v1542_v47  ;;  %835 = vst [vmem:[#allocation0 + $0x180] sm:$0xf] %v2571_v43  ;;  %v2400_v42 = vld [vmem:[%s4278_s0 + $0x36c] sm:$0xf]  ;;  %v2401_v43 = vld [vmem:[%s4278_s0 + $0x368] sm:$0xf] }
  0xb2   :  { %1547 = vrot.lane.b32.xlu0 %v1546_v48, %s2746_s15  ;;  %775 = vst [vmem:[#allocation0 + $0x1f8] sm:$0xf] %v2556_v45  ;;  %v2402_v44 = vld [vmem:[%s4278_s0 + $0x364] sm:$0xf]  ;;  %v2403_v45 = vld [vmem:[%s4278_s0 + $0x360] sm:$0xf] }
  0xb3   :  { %779 = vst [vmem:[#allocation0 + $0x1f0] sm:$0xf] %v2557_v46  ;;  %v2372_v47 = vld [vmem:[%s4278_s0 + $0x3dc] sm:$0xf]  ;;  %v2373_v48 = vld [vmem:[%s4278_s0 + $0x3d8] sm:$0xf] }
  0xb4   :  { %783 = vst [vmem:[#allocation0 + $0x1e8] sm:$0xf] %v2558_v49  ;;  %v1500_v55 = vld [vmem:[#allocation0 + $0x183] ss:$8 sm:$0xf0]  }
  0xb5   :  { %787 = vst [vmem:[#allocation0 + $0x1e0] sm:$0xf] %v2559_v50 }
  0xb6   :  { %791 = vst [vmem:[#allocation0 + $0x1d8] sm:$0xf] %v2560_v51  ;;  %v2374_v51 = vld [vmem:[%s4278_s0 + $0x3d4] sm:$0xf] }
  0xb7   :  { %795 = vst [vmem:[#allocation0 + $0x1d0] sm:$0xf] %v2561_v52  ;;  %v2375_v52 = vld [vmem:[%s4278_s0 + $0x3d0] sm:$0xf] }
  0xb8   :  { %v1498_v58 = vld [vmem:[#allocation0 + $0x183] ss:$8 sm:$0xf]   ;;  %799 = vst [vmem:[#allocation0 + $0x1c8] sm:$0xf] %v2562_v53 }
  0xb9   :  { %v1502_v59 = vsel %vm1028_vm0, %v1500_v55, %v1498_v58  ;;  %803 = vst [vmem:[#allocation0 + $0x1c0] sm:$0xf] %v2563_v54  ;;  %v2376_v53 = vld [vmem:[%s4278_s0 + $0x3cc] sm:$0xf]  ;;  %v2377_v54 = vld [vmem:[%s4278_s0 + $0x3c8] sm:$0xf] }
  0xba   :  { %1503 = vrot.lane.b32.xlu2 %v1502_v59, %s2746_s15  ;;  %903 = vst [vmem:[#allocation0 + $0xf8] sm:$0xf] %v2588_v56  ;;  %v2378_v55 = vld [vmem:[%s4278_s0 + $0x3c4] sm:$0xf]  ;;  %v2379_v56 = vld [vmem:[%s4278_s0 + $0x3c0] sm:$0xf] }
  0xbb   :  { %907 = vst [vmem:[#allocation0 + $0xf0] sm:$0xf] %v2589_v57  ;;  %v2364_v58 = vld [vmem:[%s4278_s0 + $0x3fc] sm:$0xf]  ;;  %v2365_v59 = vld [vmem:[%s4278_s0 + $0x3f8] sm:$0xf] }
  0xbc   :  { %911 = vst [vmem:[#allocation0 + $0xe8] sm:$0xf] %v2590_v60  ;;  %v1588_v2 = vld [vmem:[#allocation0 + $0x1c3] ss:$8 sm:$0xf0]  }
  0xbd   :  { %915 = vst [vmem:[#allocation0 + $0xe0] sm:$0xf] %v2591_v61 }
  0xbe   :  { %919 = vst [vmem:[#allocation0 + $0xd8] sm:$0xf] %v2592_v62  ;;  %v2366_v62 = vld [vmem:[%s4278_s0 + $0x3f4] sm:$0xf] }
  0xbf   :  { %923 = vst [vmem:[#allocation0 + $0xd0] sm:$0xf] %v2593_v63  ;;  %v2367_v63 = vld [vmem:[%s4278_s0 + $0x3f0] sm:$0xf] }
  0xc0   :  { %v1586_v5 = vld [vmem:[#allocation0 + $0x1c3] ss:$8 sm:$0xf]   ;;  %927 = vst [vmem:[#allocation0 + $0xc8] sm:$0xf] %v2594_v0 }
  0xc1   :  { %v1590_v6 = vsel %vm1028_vm0, %v1588_v2, %v1586_v5  ;;  %931 = vst [vmem:[#allocation0 + $0xc0] sm:$0xf] %v2595_v1  ;;  %v2368_v0 = vld [vmem:[%s4278_s0 + $0x3ec] sm:$0xf]  ;;  %v2369_v1 = vld [vmem:[%s4278_s0 + $0x3e8] sm:$0xf] }
  0xc2   :  { %1591 = vrot.lane.b32.xlu1 %v1590_v6, %s2746_s15  ;;  %423 = vst [vmem:[#allocation0 + $0x4b8] sm:$0xf] %v2468_v3  ;;  %v1673_v2 = vld [vmem:[#allocation0 + $0x102] ss:$8 sm:$0xf]  }
  0xc3   :  { %427 = vst [vmem:[#allocation0 + $0x4b0] sm:$0xf] %v2469_v4  ;;  %v1675_v3 = vld [vmem:[#allocation0 + $0x102] ss:$8 sm:$0xf0]  }
  0xc4   :  { %431 = vst [vmem:[#allocation0 + $0x4a8] sm:$0xf] %v2470_v7  ;;  %v1577_v13 = vld [vmem:[#allocation0 + $0xc3] ss:$8 sm:$0xf0]   ;;  %v1677_v7 = vsel %vm1028_vm0, %v1675_v3, %v1673_v2 }
  0xc5   :  { %435 = vst [vmem:[#allocation0 + $0x4a0] sm:$0xf] %v2471_v8  ;;  %v2370_v4 = vld [vmem:[%s4278_s0 + $0x3e4] sm:$0xf]  ;;  %v2371_v5 = vld [vmem:[%s4278_s0 + $0x3e0] sm:$0xf] }
  0xc6   :  { %439 = vst [vmem:[#allocation0 + $0x498] sm:$0xf] %v2472_v9  ;;  %v2524_v8 = vld [vmem:[%s4278_s0 + $0x17c] sm:$0xf]  ;;  %v2525_v9 = vld [vmem:[%s4278_s0 + $0x178] sm:$0xf] }
  0xc7   :  { %443 = vst [vmem:[#allocation0 + $0x490] sm:$0xf] %v2473_v10  ;;  %v1665_v2 = vld [vmem:[#allocation0 + $0x2] ss:$8 sm:$0xf0]  }
  0xc8   :  { %v1575_v16 = vld [vmem:[#allocation0 + $0xc3] ss:$8 sm:$0xf]   ;;  %447 = vst [vmem:[#allocation0 + $0x488] sm:$0xf] %v2474_v11 }
  0xc9   :  { %v1579_v17 = vsel %vm1028_vm0, %v1577_v13, %v1575_v16  ;;  %451 = vst [vmem:[#allocation0 + $0x480] sm:$0xf] %v2475_v12  ;;  %v2526_v12 = vld [vmem:[%s4278_s0 + $0x174] sm:$0xf]  ;;  %v2527_v13 = vld [vmem:[%s4278_s0 + $0x170] sm:$0xf] }
  0xca   :  { %1580 = vrot.lane.b32.xlu0 %v1579_v17, %s2746_s15  ;;  %391 = vst [vmem:[#allocation0 + $0x4f8] sm:$0xf] %v2460_v14  ;;  %v2528_v14 = vld [vmem:[%s4278_s0 + $0x16c] sm:$0xf] }
  0xcb   :  { %395 = vst [vmem:[#allocation0 + $0x4f0] sm:$0xf] %v2461_v15  ;;  %v2529_v15 = vld [vmem:[%s4278_s0 + $0x168] sm:$0xf] }
  0xcc   :  { %399 = vst [vmem:[#allocation0 + $0x4e8] sm:$0xf] %v2462_v18  ;;  %v1533_v24 = vld [vmem:[#allocation0 + $0x483] ss:$8 sm:$0xf0]  }
  0xcd   :  { %403 = vst [vmem:[#allocation0 + $0x4e0] sm:$0xf] %v2463_v19  ;;  %v1706_v16 = vld [vmem:[#allocation0 + $0x402] ss:$8 sm:$0xf]  }
  0xce   :  { %407 = vst [vmem:[#allocation0 + $0x4d8] sm:$0xf] %v2464_v20  ;;  %v1708_v17 = vld [vmem:[#allocation0 + $0x402] ss:$8 sm:$0xf0]  }
  0xcf   :  { %411 = vst [vmem:[#allocation0 + $0x4d0] sm:$0xf] %v2465_v21  ;;  %v2530_v18 = vld [vmem:[%s4278_s0 + $0x164] sm:$0xf]  ;;  %v2531_v19 = vld [vmem:[%s4278_s0 + $0x160] sm:$0xf]  ;;  %v1710_v21 = vsel %vm1028_vm0, %v1708_v17, %v1706_v16 }
  0xd0   :  { %v1531_v27 = vld [vmem:[#allocation0 + $0x483] ss:$8 sm:$0xf]   ;;  %415 = vst [vmem:[#allocation0 + $0x4c8] sm:$0xf] %v2466_v22 }
  0xd1   :  { %v1535_v28 = vsel %vm1028_vm0, %v1533_v24, %v1531_v27  ;;  %419 = vst [vmem:[#allocation0 + $0x4c0] sm:$0xf] %v2467_v23  ;;  %v2428_v22 = vld [vmem:[%s4278_s0 + $0x2fc] sm:$0xf]  ;;  %v2429_v23 = vld [vmem:[%s4278_s0 + $0x2f8] sm:$0xf] }
  0xd2   :  { %1536 = vrot.lane.b32.xlu2 %v1535_v28, %s2746_s15  ;;  %519 = vst [vmem:[#allocation0 + $0x3f8] sm:$0xf] %v2492_v25  ;;  %v2431_v27 = vld [vmem:[%s4278_s0 + $0x2f0] sm:$0xf] }
  0xd3   :  { %523 = vst [vmem:[#allocation0 + $0x3f0] sm:$0xf] %v2493_v26  ;;  %v2430_v26 = vld [vmem:[%s4278_s0 + $0x2f4] sm:$0xf] }
  0xd4   :  { %527 = vst [vmem:[#allocation0 + $0x3e8] sm:$0xf] %v2494_v29  ;;  %v1621_v35 = vld [vmem:[#allocation0 + $0x4c3] ss:$8 sm:$0xf0]  }
  0xd5   :  { %531 = vst [vmem:[#allocation0 + $0x3e0] sm:$0xf] %v2495_v30  ;;  %v1684_v28 = vld [vmem:[#allocation0 + $0x202] ss:$8 sm:$0xf]  }
  0xd6   :  { %535 = vst [vmem:[#allocation0 + $0x3d8] sm:$0xf] %v2496_v31  ;;  %v1686_v29 = vld [vmem:[#allocation0 + $0x202] ss:$8 sm:$0xf0]  }
  0xd7   :  { %539 = vst [vmem:[#allocation0 + $0x3d0] sm:$0xf] %v2497_v32  ;;  %v2432_v30 = vld [vmem:[%s4278_s0 + $0x2ec] sm:$0xf]  ;;  %v2433_v31 = vld [vmem:[%s4278_s0 + $0x2e8] sm:$0xf]  ;;  %v1318_v32 = vpop.permute.xlu0 %1317  }
  0xd8   :  { %v1619_v38 = vld [vmem:[#allocation0 + $0x4c3] ss:$8 sm:$0xf]   ;;  %543 = vst [vmem:[#allocation0 + $0x3c8] sm:$0xf] %v2498_v33  ;;  %v1339_v33 = vpop.permute.xlu1 %1338  }
  0xd9   :  { %v1623_v39 = vsel %vm1028_vm0, %v1621_v35, %v1619_v38  ;;  %547 = vst [vmem:[#allocation0 + $0x3c0] sm:$0xf] %v2499_v34  ;;  %v2434_v34 = vld [vmem:[%s4278_s0 + $0x2e4] sm:$0xf] }
  0xda   :  { %1624 = vrot.lane.b32.xlu1 %v1623_v39, %s2746_s15  ;;  %135 = vst [vmem:[#allocation0 + $0x6f8] sm:$0xf] %v2396_v36  ;;  %v1739_v35 = vld [vmem:[#allocation0 + $0x702] ss:$8 sm:$0xf]   ;;  %v1361_v36 = vpop.permute.xlu2 %1360  }
  0xdb   :  { %139 = vst [vmem:[#allocation0 + $0x6f0] sm:$0xf] %v2397_v37  ;;  %v2435_v37 = vld [vmem:[%s4278_s0 + $0x2e0] sm:$0xf] }
  0xdc   :  { %143 = vst [vmem:[#allocation0 + $0x6e8] sm:$0xf] %v2398_v40  ;;  %v1610_v46 = vld [vmem:[#allocation0 + $0x3c3] ss:$8 sm:$0xf0]  }
  0xdd   :  { %147 = vst [vmem:[#allocation0 + $0x6e0] sm:$0xf] %v2399_v41  ;;  %v1741_v38 = vld [vmem:[#allocation0 + $0x702] ss:$8 sm:$0xf0]   ;;  %v1688_v41 = vsel %vm1028_vm0, %v1686_v29, %v1684_v28 }
  0xde   :  { %151 = vst [vmem:[#allocation0 + $0x6d8] sm:$0xf] %v2400_v42  ;;  %v1026_v40 = vld [vmem:[#allocation0] ss:$8 sm:$0xf]  }
  0xdf   :  { %155 = vst [vmem:[#allocation0 + $0x6d0] sm:$0xf] %v2401_v43  ;;  %v1027_v42 = vld [vmem:[#allocation0] ss:$8 sm:$0xf0]  }
  0xe0   :  { %v1608_v49 = vld [vmem:[#allocation0 + $0x3c3] ss:$8 sm:$0xf]   ;;  %159 = vst [vmem:[#allocation0 + $0x6c8] sm:$0xf] %v2402_v44  ;;  %v1743_v44 = vsel %vm1028_vm0, %v1741_v38, %v1739_v35 }
  0xe1   :  { %v1612_v50 = vsel %vm1028_vm0, %v1610_v46, %v1608_v49  ;;  %163 = vst [vmem:[#allocation0 + $0x6c0] sm:$0xf] %v2403_v45  ;;  %v1029_v45 = vsel %vm1028_vm0, %v1027_v42, %v1026_v40  ;;  %v1719_v49 = vld [vmem:[#allocation0 + $0x502] ss:$8 sm:$0xf0]  }
  0xe2   :  { %1613 = vrot.lane.b32.xlu0 %v1612_v50, %s2746_s15  ;;  %39 = vst [vmem:[#allocation0 + $0x7b8] sm:$0xf] %v2372_v47  ;;  %v1096_v47 = vld [vmem:[#allocation0 + $0x200] ss:$8 sm:$0xf]  }
  0xe3   :  { %43 = vst [vmem:[#allocation0 + $0x7b0] sm:$0xf] %v2373_v48  ;;  %v1717_v48 = vld [vmem:[#allocation0 + $0x502] ss:$8 sm:$0xf]  }
  0xe4   :  { %47 = vst [vmem:[#allocation0 + $0x7a8] sm:$0xf] %v2374_v51  ;;  %v1643_v57 = vld [vmem:[#allocation0 + $0x6c3] ss:$8 sm:$0xf0]   ;;  %v1328_v51 = vpop.permute.xlu0 %1327  }
  0xe5   :  { %51 = vst [vmem:[#allocation0 + $0x7a0] sm:$0xf] %v2375_v52  ;;  %v1098_v50 = vld [vmem:[#allocation0 + $0x200] ss:$8 sm:$0xf0]   ;;  %v1350_v52 = vpop.permute.xlu1 %1349  }
  0xe6   :  { %55 = vst [vmem:[#allocation0 + $0x798] sm:$0xf] %v2376_v53  ;;  %v1772_v53 = vld [vmem:[#allocation0 + $0x242] ss:$8 sm:$0xf]  }
  0xe7   :  { %59 = vst [vmem:[#allocation0 + $0x790] sm:$0xf] %v2377_v54  ;;  %v1100_v54 = vsel %vm1028_vm0, %v1098_v50, %v1096_v47  ;;  %v1750_v3 = vld [vmem:[#allocation0 + $0x42] ss:$8 sm:$0xf]  }
  0xe8   :  { %v1641_v60 = vld [vmem:[#allocation0 + $0x6c3] ss:$8 sm:$0xf]   ;;  %63 = vst [vmem:[#allocation0 + $0x788] sm:$0xf] %v2378_v55 }
  0xe9   :  { %v1645_v61 = vsel %vm1028_vm0, %v1643_v57, %v1641_v60  ;;  %67 = vst [vmem:[#allocation0 + $0x780] sm:$0xf] %v2379_v56  ;;  %v1168_v55 = vld [vmem:[#allocation0 + $0x400] ss:$8 sm:$0xf]   ;;  %v1372_v56 = vpop.permute.xlu2 %1371  }
  0xea   :  { %1646 = vrot.lane.b32.xlu0 %v1645_v61, %s2746_s15  ;;  %7 = vst [vmem:[#allocation0 + $0x7f8] sm:$0xf] %v2364_v58  ;;  %v1774_v57 = vld [vmem:[#allocation0 + $0x242] ss:$8 sm:$0xf0]   ;;  %v1721_v61 = vsel %vm1028_vm0, %v1719_v49, %v1717_v48 }
  0xeb   :  { %11 = vst [vmem:[#allocation0 + $0x7f0] sm:$0xf] %v2365_v59  ;;  %v1170_v58 = vld [vmem:[#allocation0 + $0x400] ss:$8 sm:$0xf0]  }
  0xec   :  { %15 = vst [vmem:[#allocation0 + $0x7e8] sm:$0xf] %v2366_v62  ;;  %v1566_v6 = vld [vmem:[#allocation0 + $0x783] ss:$8 sm:$0xf0]   ;;  %v1172_v60 = vsel %vm1028_vm0, %v1170_v58, %v1168_v55 }
  0xed   :  { %19 = vst [vmem:[#allocation0 + $0x7e0] sm:$0xf] %v2367_v63  ;;  %v1776_v63 = vsel %vm1028_vm0, %v1774_v57, %v1772_v53  ;;  %v1206_v17 = vld [vmem:[#allocation0 + $0x500] ss:$8 sm:$0xf0]  }
  0xee   :  { %23 = vst [vmem:[#allocation0 + $0x7d8] sm:$0xf] %v2368_v0  ;;  %v1838_v28 = vld [vmem:[#allocation0 + $0x82] ss:$8 sm:$0xf]  }
  0xef   :  { %27 = vst [vmem:[#allocation0 + $0x7d0] sm:$0xf] %v2369_v1  ;;  %v1663_v1 = vld [vmem:[#allocation0 + $0x2] ss:$8 sm:$0xf]  }
  0xf0   :  { %v1564_v10 = vld [vmem:[#allocation0 + $0x783] ss:$8 sm:$0xf]   ;;  %31 = vst [vmem:[#allocation0 + $0x7c8] sm:$0xf] %v2370_v4 }
  0xf1   :  { %v1568_v11 = vsel %vm1028_vm0, %v1566_v6, %v1564_v10  ;;  %35 = vst [vmem:[#allocation0 + $0x7c0] sm:$0xf] %v2371_v5  ;;  %v1752_v4 = vld [vmem:[#allocation0 + $0x42] ss:$8 sm:$0xf0]   ;;  %v1383_v6 = vpop.permute.xlu0 %1382  }
  0xf2   :  { %1569 = vrot.lane.b32.xlu2 %v1568_v11, %s2746_s15  ;;  %1678 = vrot.lane.b32.xlu0 %v1677_v7, %s2747_s18  ;;  %647 = vst [vmem:[#allocation0 + $0x2f8] sm:$0xf] %v2524_v8  ;;  %v1060_v5 = vld [vmem:[#allocation0 + $0x100] ss:$8 sm:$0xf]   ;;  %v1394_v7 = vpop.permute.xlu1 %1393  }
  0xf3   :  { %651 = vst [vmem:[#allocation0 + $0x2f0] sm:$0xf] %v2525_v9  ;;  %v1805_v8 = vld [vmem:[#allocation0 + $0x542] ss:$8 sm:$0xf]  }
  0xf4   :  { %655 = vst [vmem:[#allocation0 + $0x2e8] sm:$0xf] %v2526_v12  ;;  %v1654_v20 = vld [vmem:[#allocation0 + $0x7c3] ss:$8 sm:$0xf0]   ;;  %v1405_v12 = vpop.permute.xlu2 %1404  }
  0xf5   :  { %659 = vst [vmem:[#allocation0 + $0x2e0] sm:$0xf] %v2527_v13  ;;  %v1807_v9 = vld [vmem:[#allocation0 + $0x542] ss:$8 sm:$0xf0]  }
  0xf6   :  { %663 = vst [vmem:[#allocation0 + $0x2d8] sm:$0xf] %v2528_v14  ;;  %v1062_v10 = vld [vmem:[#allocation0 + $0x100] ss:$8 sm:$0xf0]  }
  0xf7   :  { %667 = vst [vmem:[#allocation0 + $0x2d0] sm:$0xf] %v2529_v15  ;;  %v1132_v11 = vld [vmem:[#allocation0 + $0x300] ss:$8 sm:$0xf]   ;;  %v1064_v13 = vsel %vm1028_vm0, %v1062_v10, %v1060_v5 }
  0xf8   :  { %v1652_v24 = vld [vmem:[#allocation0 + $0x7c3] ss:$8 sm:$0xf]   ;;  %671 = vst [vmem:[#allocation0 + $0x2c8] sm:$0xf] %v2530_v18 }
  0xf9   :  { %v1656_v25 = vsel %vm1028_vm0, %v1654_v20, %v1652_v24  ;;  %675 = vst [vmem:[#allocation0 + $0x2c0] sm:$0xf] %v2531_v19  ;;  %v1134_v14 = vld [vmem:[#allocation0 + $0x300] ss:$8 sm:$0xf0]   ;;  %v1667_v19 = vsel %vm1028_vm0, %v1665_v2, %v1663_v1  ;;  %v1754_v20 = vsel %vm1028_vm0, %v1752_v4, %v1750_v3 }
  0xfa   :  { %1657 = vrot.lane.b32.xlu1 %v1656_v25, %s2746_s15  ;;  %1711 = vrot.lane.b32.xlu0 %v1710_v21, %s2747_s18  ;;  %263 = vst [vmem:[#allocation0 + $0x5f8] sm:$0xf] %v2428_v22  ;;  %v1204_v15 = vld [vmem:[#allocation0 + $0x500] ss:$8 sm:$0xf]   ;;  %v1136_v16 = vsel %vm1028_vm0, %v1134_v14, %v1132_v11  ;;  %v1809_v21 = vsel %vm1028_vm0, %v1807_v9, %v1805_v8 }
  0xfb   :  { %267 = vst [vmem:[#allocation0 + $0x5f0] sm:$0xf] %v2429_v23  ;;  %v1208_v18 = vsel %vm1028_vm0, %v1206_v17, %v1204_v15  ;;  %v1695_v22 = vld [vmem:[#allocation0 + $0x302] ss:$8 sm:$0xf]  }
  0xfc   :  { %271 = vst [vmem:[#allocation0 + $0x5e8] sm:$0xf] %v2430_v26  ;;  %v1599_v39 = vld [vmem:[#allocation0 + $0x2c3] ss:$8 sm:$0xf0]   ;;  %v1416_v26 = vpop.permute.xlu0 %1415  }
  0xfd   :  { %275 = vst [vmem:[#allocation0 + $0x5e0] sm:$0xf] %v2431_v27  ;;  %v1697_v23 = vld [vmem:[#allocation0 + $0x302] ss:$8 sm:$0xf0]   ;;  %v1427_v27 = vpop.permute.xlu1 %1426  }
  0xfe   :  { %279 = vst [vmem:[#allocation0 + $0x5d8] sm:$0xf] %v2432_v30  ;;  %v1783_v24 = vld [vmem:[#allocation0 + $0x342] ss:$8 sm:$0xf]  }
  0xff   :  { %283 = vst [vmem:[#allocation0 + $0x5d0] sm:$0xf] %v2433_v31  ;;  %v1785_v25 = vld [vmem:[#allocation0 + $0x342] ss:$8 sm:$0xf0]   ;;  %v1438_v31 = vpop.permute.xlu2 %1437  }
 0x100   :  { %v1597_v43 = vld [vmem:[#allocation0 + $0x2c3] ss:$8 sm:$0xf]   ;;  %287 = vst [vmem:[#allocation0 + $0x5c8] sm:$0xf] %v2434_v34  ;;  %v1787_v40 = vsel %vm1028_vm0, %v1785_v25, %v1783_v24 }
 0x101   :  { %v1601_v46 = vsel %vm1028_vm0, %v1599_v39, %v1597_v43  ;;  %291 = vst [vmem:[#allocation0 + $0x5c0] sm:$0xf] %v2435_v37  ;;  %v1840_v29 = vld [vmem:[#allocation0 + $0x82] ss:$8 sm:$0xf0]   ;;  %v1699_v39 = vsel %vm1028_vm0, %v1697_v23, %v1695_v22 }
 0x102   :  { %1602 = vrot.lane.b32.xlu2 %v1601_v46, %s2746_s15  ;;  %1689 = vrot.lane.b32.xlu1 %v1688_v41, %s2747_s18  ;;  %1031 = vst.msk [vmem:[%s4279_s1] sm:$0xff] %vm1030_vm1, %v1029_v45   ;;  %v1033_v30 = vld [vmem:[#allocation0 + $0x40] ss:$8 sm:$0xf]   ;;  %v1842_v42 = vsel %vm1028_vm0, %v1840_v29, %v1838_v28 }
 0x103   :  { %1744 = vrot.lane.b32.xlu0 %v1743_v44, %s2747_s18  ;;  %1320 = vst.msk [vmem:[%s4279_s1] sm:$0xff] %vm1319_vm2, %v1318_v32   ;;  %v1035_v32 = vld [vmem:[#allocation0 + $0x40] ss:$8 sm:$0xf0]  }
 0x104   :  { %2626 = vst.msk [vmem:[%s4279_s1 + $0x40] sm:$0xff] %vm1030_vm1, %v1100_v54   ;;  %v1632_v59 = vld [vmem:[#allocation0 + $0x5c3] ss:$8 sm:$0xf0]   ;;  %v1037_v34 = vsel %vm1028_vm0, %v1035_v32, %v1033_v30  ;;  %v1449_v47 = vpop.permute.xlu0 %1448  }
 0x105   :  { %2651 = vst.msk [vmem:[%s4279_s1 + $0x40] sm:$0xff] %vm1319_vm2, %v1339_v33   ;;  %v1240_v33 = vld [vmem:[#allocation0 + $0x600] ss:$8 sm:$0xf]   ;;  %v3691_v48 = vpop.permute.xlu1 %1459  }
 0x106   :  { %2634 = vst.msk [vmem:[%s4279_s1 + $0x80] sm:$0xff] %vm1030_vm1, %v1172_v60   ;;  %v1242_v35 = vld [vmem:[#allocation0 + $0x600] ss:$8 sm:$0xf0]  }
 0x107   :  { %2653 = vst.msk [vmem:[%s4279_s1 + $0x80] sm:$0xff] %vm1319_vm2, %v1361_v36   ;;  %v1276_v36 = vld [vmem:[#allocation0 + $0x700] ss:$8 sm:$0xf]   ;;  %v1244_v37 = vsel %vm1028_vm0, %v1242_v35, %v1240_v33  ;;  %v1471_v50 = vpop.permute.xlu2 %1470  }
 0x108   :  { %v1630_v62 = vld [vmem:[#allocation0 + $0x5c3] ss:$8 sm:$0xf]   ;;  %2622 = vst.msk [vmem:[%s4279_s1 + $0x20] sm:$0xff] %vm1030_vm1, %v1064_v13  }
 0x109   :  { %v1634_v0 = vsel %vm1028_vm0, %v1632_v59, %v1630_v62  ;;  %2650 = vst.msk [vmem:[%s4279_s1 + $0x20] sm:$0xff] %vm1319_vm2, %v1328_v51   ;;  %v1278_v38 = vld [vmem:[#allocation0 + $0x700] ss:$8 sm:$0xf0]  }
 0x10a   :  { %1635 = vrot.lane.b32.xlu2 %v1634_v0, %s2746_s15  ;;  %1722 = vrot.lane.b32.xlu1 %v1721_v61, %s2747_s18  ;;  %2630 = vst.msk [vmem:[%s4279_s1 + $0x60] sm:$0xff] %vm1030_vm1, %v1136_v16   ;;  %v1280_v41 = vsel %vm1028_vm0, %v1278_v38, %v1276_v36  ;;  %v1728_v43 = vld [vmem:[#allocation0 + $0x602] ss:$8 sm:$0xf]  }
 0x10b   :  { %1777 = vrot.lane.b32.xlu0 %v1776_v63, %s2747_s18  ;;  %2652 = vst.msk [vmem:[%s4279_s1 + $0x60] sm:$0xff] %vm1319_vm2, %v1350_v52   ;;  %v1730_v44 = vld [vmem:[#allocation0 + $0x602] ss:$8 sm:$0xf0]  }
 0x10c   :  { %2638 = vst.msk [vmem:[%s4279_s1 + $0xa0] sm:$0xff] %vm1030_vm1, %v1208_v18   ;;  %v1816_v45 = vld [vmem:[#allocation0 + $0x642] ss:$8 sm:$0xf]   ;;  %v1732_v58 = vsel %vm1028_vm0, %v1730_v44, %v1728_v43  ;;  %v3724_v4 = vpop.permute.xlu0 %1481  }
 0x10d   :  { %2654 = vst.msk [vmem:[%s4279_s1 + $0xa0] sm:$0xff] %vm1319_vm2, %v1372_v56   ;;  %v1818_v46 = vld [vmem:[#allocation0 + $0x642] ss:$8 sm:$0xf0]   ;;  %v3722_v3 = vpop.permute.xlu1 %1492  }
 0x10e   :  { %2619 = vst.msk [vmem:[%s4279_s1 + $0x8] sm:$0xff] %vm1030_vm1, %v1037_v34   ;;  %v1871_v49 = vld [vmem:[#allocation0 + $0x382] ss:$8 sm:$0xf]   ;;  %v1820_v59 = vsel %vm1028_vm0, %v1818_v46, %v1816_v45 }
 0x10f   :  { %2657 = vst.msk [vmem:[%s4279_s1 + $0x8] sm:$0xff] %vm1319_vm2, %v1405_v12   ;;  %v1873_v51 = vld [vmem:[#allocation0 + $0x382] ss:$8 sm:$0xf0]  }
 0x110   :  { %2642 = vst.msk [vmem:[%s4279_s1 + $0xc0] sm:$0xff] %vm1030_vm1, %v1244_v37   ;;  %v1141_v52 = vld [vmem:[#allocation0 + $0x340] ss:$8 sm:$0xf]   ;;  %v1875_v62 = vsel %vm1028_vm0, %v1873_v51, %v1871_v49 }
 0x111   :  { %2655 = vst.msk [vmem:[%s4279_s1 + $0xc0] sm:$0xff] %vm1319_vm2, %v1383_v6   ;;  %v1143_v53 = vld [vmem:[#allocation0 + $0x340] ss:$8 sm:$0xf0]  }
 0x112   :  { %1668 = vrot.lane.b32.xlu2 %v1667_v19, %s2747_s18  ;;  %1755 = vrot.lane.b32.xlu1 %v1754_v20, %s2747_s18  ;;  %2646 = vst.msk [vmem:[%s4279_s1 + $0xe0] sm:$0xff] %vm1030_vm1, %v1280_v41   ;;  %v1069_v54 = vld [vmem:[#allocation0 + $0x140] ss:$8 sm:$0xf]   ;;  %v1145_v55 = vsel %vm1028_vm0, %v1143_v53, %v1141_v52 }
 0x113   :  { %1810 = vrot.lane.b32.xlu0 %v1809_v21, %s2747_s18  ;;  %2656 = vst.msk [vmem:[%s4279_s1 + $0xe0] sm:$0xff] %vm1319_vm2, %v1394_v7   ;;  %v1071_v56 = vld [vmem:[#allocation0 + $0x140] ss:$8 sm:$0xf0]  }
 0x114   :  { %v1105_v57 = vld [vmem:[#allocation0 + $0x240] ss:$8 sm:$0xf]   ;;  %2631 = vst.msk [vmem:[%s4279_s1 + $0x68] sm:$0xff] %vm1030_vm1, %v1145_v55   ;;  %v1073_v60 = vsel %vm1028_vm0, %v1071_v56, %v1069_v54  ;;  %v1504_v6 = vpop.permute.xlu2 %1503   ;;  %v3757_v25 = vpop.permute.xlu0 %1514  }
 0x115   :  { %v1107_v61 = vld [vmem:[#allocation0 + $0x240] ss:$8 sm:$0xf0]   ;;  %2660 = vst.msk [vmem:[%s4279_s1 + $0x68] sm:$0xff] %vm1319_vm2, %v1438_v31   ;;  %v3755_v24 = vpop.permute.xlu1 %1525  }
 0x116   :  { %v1109_v63 = vsel %vm1028_vm0, %v1107_v61, %v1105_v57  ;;  %2623 = vst.msk [vmem:[%s4279_s1 + $0x28] sm:$0xff] %vm1030_vm1, %v1073_v60   ;;  %v1761_v0 = vld [vmem:[#allocation0 + $0x142] ss:$8 sm:$0xf]  }
 0x117   :  { %v1763_v1 = vld [vmem:[#allocation0 + $0x142] ss:$8 sm:$0xf0]   ;;  %2658 = vst.msk [vmem:[%s4279_s1 + $0x28] sm:$0xff] %vm1319_vm2, %v1416_v26  }
 0x118   :  { %v1849_v2 = vld [vmem:[#allocation0 + $0x182] ss:$8 sm:$0xf]   ;;  %2627 = vst.msk [vmem:[%s4279_s1 + $0x48] sm:$0xff] %vm1030_vm1, %v1109_v63   ;;  %v1765_v12 = vsel %vm1028_vm0, %v1763_v1, %v1761_v0 }
 0x119   :  { %v1851_v5 = vld [vmem:[#allocation0 + $0x182] ss:$8 sm:$0xf0]   ;;  %2659 = vst.msk [vmem:[%s4279_s1 + $0x48] sm:$0xff] %vm1319_vm2, %v1427_v27  }
 0x11a   :  { %1700 = vrot.lane.b32.xlu2 %v1699_v39, %s2747_s18  ;;  %1788 = vrot.lane.b32.xlu1 %v1787_v40, %s2747_s18  ;;  %v1904_v7 = vld [vmem:[#allocation0 + $0x682] ss:$8 sm:$0xf]   ;;  %v1177_v9 = vld [vmem:[#allocation0 + $0x440] ss:$8 sm:$0xf]   ;;  %v1853_v13 = vsel %vm1028_vm0, %v1851_v5, %v1849_v2 }
 0x11b   :  { %1843 = vrot.lane.b32.xlu0 %v1842_v42, %s2747_s18  ;;  %v1906_v8 = vld [vmem:[#allocation0 + $0x682] ss:$8 sm:$0xf0]   ;;  %v1179_v10 = vld [vmem:[#allocation0 + $0x440] ss:$8 sm:$0xf0]  }
 0x11c   :  { %v1249_v11 = vld [vmem:[#allocation0 + $0x640] ss:$8 sm:$0xf]   ;;  %v1181_v14 = vsel %vm1028_vm0, %v1179_v10, %v1177_v9  ;;  %v1908_v17 = vsel %vm1028_vm0, %v1906_v8, %v1904_v7  ;;  %v1794_v21 = vld [vmem:[#allocation0 + $0x442] ss:$8 sm:$0xf]  }
 0x11d   :  { %v1251_v15 = vld [vmem:[#allocation0 + $0x640] ss:$8 sm:$0xf0]   ;;  %2635 = vst.msk [vmem:[%s4279_s1 + $0x88] sm:$0xff] %vm1030_vm1, %v1181_v14   ;;  %v1559_v45 = vpop.permute.xlu1 %1558  }
 0x11e   :  { %v1213_v16 = vld [vmem:[#allocation0 + $0x540] ss:$8 sm:$0xf]   ;;  %v1253_v18 = vsel %vm1028_vm0, %v1251_v15, %v1249_v11  ;;  %2661 = vst.msk [vmem:[%s4279_s1 + $0x88] sm:$0xff] %vm1319_vm2, %v1449_v47  }
 0x11f   :  { %v1215_v19 = vld [vmem:[#allocation0 + $0x540] ss:$8 sm:$0xf0]   ;;  %v1796_v22 = vld [vmem:[#allocation0 + $0x442] ss:$8 sm:$0xf0]  }
 0x120   :  { %v1217_v20 = vsel %vm1028_vm0, %v1215_v19, %v1213_v16  ;;  %v1882_v23 = vld [vmem:[#allocation0 + $0x482] ss:$8 sm:$0xf]   ;;  %2643 = vst.msk [vmem:[%s4279_s1 + $0xc8] sm:$0xff] %vm1030_vm1, %v1253_v18   ;;  %v1798_v31 = vsel %vm1028_vm0, %v1796_v22, %v1794_v21 }
 0x121   :  { %v1884_v26 = vld [vmem:[#allocation0 + $0x482] ss:$8 sm:$0xf0]   ;;  %2663 = vst.msk [vmem:[%s4279_s1 + $0xc8] sm:$0xff] %vm1319_vm2, %v1471_v50  }
 0x122   :  { %1733 = vrot.lane.b32.xlu2 %v1732_v58, %s2747_s18  ;;  %1821 = vrot.lane.b32.xlu1 %v1820_v59, %s2747_s18  ;;  %2639 = vst.msk [vmem:[%s4279_s1 + $0xa8] sm:$0xff] %vm1030_vm1, %v1217_v20   ;;  %v1937_v27 = vld [vmem:[#allocation0 + $0x1c2] ss:$8 sm:$0xf]   ;;  %v1886_v32 = vsel %vm1028_vm0, %v1884_v26, %v1882_v23 }
 0x123   :  { %1876 = vrot.lane.b32.xlu0 %v1875_v62, %s2747_s18  ;;  %2662 = vst.msk [vmem:[%s4279_s1 + $0xa8] sm:$0xff] %vm1319_vm2, %v3691_v48   ;;  %v1939_v29 = vld [vmem:[#allocation0 + $0x1c2] ss:$8 sm:$0xf0]  }
 0x124   :  { %v1078_v30 = vld [vmem:[#allocation0 + $0x180] ss:$8 sm:$0xf]   ;;  %v1941_v35 = vsel %vm1028_vm0, %v1939_v29, %v1937_v27  ;;  %v1827_v41 = vld [vmem:[#allocation0 + $0x742] ss:$8 sm:$0xf]   ;;  %v1548_v46 = vpop.permute.xlu0 %1547  }
 0x125   :  { %v1080_v33 = vld [vmem:[#allocation0 + $0x180] ss:$8 sm:$0xf0]   ;;  %v1829_v42 = vld [vmem:[#allocation0 + $0x742] ss:$8 sm:$0xf0]  }
 0x126   :  { %v1042_v34 = vld [vmem:[#allocation0 + $0x80] ss:$8 sm:$0xf]   ;;  %v1082_v36 = vsel %vm1028_vm0, %v1080_v33, %v1078_v30  ;;  %v1915_v43 = vld [vmem:[#allocation0 + $0x782] ss:$8 sm:$0xf]   ;;  %v1831_v50 = vsel %vm1028_vm0, %v1829_v42, %v1827_v41 }
 0x127   :  { %v1044_v37 = vld [vmem:[#allocation0 + $0x80] ss:$8 sm:$0xf0]   ;;  %2624 = vst.msk [vmem:[%s4279_s1 + $0x30] sm:$0xff] %vm1030_vm1, %v1082_v36  }
 0x128   :  { %v1285_v38 = vld [vmem:[#allocation0 + $0x740] ss:$8 sm:$0xf]   ;;  %v1046_v39 = vsel %vm1028_vm0, %v1044_v37, %v1042_v34  ;;  %2666 = vst.msk [vmem:[%s4279_s1 + $0x30] sm:$0xff] %vm1319_vm2, %v1504_v6  }
 0x129   :  { %v1287_v40 = vld [vmem:[#allocation0 + $0x740] ss:$8 sm:$0xf0]   ;;  %v1917_v47 = vld [vmem:[#allocation0 + $0x782] ss:$8 sm:$0xf0]  }
 0x12a   :  { %1766 = vrot.lane.b32.xlu2 %v1765_v12, %s2747_s18  ;;  %1854 = vrot.lane.b32.xlu1 %v1853_v13, %s2747_s18  ;;  %v1289_v44 = vsel %vm1028_vm0, %v1287_v40, %v1285_v38  ;;  %2620 = vst.msk [vmem:[%s4279_s1 + $0x10] sm:$0xff] %vm1030_vm1, %v1046_v39   ;;  %v1970_v48 = vld [vmem:[#allocation0 + $0x4c2] ss:$8 sm:$0xf]   ;;  %v1919_v51 = vsel %vm1028_vm0, %v1917_v47, %v1915_v43 }
 0x12b   :  { %1909 = vrot.lane.b32.xlu0 %v1908_v17, %s2747_s18  ;;  %2665 = vst.msk [vmem:[%s4279_s1 + $0x10] sm:$0xff] %vm1319_vm2, %v3722_v3   ;;  %v1972_v49 = vld [vmem:[#allocation0 + $0x4c2] ss:$8 sm:$0xf0]  }
 0x12c   :  { %v1537_v28 = vpop.permute.xlu2 %1536   ;;  %2647 = vst.msk [vmem:[%s4279_s1 + $0xe8] sm:$0xff] %vm1030_vm1, %v1289_v44   ;;  %v1186_v52 = vld [vmem:[#allocation0 + $0x480] ss:$8 sm:$0xf]   ;;  %v1974_v53 = vsel %vm1028_vm0, %v1972_v49, %v1970_v48 }
 0x12d   :  { %2664 = vst.msk [vmem:[%s4279_s1 + $0xe8] sm:$0xff] %vm1319_vm2, %v3724_v4   ;;  %v1188_v54 = vld [vmem:[#allocation0 + $0x480] ss:$8 sm:$0xf0]  }
 0x12e   :  { %v1150_v55 = vld [vmem:[#allocation0 + $0x380] ss:$8 sm:$0xf]   ;;  %v1190_v56 = vsel %vm1028_vm0, %v1188_v54, %v1186_v52  ;;  %v1860_v59 = vld [vmem:[#allocation0 + $0x282] ss:$8 sm:$0xf]  }
 0x12f   :  { %v1152_v57 = vld [vmem:[#allocation0 + $0x380] ss:$8 sm:$0xf0]   ;;  %v1862_v60 = vld [vmem:[#allocation0 + $0x282] ss:$8 sm:$0xf0]  }
 0x130   :  { %v1114_v58 = vld [vmem:[#allocation0 + $0x280] ss:$8 sm:$0xf]   ;;  %2636 = vst.msk [vmem:[%s4279_s1 + $0x90] sm:$0xff] %vm1030_vm1, %v1190_v56   ;;  %v1154_v61 = vsel %vm1028_vm0, %v1152_v57, %v1150_v55  ;;  %v1864_v6 = vsel %vm1028_vm0, %v1862_v60, %v1860_v59 }
 0x131   :  { %v1116_v62 = vld [vmem:[#allocation0 + $0x280] ss:$8 sm:$0xf0]   ;;  %v1948_v0 = vld [vmem:[#allocation0 + $0x2c2] ss:$8 sm:$0xf]  }
 0x132   :  { %1799 = vrot.lane.b32.xlu2 %v1798_v31, %s2747_s18  ;;  %1887 = vrot.lane.b32.xlu1 %v1886_v32, %s2747_s18  ;;  %2669 = vst.msk [vmem:[%s4279_s1 + $0x90] sm:$0xff] %vm1319_vm2, %v1537_v28   ;;  %v1118_v1 = vsel %vm1028_vm0, %v1116_v62, %v1114_v58  ;;  %v1950_v2 = vld [vmem:[#allocation0 + $0x2c2] ss:$8 sm:$0xf0]  }
 0x133   :  { %1942 = vrot.lane.b32.xlu0 %v1941_v35, %s2747_s18  ;;  %2632 = vst.msk [vmem:[%s4279_s1 + $0x70] sm:$0xff] %vm1030_vm1, %v1154_v61   ;;  %v2003_v4 = vld [vmem:[#allocation0 + $0x7c2] ss:$8 sm:$0xf]   ;;  %v1952_v7 = vsel %vm1028_vm0, %v1950_v2, %v1948_v0 }
 0x134   :  { %v1592_v63 = vpop.permute.xlu1 %1591   ;;  %2668 = vst.msk [vmem:[%s4279_s1 + $0x70] sm:$0xff] %vm1319_vm2, %v3755_v24   ;;  %v2005_v5 = vld [vmem:[#allocation0 + $0x7c2] ss:$8 sm:$0xf0]  }
 0x135   :  { %2628 = vst.msk [vmem:[%s4279_s1 + $0x50] sm:$0xff] %vm1030_vm1, %v1118_v1   ;;  %v2007_v8 = vsel %vm1028_vm0, %v2005_v5, %v2003_v4  ;;  %v1258_v9 = vld [vmem:[#allocation0 + $0x680] ss:$8 sm:$0xf]  }
 0x136   :  { %2667 = vst.msk [vmem:[%s4279_s1 + $0x50] sm:$0xff] %vm1319_vm2, %v3757_v25   ;;  %v1260_v10 = vld [vmem:[#allocation0 + $0x680] ss:$8 sm:$0xf0]  }
 0x137   :  { %v1222_v11 = vld [vmem:[#allocation0 + $0x580] ss:$8 sm:$0xf]   ;;  %v1893_v12 = vld [vmem:[#allocation0 + $0x582] ss:$8 sm:$0xf]   ;;  %v1262_v15 = vsel %vm1028_vm0, %v1260_v10, %v1258_v9 }
 0x138   :  { %v1895_v13 = vld [vmem:[#allocation0 + $0x582] ss:$8 sm:$0xf0]   ;;  %v1224_v16 = vld [vmem:[#allocation0 + $0x580] ss:$8 sm:$0xf0]  }
 0x139   :  { %v1981_v14 = vld [vmem:[#allocation0 + $0x5c2] ss:$8 sm:$0xf]   ;;  %v1294_v17 = vld [vmem:[#allocation0 + $0x780] ss:$8 sm:$0xf]   ;;  %v1226_v18 = vsel %vm1028_vm0, %v1224_v16, %v1222_v11  ;;  %v1897_v23 = vsel %vm1028_vm0, %v1895_v13, %v1893_v12 }
 0x13a   :  { %1832 = vrot.lane.b32.xlu2 %v1831_v50, %s2747_s18  ;;  %1920 = vrot.lane.b32.xlu1 %v1919_v51, %s2747_s18  ;;  %2644 = vst.msk [vmem:[%s4279_s1 + $0xd0] sm:$0xff] %vm1030_vm1, %v1262_v15   ;;  %v1296_v19 = vld [vmem:[#allocation0 + $0x780] ss:$8 sm:$0xf0]  }
 0x13b   :  { %1975 = vrot.lane.b32.xlu0 %v1974_v53, %s2747_s18  ;;  %v1983_v20 = vld [vmem:[#allocation0 + $0x5c2] ss:$8 sm:$0xf0]   ;;  %2671 = vst.msk [vmem:[%s4279_s1 + $0xd0] sm:$0xff] %vm1319_vm2, %v1559_v45   ;;  %v1298_v21 = vsel %vm1028_vm0, %v1296_v19, %v1294_v17 }
 0x13c   :  { %v1581_v3 = vpop.permute.xlu0 %1580   ;;  %2640 = vst.msk [vmem:[%s4279_s1 + $0xb0] sm:$0xff] %vm1030_vm1, %v1226_v18   ;;  %v2035_v22 = vld [vmem:[#allocation0 + $0x201] ss:$8 sm:$0xf]   ;;  %v1985_v24 = vsel %vm1028_vm0, %v1983_v20, %v1981_v14 }
 0x13d   :  { %2670 = vst.msk [vmem:[%s4279_s1 + $0xb0] sm:$0xff] %vm1319_vm2, %v1548_v46   ;;  %v2037_v25 = vld [vmem:[#allocation0 + $0x201] ss:$8 sm:$0xf0]  }
 0x13e   :  { %2648 = vst.msk [vmem:[%s4279_s1 + $0xf0] sm:$0xff] %vm1030_vm1, %v1298_v21   ;;  %v2039_v26 = vsel %vm1028_vm0, %v2037_v25, %v2035_v22  ;;  %v1087_v27 = vld [vmem:[#allocation0 + $0x1c0] ss:$8 sm:$0xf]  }
 0x13f   :  { %v1089_v28 = vld [vmem:[#allocation0 + $0x1c0] ss:$8 sm:$0xf0]   ;;  %v1926_v29 = vld [vmem:[#allocation0 + $0xc2] ss:$8 sm:$0xf]  }
 0x140   :  { %v1928_v30 = vld [vmem:[#allocation0 + $0xc2] ss:$8 sm:$0xf0]   ;;  %v2014_v31 = vld [vmem:[#allocation0 + $0x1] ss:$8 sm:$0xf]   ;;  %v1091_v33 = vsel %vm1028_vm0, %v1089_v28, %v1087_v27 }
 0x141   :  { %v2016_v32 = vld [vmem:[#allocation0 + $0x1] ss:$8 sm:$0xf0]   ;;  %v1051_v34 = vld [vmem:[#allocation0 + $0xc0] ss:$8 sm:$0xf]   ;;  %v1930_v42 = vsel %vm1028_vm0, %v1928_v30, %v1926_v29 }
 0x142   :  { %1865 = vrot.lane.b32.xlu2 %v1864_v6, %s2747_s18  ;;  %1953 = vrot.lane.b32.xlu1 %v1952_v7, %s2747_s18  ;;  %v1053_v35 = vld [vmem:[#allocation0 + $0xc0] ss:$8 sm:$0xf0]   ;;  %2625 = vst.msk [vmem:[%s4279_s1 + $0x38] sm:$0xff] %vm1030_vm1, %v1091_v33   ;;  %v2018_v43 = vsel %vm1028_vm0, %v2016_v32, %v2014_v31 }
 0x143   :  { %2008 = vrot.lane.b32.xlu0 %v2007_v8, %s2747_s18  ;;  %v1055_v36 = vsel %vm1028_vm0, %v1053_v35, %v1051_v34  ;;  %v1123_v37 = vld [vmem:[#allocation0 + $0x2c0] ss:$8 sm:$0xf]   ;;  %2674 = vst.msk [vmem:[%s4279_s1 + $0x38] sm:$0xff] %vm1319_vm2, %v1592_v63  }
 0x144   :  { %v1125_v39 = vld [vmem:[#allocation0 + $0x2c0] ss:$8 sm:$0xf0]   ;;  %2621 = vst.msk [vmem:[%s4279_s1 + $0x18] sm:$0xff] %vm1030_vm1, %v1055_v36  }
 0x145   :  { %v1127_v41 = vsel %vm1028_vm0, %v1125_v39, %v1123_v37  ;;  %2673 = vst.msk [vmem:[%s4279_s1 + $0x18] sm:$0xff] %vm1319_vm2, %v1581_v3   ;;  %v2068_v44 = vld [vmem:[#allocation0 + $0x501] ss:$8 sm:$0xf]  }
 0x146   :  { %2629 = vst.msk [vmem:[%s4279_s1 + $0x58] sm:$0xff] %vm1030_vm1, %v1127_v41   ;;  %v2070_v45 = vld [vmem:[#allocation0 + $0x501] ss:$8 sm:$0xf0]  }
 0x147   :  { %v2072_v46 = vsel %vm1028_vm0, %v2070_v45, %v2068_v44  ;;  %v1959_v47 = vld [vmem:[#allocation0 + $0x3c2] ss:$8 sm:$0xf]   ;;  %v2046_v49 = vld [vmem:[#allocation0 + $0x301] ss:$8 sm:$0xf]  }
 0x148   :  { %v1961_v48 = vld [vmem:[#allocation0 + $0x3c2] ss:$8 sm:$0xf0]   ;;  %v2048_v50 = vld [vmem:[#allocation0 + $0x301] ss:$8 sm:$0xf0]  }
 0x149   :  { %v1195_v51 = vld [vmem:[#allocation0 + $0x4c0] ss:$8 sm:$0xf]   ;;  %v1963_v61 = vsel %vm1028_vm0, %v1961_v48, %v1959_v47  ;;  %v2050_v62 = vsel %vm1028_vm0, %v2048_v50, %v2046_v49  ;;  %v2101_v63 = vld [vmem:[#allocation0 + $0x41] ss:$8 sm:$0xf]  }
 0x14a   :  { %1898 = vrot.lane.b32.xlu2 %v1897_v23, %s2747_s18  ;;  %1986 = vrot.lane.b32.xlu1 %v1985_v24, %s2747_s18  ;;  %v1197_v52 = vld [vmem:[#allocation0 + $0x4c0] ss:$8 sm:$0xf0]   ;;  %v2103_v0 = vld [vmem:[#allocation0 + $0x41] ss:$8 sm:$0xf0]  }
 0x14b   :  { %2040 = vrot.lane.b32.xlu0 %v2039_v26, %s2748_s22  ;;  %v1199_v53 = vsel %vm1028_vm0, %v1197_v52, %v1195_v51  ;;  %v1159_v54 = vld [vmem:[#allocation0 + $0x3c0] ss:$8 sm:$0xf]   ;;  %v1992_v1 = vld [vmem:[#allocation0 + $0x6c2] ss:$8 sm:$0xf]   ;;  %v2105_v4 = vsel %vm1028_vm0, %v2103_v0, %v2101_v63 }
 0x14c   :  { %v1570_v38 = vpop.permute.xlu2 %1569   ;;  %v1625_v40 = vpop.permute.xlu1 %1624   ;;  %v1161_v55 = vld [vmem:[#allocation0 + $0x3c0] ss:$8 sm:$0xf0]   ;;  %2637 = vst.msk [vmem:[%s4279_s1 + $0x98] sm:$0xff] %vm1030_vm1, %v1199_v53  }
 0x14d   :  { %2672 = vst.msk [vmem:[%s4279_s1 + $0xf0] sm:$0xff] %vm1319_vm2, %v1570_v38   ;;  %v1163_v56 = vsel %vm1028_vm0, %v1161_v55, %v1159_v54  ;;  %v1231_v58 = vld [vmem:[#allocation0 + $0x5c0] ss:$8 sm:$0xf]  }
 0x14e   :  { %2677 = vst.msk [vmem:[%s4279_s1 + $0x98] sm:$0xff] %vm1319_vm2, %v1625_v40   ;;  %v1233_v59 = vld [vmem:[#allocation0 + $0x5c0] ss:$8 sm:$0xf0]  }
 0x14f   :  { %2633 = vst.msk [vmem:[%s4279_s1 + $0x78] sm:$0xff] %vm1030_vm1, %v1163_v56   ;;  %v1235_v60 = vsel %vm1028_vm0, %v1233_v59, %v1231_v58  ;;  %v1994_v2 = vld [vmem:[#allocation0 + $0x6c2] ss:$8 sm:$0xf0]  }
 0x150   :  { %2641 = vst.msk [vmem:[%s4279_s1 + $0xb8] sm:$0xff] %vm1030_vm1, %v1235_v60   ;;  %v2079_v3 = vld [vmem:[#allocation0 + $0x601] ss:$8 sm:$0xf]   ;;  %v1996_v15 = vsel %vm1028_vm0, %v1994_v2, %v1992_v1 }
 0x151   :  { %v1267_v5 = vld [vmem:[#allocation0 + $0x6c0] ss:$8 sm:$0xf]   ;;  %v2081_v9 = vld [vmem:[#allocation0 + $0x601] ss:$8 sm:$0xf0]  }
 0x152   :  { %1931 = vrot.lane.b32.xlu2 %v1930_v42, %s2747_s18  ;;  %2019 = vrot.lane.b32.xlu1 %v2018_v43, %s2748_s22  ;;  %v1269_v6 = vld [vmem:[#allocation0 + $0x6c0] ss:$8 sm:$0xf0]   ;;  %v2134_v14 = vld [vmem:[#allocation0 + $0x341] ss:$8 sm:$0xf]   ;;  %v2083_v16 = vsel %vm1028_vm0, %v2081_v9, %v2079_v3 }
 0x153   :  { %2073 = vrot.lane.b32.xlu0 %v2072_v46, %s2748_s22  ;;  %v1303_v7 = vld [vmem:[#allocation0 + $0x7c0] ss:$8 sm:$0xf]   ;;  %v1271_v10 = vsel %vm1028_vm0, %v1269_v6, %v1267_v5  ;;  %v2136_v17 = vld [vmem:[#allocation0 + $0x341] ss:$8 sm:$0xf0]  }
 0x154   :  { %v1614_v57 = vpop.permute.xlu0 %1613   ;;  %v1305_v12 = vld [vmem:[#allocation0 + $0x7c0] ss:$8 sm:$0xf0]   ;;  %2645 = vst.msk [vmem:[%s4279_s1 + $0xd8] sm:$0xff] %vm1030_vm1, %v1271_v10   ;;  %v2138_v18 = vsel %vm1028_vm0, %v2136_v17, %v2134_v14 }
 0x155   :  { %2676 = vst.msk [vmem:[%s4279_s1 + $0x78] sm:$0xff] %vm1319_vm2, %v1614_v57   ;;  %v1307_v13 = vsel %vm1028_vm0, %v1305_v12, %v1303_v7  ;;  %v2024_v19 = vld [vmem:[#allocation0 + $0x101] ss:$8 sm:$0xf]  }
 0x156   :  { %2649 = vst.msk [vmem:[%s4279_s1 + $0xf8] sm:$0xff] %vm1030_vm1, %v1307_v13   ;;  %v2026_v20 = vld [vmem:[#allocation0 + $0x101] ss:$8 sm:$0xf0]  }
 0x157   :  { %v2112_v21 = vld [vmem:[#allocation0 + $0x141] ss:$8 sm:$0xf]   ;;  %v2028_v27 = vsel %vm1028_vm0, %v2026_v20, %v2024_v19 }
 0x158   :  { %v2114_v23 = vld [vmem:[#allocation0 + $0x141] ss:$8 sm:$0xf0]  }
 0x159   :  { %v2167_v25 = vld [vmem:[#allocation0 + $0x641] ss:$8 sm:$0xf]   ;;  %v2116_v28 = vsel %vm1028_vm0, %v2114_v23, %v2112_v21 }
 0x15a   :  { %1964 = vrot.lane.b32.xlu2 %v1963_v61, %s2747_s18  ;;  %2051 = vrot.lane.b32.xlu1 %v2050_v62, %s2748_s22  ;;  %v2169_v26 = vld [vmem:[#allocation0 + $0x641] ss:$8 sm:$0xf0]  }
 0x15b   :  { %2106 = vrot.lane.b32.xlu0 %v2105_v4, %s2748_s22  ;;  %v2171_v29 = vsel %vm1028_vm0, %v2169_v26, %v2167_v25  ;;  %v2057_v30 = vld [vmem:[#allocation0 + $0x401] ss:$8 sm:$0xf]  }
 0x15c   :  { %v1603_v8 = vpop.permute.xlu2 %1602   ;;  %v1647_v11 = vpop.permute.xlu0 %1646   ;;  %v2059_v31 = vld [vmem:[#allocation0 + $0x401] ss:$8 sm:$0xf0]  }
 0x15d   :  { %2675 = vst.msk [vmem:[%s4279_s1 + $0x58] sm:$0xff] %vm1319_vm2, %v1603_v8   ;;  %v2145_v32 = vld [vmem:[#allocation0 + $0x441] ss:$8 sm:$0xf]   ;;  %v2061_v39 = vsel %vm1028_vm0, %v2059_v31, %v2057_v30 }
 0x15e   :  { %2679 = vst.msk [vmem:[%s4279_s1 + $0xd8] sm:$0xff] %vm1319_vm2, %v1647_v11   ;;  %v2147_v35 = vld [vmem:[#allocation0 + $0x441] ss:$8 sm:$0xf0]  }
 0x15f   :  { %v2200_v36 = vld [vmem:[#allocation0 + $0x181] ss:$8 sm:$0xf]   ;;  %v2149_v40 = vsel %vm1028_vm0, %v2147_v35, %v2145_v32 }
 0x160   :  { %v2202_v38 = vld [vmem:[#allocation0 + $0x181] ss:$8 sm:$0xf0]  }
 0x161   :  { %v2204_v41 = vsel %vm1028_vm0, %v2202_v38, %v2200_v36  ;;  %v2090_v42 = vld [vmem:[#allocation0 + $0x701] ss:$8 sm:$0xf]  }
 0x162   :  { %1997 = vrot.lane.b32.xlu2 %v1996_v15, %s2747_s18  ;;  %2084 = vrot.lane.b32.xlu1 %v2083_v16, %s2748_s22  ;;  %v2092_v43 = vld [vmem:[#allocation0 + $0x701] ss:$8 sm:$0xf0]  }
 0x163   :  { %2139 = vrot.lane.b32.xlu0 %v2138_v18, %s2748_s22  ;;  %v2178_v44 = vld [vmem:[#allocation0 + $0x741] ss:$8 sm:$0xf]   ;;  %v2094_v51 = vsel %vm1028_vm0, %v2092_v43, %v2090_v42 }
 0x164   :  { %v1636_v22 = vpop.permute.xlu2 %1635   ;;  %v1679_v24 = vpop.permute.xlu0 %1678   ;;  %v2180_v47 = vld [vmem:[#allocation0 + $0x741] ss:$8 sm:$0xf0]  }
 0x165   :  { %2678 = vst.msk [vmem:[%s4279_s1 + $0xb8] sm:$0xff] %vm1319_vm2, %v1636_v22   ;;  %v2233_v48 = vld [vmem:[#allocation0 + $0x481] ss:$8 sm:$0xf]   ;;  %v2182_v52 = vsel %vm1028_vm0, %v2180_v47, %v2178_v44 }
 0x166   :  { %2681 = vst.msk [vmem:[%s4279_s1 + $0x20] sm:$0xff] %vm1670_vm3, %v1679_v24   ;;  %v2235_v50 = vld [vmem:[#allocation0 + $0x481] ss:$8 sm:$0xf0]  }
 0x167   :  { %v2237_v53 = vsel %vm1028_vm0, %v2235_v50, %v2233_v48  ;;  %v2123_v54 = vld [vmem:[#allocation0 + $0x241] ss:$8 sm:$0xf]  }
 0x168   :  { %v2125_v55 = vld [vmem:[#allocation0 + $0x241] ss:$8 sm:$0xf0]  }
 0x169   :  { %v2211_v56 = vld [vmem:[#allocation0 + $0x281] ss:$8 sm:$0xf]   ;;  %v2127_v63 = vsel %vm1028_vm0, %v2125_v55, %v2123_v54 }
 0x16a   :  { %2029 = vrot.lane.b32.xlu2 %v2028_v27, %s2748_s22  ;;  %2117 = vrot.lane.b32.xlu1 %v2116_v28, %s2748_s22  ;;  %v2213_v59 = vld [vmem:[#allocation0 + $0x281] ss:$8 sm:$0xf0]  }
 0x16b   :  { %2172 = vrot.lane.b32.xlu0 %v2171_v29, %s2748_s22  ;;  %v2266_v60 = vld [vmem:[#allocation0 + $0x781] ss:$8 sm:$0xf]   ;;  %v2215_v0 = vsel %vm1028_vm0, %v2213_v59, %v2211_v56 }
 0x16c   :  { %v1669_v33 = vpop.permute.xlu2 %1668   ;;  %v1658_v34 = vpop.permute.xlu1 %1657   ;;  %v2268_v62 = vld [vmem:[#allocation0 + $0x781] ss:$8 sm:$0xf0]  }
 0x16d   :  { %1671 = vst.msk [vmem:[%s4279_s1] sm:$0xff] %vm1670_vm3, %v1669_v33   ;;  %v1712_v37 = vpop.permute.xlu0 %1711   ;;  %v2270_v1 = vsel %vm1028_vm0, %v2268_v62, %v2266_v60  ;;  %v2156_v2 = vld [vmem:[#allocation0 + $0x541] ss:$8 sm:$0xf]  }
 0x16e   :  { %2680 = vst.msk [vmem:[%s4279_s1 + $0xf8] sm:$0xff] %vm1319_vm2, %v1658_v34   ;;  %v2158_v3 = vld [vmem:[#allocation0 + $0x541] ss:$8 sm:$0xf0]  }
 0x16f   :  { %2684 = vst.msk [vmem:[%s4279_s1 + $0x80] sm:$0xff] %vm1670_vm3, %v1712_v37   ;;  %v2244_v4 = vld [vmem:[#allocation0 + $0x581] ss:$8 sm:$0xf]   ;;  %v2160_v11 = vsel %vm1028_vm0, %v2158_v3, %v2156_v2 }
 0x170   :  { %v2246_v7 = vld [vmem:[#allocation0 + $0x581] ss:$8 sm:$0xf0]  }
 0x171   :  { %v2299_v8 = vld [vmem:[#allocation0 + $0x2c1] ss:$8 sm:$0xf]   ;;  %v2248_v12 = vsel %vm1028_vm0, %v2246_v7, %v2244_v4 }
 0x172   :  { %2062 = vrot.lane.b32.xlu2 %v2061_v39, %s2748_s22  ;;  %2150 = vrot.lane.b32.xlu1 %v2149_v40, %s2748_s22  ;;  %v2301_v10 = vld [vmem:[#allocation0 + $0x2c1] ss:$8 sm:$0xf0]  }
 0x173   :  { %2205 = vrot.lane.b32.xlu0 %v2204_v41, %s2748_s22  ;;  %v2303_v13 = vsel %vm1028_vm0, %v2301_v10, %v2299_v8  ;;  %v2189_v14 = vld [vmem:[#allocation0 + $0x81] ss:$8 sm:$0xf]  }
 0x174   :  { %v1701_v45 = vpop.permute.xlu2 %1700   ;;  %v1690_v46 = vpop.permute.xlu1 %1689   ;;  %v2191_v15 = vld [vmem:[#allocation0 + $0x81] ss:$8 sm:$0xf0]  }
 0x175   :  { %2683 = vst.msk [vmem:[%s4279_s1 + $0x60] sm:$0xff] %vm1670_vm3, %v1701_v45   ;;  %v1745_v49 = vpop.permute.xlu0 %1744   ;;  %v2277_v16 = vld [vmem:[#allocation0 + $0xc1] ss:$8 sm:$0xf]   ;;  %v2193_v23 = vsel %vm1028_vm0, %v2191_v15, %v2189_v14 }
 0x176   :  { %2682 = vst.msk [vmem:[%s4279_s1 + $0x40] sm:$0xff] %vm1670_vm3, %v1690_v46   ;;  %v2279_v19 = vld [vmem:[#allocation0 + $0xc1] ss:$8 sm:$0xf0]  }
 0x177   :  { %2687 = vst.msk [vmem:[%s4279_s1 + $0xe0] sm:$0xff] %vm1670_vm3, %v1745_v49   ;;  %v2332_v20 = vld [vmem:[#allocation0 + $0x5c1] ss:$8 sm:$0xf]   ;;  %v2281_v24 = vsel %vm1028_vm0, %v2279_v19, %v2277_v16 }
 0x178   :  { %v2334_v22 = vld [vmem:[#allocation0 + $0x5c1] ss:$8 sm:$0xf0]  }
 0x179   :  { %v2336_v25 = vsel %vm1028_vm0, %v2334_v22, %v2332_v20  ;;  %v2222_v26 = vld [vmem:[#allocation0 + $0x381] ss:$8 sm:$0xf]  }
 0x17a   :  { %2095 = vrot.lane.b32.xlu2 %v2094_v51, %s2748_s22  ;;  %2183 = vrot.lane.b32.xlu1 %v2182_v52, %s2748_s22  ;;  %v2224_v27 = vld [vmem:[#allocation0 + $0x381] ss:$8 sm:$0xf0]  }
 0x17b   :  { %2238 = vrot.lane.b32.xlu0 %v2237_v53, %s2748_s22  ;;  %v2310_v30 = vld [vmem:[#allocation0 + $0x3c1] ss:$8 sm:$0xf]   ;;  %v2226_v33 = vsel %vm1028_vm0, %v2224_v27, %v2222_v26 }
 0x17c   :  { %v1734_v57 = vpop.permute.xlu2 %1733   ;;  %v1723_v58 = vpop.permute.xlu1 %1722   ;;  %v2312_v31 = vld [vmem:[#allocation0 + $0x3c1] ss:$8 sm:$0xf0]  }
 0x17d   :  { %2686 = vst.msk [vmem:[%s4279_s1 + $0xc0] sm:$0xff] %vm1670_vm3, %v1734_v57   ;;  %v1778_v61 = vpop.permute.xlu0 %1777   ;;  %v2314_v34 = vsel %vm1028_vm0, %v2312_v31, %v2310_v30  ;;  %v2255_v35 = vld [vmem:[#allocation0 + $0x681] ss:$8 sm:$0xf]  }
 0x17e   :  { %2685 = vst.msk [vmem:[%s4279_s1 + $0xa0] sm:$0xff] %vm1670_vm3, %v1723_v58   ;;  %v2257_v36 = vld [vmem:[#allocation0 + $0x681] ss:$8 sm:$0xf0]  }
 0x17f   :  { %2690 = vst.msk [vmem:[%s4279_s1 + $0x48] sm:$0xff] %vm1670_vm3, %v1778_v61   ;;  %v2343_v39 = vld [vmem:[#allocation0 + $0x6c1] ss:$8 sm:$0xf]   ;;  %v2259_v42 = vsel %vm1028_vm0, %v2257_v36, %v2255_v35 }
 0x180   :  { %v2345_v40 = vld [vmem:[#allocation0 + $0x6c1] ss:$8 sm:$0xf0]  }
 0x181   :  { %v2347_v43 = vsel %vm1028_vm0, %v2345_v40, %v2343_v39  ;;  %v2288_v46 = vld [vmem:[#allocation0 + $0x1c1] ss:$8 sm:$0xf]  }
 0x182   :  { %2128 = vrot.lane.b32.xlu2 %v2127_v63, %s2748_s22  ;;  %2216 = vrot.lane.b32.xlu1 %v2215_v0, %s2748_s22  ;;  %v2290_v47 = vld [vmem:[#allocation0 + $0x1c1] ss:$8 sm:$0xf0]  }
 0x183   :  { %2271 = vrot.lane.b32.xlu0 %v2270_v1, %s2748_s22  ;;  %v2292_v49 = vsel %vm1028_vm0, %v2290_v47, %v2288_v46  ;;  %v2321_v52 = vld [vmem:[#allocation0 + $0x4c1] ss:$8 sm:$0xf]  }
 0x184   :  { %v1767_v5 = vpop.permute.xlu2 %1766   ;;  %v1756_v6 = vpop.permute.xlu1 %1755   ;;  %v2323_v53 = vld [vmem:[#allocation0 + $0x4c1] ss:$8 sm:$0xf0]  }
 0x185   :  { %2689 = vst.msk [vmem:[%s4279_s1 + $0x28] sm:$0xff] %vm1670_vm3, %v1767_v5   ;;  %v1811_v9 = vpop.permute.xlu0 %1810   ;;  %v2325_v55 = vsel %vm1028_vm0, %v2323_v53, %v2321_v52  ;;  %v2354_v58 = vld [vmem:[#allocation0 + $0x7c1] ss:$8 sm:$0xf]  }
 0x186   :  { %2688 = vst.msk [vmem:[%s4279_s1 + $0x8] sm:$0xff] %vm1670_vm3, %v1756_v6   ;;  %v2356_v59 = vld [vmem:[#allocation0 + $0x7c1] ss:$8 sm:$0xf0]  }
 0x187   :  { %2693 = vst.msk [vmem:[%s4279_s1 + $0xa8] sm:$0xff] %vm1670_vm3, %v1811_v9   ;;  %v2358_v61 = vsel %vm1028_vm0, %v2356_v59, %v2354_v58 }
 0x18a   :  { %2161 = vrot.lane.b32.xlu2 %v2160_v11, %s2748_s22  ;;  %2249 = vrot.lane.b32.xlu1 %v2248_v12, %s2748_s22 }
 0x18b   :  { %2304 = vrot.lane.b32.xlu0 %v2303_v13, %s2748_s22 }
 0x18c   :  { %v1800_v17 = vpop.permute.xlu2 %1799   ;;  %v1789_v18 = vpop.permute.xlu1 %1788  }
 0x18d   :  { %2692 = vst.msk [vmem:[%s4279_s1 + $0x88] sm:$0xff] %vm1670_vm3, %v1800_v17   ;;  %v1844_v21 = vpop.permute.xlu0 %1843  }
 0x18e   :  { %2691 = vst.msk [vmem:[%s4279_s1 + $0x68] sm:$0xff] %vm1670_vm3, %v1789_v18  }
 0x18f   :  { %2696 = vst.msk [vmem:[%s4279_s1 + $0x10] sm:$0xff] %vm1670_vm3, %v1844_v21  }
 0x192   :  { %2194 = vrot.lane.b32.xlu2 %v2193_v23, %s2748_s22  ;;  %2282 = vrot.lane.b32.xlu1 %v2281_v24, %s2748_s22 }
 0x193   :  { %2337 = vrot.lane.b32.xlu0 %v2336_v25, %s2748_s22 }
 0x194   :  { %v1833_v28 = vpop.permute.xlu2 %1832   ;;  %v1822_v29 = vpop.permute.xlu1 %1821  }
 0x195   :  { %2695 = vst.msk [vmem:[%s4279_s1 + $0xe8] sm:$0xff] %vm1670_vm3, %v1833_v28   ;;  %v1877_v32 = vpop.permute.xlu0 %1876  }
 0x196   :  { %2694 = vst.msk [vmem:[%s4279_s1 + $0xc8] sm:$0xff] %vm1670_vm3, %v1822_v29  }
 0x197   :  { %2699 = vst.msk [vmem:[%s4279_s1 + $0x70] sm:$0xff] %vm1670_vm3, %v1877_v32  }
 0x19a   :  { %2227 = vrot.lane.b32.xlu2 %v2226_v33, %s2748_s22  ;;  %2315 = vrot.lane.b32.xlu1 %v2314_v34, %s2748_s22 }
 0x19c   :  { %v1866_v37 = vpop.permute.xlu2 %1865   ;;  %v1855_v38 = vpop.permute.xlu1 %1854  }
 0x19d   :  { %2698 = vst.msk [vmem:[%s4279_s1 + $0x50] sm:$0xff] %vm1670_vm3, %v1866_v37   ;;  %v1910_v41 = vpop.permute.xlu0 %1909  }
 0x19e   :  { %2697 = vst.msk [vmem:[%s4279_s1 + $0x30] sm:$0xff] %vm1670_vm3, %v1855_v38  }
 0x19f   :  { %2702 = vst.msk [vmem:[%s4279_s1 + $0xd0] sm:$0xff] %vm1670_vm3, %v1910_v41  }
 0x1a2   :  { %2260 = vrot.lane.b32.xlu2 %v2259_v42, %s2748_s22  ;;  %2348 = vrot.lane.b32.xlu1 %v2347_v43, %s2748_s22 }
 0x1a4   :  { %v1899_v44 = vpop.permute.xlu2 %1898   ;;  %v1888_v45 = vpop.permute.xlu1 %1887  }
 0x1a5   :  { %2701 = vst.msk [vmem:[%s4279_s1 + $0xb0] sm:$0xff] %vm1670_vm3, %v1899_v44   ;;  %v1943_v48 = vpop.permute.xlu0 %1942  }
 0x1a6   :  { %2700 = vst.msk [vmem:[%s4279_s1 + $0x90] sm:$0xff] %vm1670_vm3, %v1888_v45  }
 0x1a7   :  { %2705 = vst.msk [vmem:[%s4279_s1 + $0x38] sm:$0xff] %vm1670_vm3, %v1943_v48  }
 0x1aa   :  { %2293 = vrot.lane.b32.xlu2 %v2292_v49, %s2748_s22 }
 0x1ac   :  { %v1932_v50 = vpop.permute.xlu2 %1931   ;;  %v1921_v51 = vpop.permute.xlu1 %1920  }
 0x1ad   :  { %2704 = vst.msk [vmem:[%s4279_s1 + $0x18] sm:$0xff] %vm1670_vm3, %v1932_v50   ;;  %v1976_v54 = vpop.permute.xlu0 %1975  }
 0x1ae   :  { %2703 = vst.msk [vmem:[%s4279_s1 + $0xf0] sm:$0xff] %vm1670_vm3, %v1921_v51  }
 0x1af   :  { %2708 = vst.msk [vmem:[%s4279_s1 + $0x98] sm:$0xff] %vm1670_vm3, %v1976_v54  }
 0x1b2   :  { %2326 = vrot.lane.b32.xlu2 %v2325_v55, %s2748_s22 }
 0x1b4   :  { %v1965_v56 = vpop.permute.xlu2 %1964   ;;  %v1954_v57 = vpop.permute.xlu1 %1953  }
 0x1b5   :  { %2707 = vst.msk [vmem:[%s4279_s1 + $0x78] sm:$0xff] %vm1670_vm3, %v1965_v56   ;;  %v2009_v60 = vpop.permute.xlu0 %2008  }
 0x1b6   :  { %2706 = vst.msk [vmem:[%s4279_s1 + $0x58] sm:$0xff] %vm1670_vm3, %v1954_v57  }
 0x1b7   :  { %2711 = vst.msk [vmem:[%s4279_s1 + $0xf8] sm:$0xff] %vm1670_vm3, %v2009_v60  }
 0x1ba   :  { %2359 = vrot.lane.b32.xlu2 %v2358_v61, %s2748_s22 }
 0x1bc   :  { %v1998_v62 = vpop.permute.xlu2 %1997   ;;  %v1987_v63 = vpop.permute.xlu1 %1986  }
 0x1bd   :  { %2710 = vst.msk [vmem:[%s4279_s1 + $0xd8] sm:$0xff] %vm1670_vm3, %v1998_v62   ;;  %v2041_v0 = vpop.permute.xlu0 %2040  }
 0x1be   :  { %2709 = vst.msk [vmem:[%s4279_s1 + $0xb8] sm:$0xff] %vm1670_vm3, %v1987_v63  }
 0x1bf   :  { %2713 = vst.msk [vmem:[%s4279_s1 + $0x40] sm:$0xff] %vm2021_vm4, %v2041_v0  }
 0x1c4   :  { %v2030_v1 = vpop.permute.xlu2 %2029   ;;  %v2020_v2 = vpop.permute.xlu1 %2019  }
 0x1c5   :  { %2712 = vst.msk [vmem:[%s4279_s1 + $0x20] sm:$0xff] %vm2021_vm4, %v2030_v1   ;;  %v2074_v3 = vpop.permute.xlu0 %2073  }
 0x1c6   :  { %2022 = vst.msk [vmem:[%s4279_s1] sm:$0xff] %vm2021_vm4, %v2020_v2  }
 0x1c7   :  { %2716 = vst.msk [vmem:[%s4279_s1 + $0xa0] sm:$0xff] %vm2021_vm4, %v2074_v3  }
 0x1cc   :  { %v2063_v4 = vpop.permute.xlu2 %2062   ;;  %v2052_v5 = vpop.permute.xlu1 %2051  }
 0x1cd   :  { %2715 = vst.msk [vmem:[%s4279_s1 + $0x80] sm:$0xff] %vm2021_vm4, %v2063_v4   ;;  %v2107_v6 = vpop.permute.xlu0 %2106  }
 0x1ce   :  { %2714 = vst.msk [vmem:[%s4279_s1 + $0x60] sm:$0xff] %vm2021_vm4, %v2052_v5  }
 0x1cf   :  { %2719 = vst.msk [vmem:[%s4279_s1 + $0x8] sm:$0xff] %vm2021_vm4, %v2107_v6  }
 0x1d4   :  { %v2096_v7 = vpop.permute.xlu2 %2095   ;;  %v2085_v8 = vpop.permute.xlu1 %2084  }
 0x1d5   :  { %2718 = vst.msk [vmem:[%s4279_s1 + $0xe0] sm:$0xff] %vm2021_vm4, %v2096_v7   ;;  %v2140_v9 = vpop.permute.xlu0 %2139  }
 0x1d6   :  { %2717 = vst.msk [vmem:[%s4279_s1 + $0xc0] sm:$0xff] %vm2021_vm4, %v2085_v8  }
 0x1d7   :  { %2722 = vst.msk [vmem:[%s4279_s1 + $0x68] sm:$0xff] %vm2021_vm4, %v2140_v9  }
 0x1dc   :  { %v2129_v10 = vpop.permute.xlu2 %2128   ;;  %v2118_v11 = vpop.permute.xlu1 %2117  }
 0x1dd   :  { %2721 = vst.msk [vmem:[%s4279_s1 + $0x48] sm:$0xff] %vm2021_vm4, %v2129_v10   ;;  %v2173_v12 = vpop.permute.xlu0 %2172  }
 0x1de   :  { %2720 = vst.msk [vmem:[%s4279_s1 + $0x28] sm:$0xff] %vm2021_vm4, %v2118_v11  }
 0x1df   :  { %2725 = vst.msk [vmem:[%s4279_s1 + $0xc8] sm:$0xff] %vm2021_vm4, %v2173_v12  }
 0x1e4   :  { %v2162_v13 = vpop.permute.xlu2 %2161   ;;  %v2151_v14 = vpop.permute.xlu1 %2150  }
 0x1e5   :  { %2724 = vst.msk [vmem:[%s4279_s1 + $0xa8] sm:$0xff] %vm2021_vm4, %v2162_v13   ;;  %v2206_v15 = vpop.permute.xlu0 %2205  }
 0x1e6   :  { %2723 = vst.msk [vmem:[%s4279_s1 + $0x88] sm:$0xff] %vm2021_vm4, %v2151_v14  }
 0x1e7   :  { %2728 = vst.msk [vmem:[%s4279_s1 + $0x30] sm:$0xff] %vm2021_vm4, %v2206_v15  }
 0x1ec   :  { %v2195_v16 = vpop.permute.xlu2 %2194   ;;  %v2184_v17 = vpop.permute.xlu1 %2183  }
 0x1ed   :  { %2727 = vst.msk [vmem:[%s4279_s1 + $0x10] sm:$0xff] %vm2021_vm4, %v2195_v16   ;;  %v2239_v18 = vpop.permute.xlu0 %2238  }
 0x1ee   :  { %2726 = vst.msk [vmem:[%s4279_s1 + $0xe8] sm:$0xff] %vm2021_vm4, %v2184_v17  }
 0x1ef   :  { %2731 = vst.msk [vmem:[%s4279_s1 + $0x90] sm:$0xff] %vm2021_vm4, %v2239_v18  }
 0x1f4   :  { %v2228_v19 = vpop.permute.xlu2 %2227   ;;  %v2217_v20 = vpop.permute.xlu1 %2216  }
 0x1f5   :  { %2730 = vst.msk [vmem:[%s4279_s1 + $0x70] sm:$0xff] %vm2021_vm4, %v2228_v19   ;;  %v2272_v21 = vpop.permute.xlu0 %2271  }
 0x1f6   :  { %2729 = vst.msk [vmem:[%s4279_s1 + $0x50] sm:$0xff] %vm2021_vm4, %v2217_v20  }
 0x1f7   :  { %2734 = vst.msk [vmem:[%s4279_s1 + $0xf0] sm:$0xff] %vm2021_vm4, %v2272_v21  }
 0x1fc   :  { %v2261_v22 = vpop.permute.xlu2 %2260   ;;  %v2250_v23 = vpop.permute.xlu1 %2249  }
 0x1fd   :  { %2733 = vst.msk [vmem:[%s4279_s1 + $0xd0] sm:$0xff] %vm2021_vm4, %v2261_v22   ;;  %v2305_v24 = vpop.permute.xlu0 %2304  }
 0x1fe   :  { %2732 = vst.msk [vmem:[%s4279_s1 + $0xb0] sm:$0xff] %vm2021_vm4, %v2250_v23  }
 0x1ff   :  { %2737 = vst.msk [vmem:[%s4279_s1 + $0x58] sm:$0xff] %vm2021_vm4, %v2305_v24  }
 0x204   :  { %v2294_v25 = vpop.permute.xlu2 %2293   ;;  %v2283_v26 = vpop.permute.xlu1 %2282  }
 0x205   :  { %2736 = vst.msk [vmem:[%s4279_s1 + $0x38] sm:$0xff] %vm2021_vm4, %v2294_v25   ;;  %v2338_v27 = vpop.permute.xlu0 %2337  }
 0x206   :  { %2735 = vst.msk [vmem:[%s4279_s1 + $0x18] sm:$0xff] %vm2021_vm4, %v2283_v26  }
 0x207   :  { %2740 = vst.msk [vmem:[%s4279_s1 + $0xb8] sm:$0xff] %vm2021_vm4, %v2338_v27  }
 0x20c   :  { %v2327_v28 = vpop.permute.xlu2 %2326   ;;  %v2316_v29 = vpop.permute.xlu1 %2315  }
 0x20d   :  { %2739 = vst.msk [vmem:[%s4279_s1 + $0x98] sm:$0xff] %vm2021_vm4, %v2327_v28  }
 0x20e   :  { %2738 = vst.msk [vmem:[%s4279_s1 + $0x78] sm:$0xff] %vm2021_vm4, %v2316_v29  }
 0x214   :  { %v2360_v30 = vpop.permute.xlu2 %2359   ;;  %v2349_v31 = vpop.permute.xlu1 %2348  }
 0x215   :  { %2742 = vst.msk [vmem:[%s4279_s1 + $0xf8] sm:$0xff] %vm2021_vm4, %v2360_v30  }
 0x216   :  { %2741 = vst.msk [vmem:[%s4279_s1 + $0xd8] sm:$0xff] %vm2021_vm4, %v2349_v31  }

// kernel: swin_block_forward.3
= control target key start
LH: loop header
LB: loop body
LE: loop exit
PB: predicated region body
PF: predicated region fallthrough
CT: control target
= control target key end

     0   :  { %s1072_s27 = smov 0   ;;  %s1400_s0 = inlined_call_operand.vmem [shape: f32[128,32], index: 0, kind: input, shape index: {}]   ;;  %s1401_s1 = inlined_call_operand.vmem [shape: f32[128,32], index: 1, kind: input, shape index: {}]   ;;  %s1402_s2 = inlined_call_operand.vmem [shape: f32[1,32], index: 2, kind: input, shape index: {}]   ;;  %s1403_s3 = inlined_call_operand.vmem [shape: f32[1,32], index: 3, kind: input, shape index: {}]   ;;  %s1404_s4 = inlined_call_operand.vmem [shape: bf16[32,128], index: 4, kind: input, shape index: {}]   ;;  %s1405_s5 = inlined_call_operand.vmem [shape: f32[1,128], index: 5, kind: input, shape index: {}]   ;;  %s1406_s6 = inlined_call_operand.vmem [shape: bf16[128,32], index: 6, kind: input, shape index: {}]   ;;  %s1407_s7 = inlined_call_operand.vmem [shape: f32[1,32], index: 7, kind: input, shape index: {}]   ;;  %s1408_s8 = inlined_call_operand.vmem [shape: f32[128,32], index: 8, kind: output, shape index: {}]  }
   0x1 LB: > { %s886_s28 = sadd.s32 4294967295, %s1024_s27   ;;  %p890_p0 = scmp.ge.s32.totalorder %s1024_s27, 1  ;;  %s1024_s27 = sphi %s1072_s27, %s18_s27  }
   0x2   : > { %p274_p1 = scmp.lt.s32.totalorder %s1024_s27, 3 }
   0x4   : > { %p275_p2 = pnand %p890_p0, %p274_p1 }
   0x5   : > { %s891_s29 = sshll.u32 (!%p275_p2), %s886_s28, 3 }
   0x6   : > { %278 = sbr.rel (%p275_p2) target bundleno = 643 (0x283), region = 52  ;;  %p314_p3 = scmp.lt.s32.totalorder (!%p275_p2), %s891_s29, 15 }
   0xb   : > { %s1416_s29 = smov (!%p314_p3, %s891_s29), 15  ;;  %vm356_vm0 = vcmask 261120   ;;  %v1026_v32 = vmov 32.0  }
   0xc   : > { %s1080_s30 = sshll.u32 %s1416_s29, 3  ;;  %984 = vrcp.f32 %v1026_v32 }
   0xd   : > { %s1086_s11 = scalar_lea.vmem %s1400_s0, %s1080_s30  ;;  %s1092_s14 = scalar_lea.vmem %s1401_s1, %s1080_s30 }
   0xe   : > { %v338_v0 = vld [vmem:[%s1086_s11 + $0x30] sm:$0xff]  ;;  %v336_v2 = vld [vmem:[%s1086_s11 + $0x20] sm:$0xff]  ;;  %v339_v9 = vld [vmem:[%s1086_s11 + $0x38] sm:$0xff]  ;;  %s329_s25 = scalar_lea.vmem %s1408_s8, %s1080_s30 }
   0xf   : > { %v346_v1 = vld [vmem:[%s1092_s14 + $0x30] sm:$0xff]  ;;  %v344_v4 = vld [vmem:[%s1092_s14 + $0x20] sm:$0xff]  ;;  %v347_v10 = vld [vmem:[%s1092_s14 + $0x38] sm:$0xff] }
  0x10   : > { %v1097_v3 = vadd.f32 %v346_v1, %v338_v0  ;;  %v334_v5 = vld [vmem:[%s1086_s11 + $0x10] sm:$0xff]  ;;  %v1102_v7 = vadd.f32 %v344_v4, %v336_v2  ;;  %v337_v11 = vld [vmem:[%s1086_s11 + $0x28] sm:$0xff]  ;;  %v335_v14 = vld [vmem:[%s1086_s11 + $0x18] sm:$0xff]  ;;  %v1118_v18 = vadd.f32 %v347_v10, %v339_v9 }
  0x11   : > { %v342_v6 = vld [vmem:[%s1092_s14 + $0x10] sm:$0xff]  ;;  %v345_v13 = vld [vmem:[%s1092_s14 + $0x28] sm:$0xff]  ;;  %v343_v15 = vld [vmem:[%s1092_s14 + $0x18] sm:$0xff] }
  0x12   : > { %v1104_v8 = vadd.f32 %v342_v6, %v334_v5  ;;  %v375_v12 = vsel %vm356_vm0, %v1097_v3, 0.0  ;;  %v369_v16 = vsel %vm356_vm0, %v1102_v7, 0.0  ;;  %v1120_v19 = vadd.f32 %v345_v13, %v337_v11  ;;  %v332_v24 = vld [vmem:[%s1086_s11] sm:$0xff]  ;;  %v333_v26 = vld [vmem:[%s1086_s11 + $0x8] sm:$0xff]  ;;  %v985_v33 = vpop.eup %984 }
  0x13   : > { %376 = vadd.xlane.f32.xlu2 %v375_v12  ;;  %370 = vadd.xlane.f32.xlu1 %v369_v16  ;;  %v1122_v20 = vadd.f32 %v343_v15, %v335_v14  ;;  %v378_v21 = vsel %vm356_vm0, %v1118_v18, 0.0  ;;  %v340_v25 = vld [vmem:[%s1092_s14] sm:$0xff]  ;;  %v341_v27 = vld [vmem:[%s1092_s14 + $0x8] sm:$0xff]  ;;  %v382_v34 = vmul.f32 32.0, %v985_v33  ;;  %vm386_vm1 = vweird.f32 %v985_v33 }
  0x14   : > { %v363_v17 = vsel %vm356_vm0, %v1104_v8, 0.0  ;;  %v372_v22 = vsel %vm356_vm0, %v1120_v19, 0.0  ;;  %v1134_v28 = vadd.f32 %v340_v25, %v332_v24  ;;  %v1136_v29 = vadd.f32 %v341_v27, %v333_v26  ;;  %v944_v24 = vld [vmem:[%s1404_s4 + $0x8] sm:$0xff]  ;;  %v943_v27 = vld [vmem:[%s1404_s4] sm:$0xff] }
  0x15   : > { %364 = vadd.xlane.f32.xlu0 %v363_v17  ;;  %v366_v23 = vsel %vm356_vm0, %v1122_v20, 0.0  ;;  %v383_v35 = vsub.f32 1.0, %v382_v34  ;;  %953 = vmatpush.bf16.msra.mxu3 %v944_v24 }
  0x16   : > { %v357_v30 = vsel %vm356_vm0, %v1134_v28, 0.0  ;;  %v360_v31 = vsel %vm356_vm0, %v1136_v29, 0.0  ;;  %606 = vmatpush.bf16.msra.mxu0 %v944_v24 }
  0x17   : > { %v384_v36 = vmul.f32 %v985_v33, %v383_v35 }
  0x19   : > { %v385_v37 = vadd.f32 %v985_v33, %v384_v36  ;;  %954 = vmatpush.bf16.msra.mxu3 %v943_v27 }
  0x1a   : > { %607 = vmatpush.bf16.msra.mxu0 %v943_v27 }
  0x1b   : > { %379 = vadd.xlane.f32.xlu2 %v378_v21  ;;  %373 = vadd.xlane.f32.xlu1 %v372_v22  ;;  %v1142_v38 = vsel %vm386_vm1, %v985_v33, %v385_v37 }
  0x1d   : > { %367 = vadd.xlane.f32.xlu0 %v366_v23 }
  0x23   : > { %361 = vadd.xlane.f32.xlu1 %v360_v31 }
  0x25   : > { %358 = vadd.xlane.f32.xlu0 %v357_v30 }
  0x86   : > { %v377_v39 = vpop.xlane.xlu2 %376  ;;  %v371_v40 = vpop.xlane.xlu1 %370 }
  0x87   : > { %v392_v42 = vmul.f32 %v1142_v38, %v371_v40  ;;  %v394_v56 = vmul.f32 %v1142_v38, %v377_v39 }
  0x88   : > { %v365_v41 = vpop.xlane.xlu0 %364 }
  0x89   : > { %v390_v43 = vmul.f32 %v1142_v38, %v365_v41  ;;  %v1147_v44 = vsub.f32 %v1102_v7, %v392_v42  ;;  %v1178_v63 = vsub.f32 %v1097_v3, %v394_v56 }
  0x8b   : > { %v1150_v45 = vsub.f32 %v1104_v8, %v390_v43  ;;  %v408_v47 = vmul.f32 %v1147_v44, %v1147_v44  ;;  %v410_v10 = vmul.f32 %v1178_v63, %v1178_v63 }
  0x8d   : > { %v406_v46 = vmul.f32 %v1150_v45, %v1150_v45  ;;  %v424_v50 = vsel %vm356_vm0, %v408_v47, 0.0  ;;  %v430_v14 = vsel %vm356_vm0, %v410_v10, 0.0 }
  0x8e   : > { %v380_v48 = vpop.xlane.xlu2 %379  ;;  %v374_v52 = vpop.xlane.xlu1 %373  ;;  %425 = vadd.xlane.f32.xlu1 %v424_v50 }
  0x8f   : > { %v418_v49 = vsel %vm356_vm0, %v406_v46, 0.0  ;;  %v395_v51 = vmul.f32 %v1142_v38, %v380_v48  ;;  %v393_v54 = vmul.f32 %v1142_v38, %v374_v52 }
  0x90   : > { %419 = vadd.xlane.f32.xlu2 %v418_v49  ;;  %v368_v53 = vpop.xlane.xlu0 %367 }
  0x91   : > { %v391_v55 = vmul.f32 %v1142_v38, %v368_v53  ;;  %v1163_v57 = vsub.f32 %v1118_v18, %v395_v51  ;;  %v1166_v58 = vsub.f32 %v1120_v19, %v393_v54 }
  0x93   : > { %v1169_v59 = vsub.f32 %v1122_v20, %v391_v55  ;;  %v411_v60 = vmul.f32 %v1163_v57, %v1163_v57  ;;  %v409_v61 = vmul.f32 %v1166_v58, %v1166_v58 }
  0x95   : > { %v407_v62 = vmul.f32 %v1169_v59, %v1169_v59  ;;  %v433_v0 = vsel %vm356_vm0, %v411_v60, 0.0  ;;  %v427_v1 = vsel %vm356_vm0, %v409_v61, 0.0 }
  0x96   : > { %434 = vadd.xlane.f32.xlu1 %v433_v0  ;;  %v362_v5 = vpop.xlane.xlu1 %361 }
  0x97   : > { %v421_v2 = vsel %vm356_vm0, %v407_v62, 0.0  ;;  %v389_v9 = vmul.f32 %v1142_v38, %v362_v5 }
  0x98   : > { %428 = vadd.xlane.f32.xlu2 %v427_v1  ;;  %v359_v4 = vpop.xlane.xlu0 %358  ;;  %422 = vadd.xlane.f32.xlu0 %v421_v2 }
  0x99   : > { %v388_v6 = vmul.f32 %v1142_v38, %v359_v4  ;;  %v1193_v13 = vsub.f32 %v1136_v29, %v389_v9 }
  0x9b   : > { %v1188_v11 = vsub.f32 %v1134_v28, %v388_v6  ;;  %v405_v16 = vmul.f32 %v1193_v13, %v1193_v13 }
  0x9d   : > { %v404_v12 = vmul.f32 %v1188_v11, %v1188_v11  ;;  %v415_v17 = vsel %vm356_vm0, %v405_v16, 0.0 }
  0x9f   : > { %v412_v15 = vsel %vm356_vm0, %v404_v12, 0.0 }
  0xa0   : > { %413 = vadd.xlane.f32.xlu2 %v412_v15  ;;  %431 = vadd.xlane.f32.xlu0 %v430_v14 }
  0xa8   : > { %416 = vadd.xlane.f32.xlu0 %v415_v17 }
 0x101   : > { %v426_v23 = vpop.xlane.xlu1 %425 }
 0x102   : > { %v440_v26 = vmul.f32 %v426_v23, %v1142_v38 }
 0x103   : > { %v420_v21 = vpop.xlane.xlu2 %419 }
 0x104   : > { %v438_v22 = vmul.f32 %v420_v21, %v1142_v38  ;;  %v1208_v30 = vadd.f32 1e-05, %v440_v26 }
 0x106   : > { %v446_v25 = vadd.f32 1e-05, %v438_v22  ;;  %vm498_vm10 = vweird.f32 %v1208_v30 }
 0x108   : > { %986 = vrsqrt.f32 %v446_v25  ;;  %vm478_vm3 = vweird.f32 %v446_v25 }
 0x109   : > { %988 = vrsqrt.f32 %v1208_v30  ;;  %v435_v48 = vpop.xlane.xlu1 %434 }
 0x10a   : > { %v443_v55 = vmul.f32 %v435_v48, %v1142_v38 }
 0x10b   : > { %v429_v31 = vpop.xlane.xlu2 %428  ;;  %v423_v33 = vpop.xlane.xlu0 %422 }
 0x10c   : > { %v441_v32 = vmul.f32 %v429_v31, %v1142_v38  ;;  %v439_v34 = vmul.f32 %v423_v33, %v1142_v38  ;;  %v1233_v2 = vadd.f32 1e-05, %v443_v55 }
 0x10e   : > { %v987_v35 = vpop.eup %986  ;;  %v1212_v36 = vadd.f32 1e-05, %v441_v32  ;;  %v447_v39 = vadd.f32 1e-05, %v439_v34  ;;  %v1253_v34 = vld [vmem:[%s1403_s3] ss:$0 sm:$0xff] }
 0x10f   : > { %v473_v37 = vmul.f32 %v987_v35, %v446_v25  ;;  %v1217_v47 = vpop.eup %988  ;;  %vm479_vm2 = vweird.f32 %v987_v35 }
 0x110   : > { %990 = vrsqrt.f32 %v1212_v36  ;;  %v493_v56 = vmul.f32 %v1217_v47, %v1208_v30  ;;  %vm480_vm4 = vmor %vm478_vm3, %vm479_vm2  ;;  %vm488_vm6 = vweird.f32 %v447_v39  ;;  %vm508_vm8 = vweird.f32 %v1212_v36 }
 0x111   : > { %v474_v40 = vmul.f32 %v987_v35, %v473_v37  ;;  %992 = vrsqrt.f32 %v447_v39  ;;  %vm499_vm11 = vweird.f32 %v1217_v47 }
 0x112   : > { %v494_v5 = vmul.f32 %v1217_v47, %v493_v56  ;;  %vm1275_vm15 = vmor %vm498_vm10, %vm499_vm11 }
 0x113   : > { %v475_v41 = vmul.f32 0.5, %v474_v40  ;;  %v414_v42 = vpop.xlane.xlu2 %413  ;;  %v432_v46 = vpop.xlane.xlu0 %431 }
 0x114   : > { %v436_v43 = vmul.f32 %v414_v42, %v1142_v38  ;;  %v442_v52 = vmul.f32 %v432_v46, %v1142_v38  ;;  %v495_v22 = vmul.f32 0.5, %v494_v5 }
 0x115   : > { %v476_v50 = vsub.f32 1.5, %v475_v41 }
 0x116   : > { %v1219_v49 = vpop.eup %990  ;;  %v1221_v51 = vadd.f32 1e-05, %v436_v43  ;;  %v1230_v0 = vadd.f32 1e-05, %v442_v52  ;;  %v496_v33 = vsub.f32 1.5, %v495_v22 }
 0x117   : > { %v993_v53 = vpop.eup %992  ;;  %v503_v54 = vmul.f32 %v1219_v49, %v1212_v36  ;;  %v477_v61 = vmul.f32 %v987_v35, %v476_v50  ;;  %vm509_vm9 = vweird.f32 %v1219_v49 }
 0x118   : > { %994 = vrsqrt.f32 %v1221_v51  ;;  %v483_v60 = vmul.f32 %v993_v53, %v447_v39  ;;  %vm489_vm5 = vweird.f32 %v993_v53  ;;  %vm458_vm12 = vweird.f32 %v1221_v51  ;;  %vm1268_vm14 = vmor %vm508_vm8, %vm509_vm9 }
 0x119   : > { %v504_v1 = vmul.f32 %v1219_v49, %v503_v54  ;;  %v481_v12 = vsel %vm480_vm4, %v987_v35, %v477_v61  ;;  %996 = vrsqrt.f32 %v1230_v0  ;;  %vm490_vm7 = vmor %vm488_vm6, %vm489_vm5  ;;  %v497_v42 = vmul.f32 %v1217_v47, %v496_v33 }
 0x11a   : > { %v484_v62 = vmul.f32 %v993_v53, %v483_v60  ;;  %998 = vrsqrt.f32 %v1233_v2  ;;  %v534_v21 = vmul.f32 %v481_v12, %v1150_v45  ;;  %vm518_vm5 = vweird.f32 %v1230_v0 }
 0x11b   : > { %v417_v4 = vpop.xlane.xlu0 %416  ;;  %v505_v16 = vmul.f32 0.5, %v504_v1  ;;  %v501_v60 = vsel %vm1275_vm15, %v1217_v47, %v497_v42  ;;  %v945_v42 = vld [vmem:[%s1406_s6] sm:$0xff] }
 0x11c   : > { %v485_v6 = vmul.f32 0.5, %v484_v62  ;;  %v437_v9 = vmul.f32 %v417_v4, %v1142_v38  ;;  %v1244_v38 = vld [vmem:[%s1402_s2] ss:$0 sm:$0xff] }
 0x11d   : > { %v506_v27 = vsub.f32 1.5, %v505_v16  ;;  %v546_v45 = vmul.f32 %v1244_v38, %v534_v21 }
 0x11e   : > { %v995_v10 = vpop.eup %994  ;;  %v486_v14 = vsub.f32 1.5, %v485_v6  ;;  %v445_v17 = vadd.f32 1e-05, %v437_v9  ;;  %v536_v6 = vmul.f32 %v501_v60, %v1147_v44 }
 0x11f   : > { %v453_v15 = vmul.f32 %v995_v10, %v1221_v51  ;;  %v1247_v32 = vpop.eup %996  ;;  %vm459_vm13 = vweird.f32 %v995_v10  ;;  %v558_v46 = vadd.f32 %v1253_v34, %v546_v45 }
 0x120   : > { %v487_v23 = vmul.f32 %v993_v53, %v486_v14  ;;  %1000 = vrsqrt.f32 %v445_v17  ;;  %v1255_v35 = vpop.eup %998  ;;  %v513_v40 = vmul.f32 %v1247_v32, %v1230_v0  ;;  %vm1279_vm1 = vmor %vm458_vm12, %vm459_vm13  ;;  %vm468_vm2 = vweird.f32 %v445_v17 }
 0x121   : > { %v454_v24 = vmul.f32 %v995_v10, %v453_v15  ;;  %v523_v30 = vmul.f32 %v1255_v35, %v1233_v2  ;;  %v548_v21 = vmul.f32 %v1244_v38, %v536_v6  ;;  %vm519_vm6 = vweird.f32 %v1247_v32 }
 0x122   : > { %v491_v25 = vsel %vm490_vm7, %v993_v53, %v487_v23  ;;  %v514_v55 = vmul.f32 %v1247_v32, %v513_v40  ;;  %vm528_vm7 = vweird.f32 %v1233_v2  ;;  %vm529_vm8 = vweird.f32 %v1255_v35  ;;  %vm520_vm9 = vmor %vm518_vm5, %vm519_vm6 }
 0x123   : > { %v455_v26 = vmul.f32 0.5, %v454_v24  ;;  %v535_v31 = vmul.f32 %v491_v25, %v1169_v59  ;;  %v507_v59 = vmul.f32 %v1219_v49, %v506_v27  ;;  %v524_v61 = vmul.f32 %v1255_v35, %v523_v30  ;;  %vm530_vm10 = vmor %vm528_vm7, %vm529_vm8 }
 0x124   : > { %v560_v24 = vadd.f32 %v1253_v34, %v548_v21 }
 0x125   : > { %v456_v37 = vsub.f32 1.5, %v455_v26  ;;  %v547_v39 = vmul.f32 %v1244_v38, %v535_v31  ;;  %v511_v54 = vsel %vm1268_vm14, %v1219_v49, %v507_v59  ;;  %v515_v49 = vmul.f32 0.5, %v514_v55 }
 0x126   : > { %v1001_v36 = vpop.eup %1000  ;;  %v537_v4 = vmul.f32 %v511_v54, %v1166_v58  ;;  %v525_v47 = vmul.f32 0.5, %v524_v61 }
 0x127   : > { %v559_v41 = vadd.f32 %v1253_v34, %v547_v39  ;;  %v457_v50 = vmul.f32 %v995_v10, %v456_v37  ;;  %v463_v51 = vmul.f32 %v1001_v36, %v445_v17  ;;  %vm469_vm3 = vweird.f32 %v1001_v36 }
 0x128   : > { %vm470_vm4 = vmor %vm468_vm2, %vm469_vm3  ;;  %v549_v14 = vmul.f32 %v1244_v38, %v537_v4  ;;  %v516_v15 = vsub.f32 1.5, %v515_v49  ;;  %v526_v58 = vsub.f32 1.5, %v525_v47 }
 0x129   : > { %v565_v53 = vpack.c.bf16 %v559_v41, %v558_v46  ;;  %v464_v56 = vmul.f32 %v1001_v36, %v463_v51  ;;  %v461_v62 = vsel %vm1279_vm1, %v995_v10, %v457_v50  ;;  %v946_v41 = vld [vmem:[%s1406_s6 + $0x8] sm:$0xff] }
 0x12a   : > { %v532_v9 = vmul.f32 %v461_v62, %v1188_v11  ;;  %v561_v11 = vadd.f32 %v1253_v34, %v549_v14  ;;  %v517_v22 = vmul.f32 %v1247_v32, %v516_v15  ;;  %v527_v0 = vmul.f32 %v1255_v35, %v526_v58 }
 0x12b   : > { %906 = vmatmul.msk.bf16.vlgmr.msra.gmra.mxu3 %vm356_vm0, %v565_v53  ;;  %v465_v1 = vmul.f32 0.5, %v464_v56 }
 0x12c   : > { %v544_v17 = vmul.f32 %v1244_v38, %v532_v9  ;;  %v566_v26 = vpack.c.bf16 %v561_v11, %v560_v24  ;;  %v521_v27 = vsel %vm520_vm9, %v1247_v32, %v517_v22  ;;  %v531_v2 = vsel %vm530_vm10, %v1255_v35, %v527_v0  ;;  %v952_v32 = vld [vmem:[%s1406_s6 + $0x38] sm:$0xff]  ;;  %v947_v35 = vld [vmem:[%s1406_s6 + $0x10] sm:$0xff] }
 0x12d   : > { %v466_v5 = vsub.f32 1.5, %v465_v1  ;;  %v538_v31 = vmul.f32 %v521_v27, %v1178_v63  ;;  %v539_v33 = vmul.f32 %v531_v2, %v1163_v57  ;;  %955 = vmatpush.bf16.msra.mxu1 %v952_v32  ;;  %773 = vmatpush.bf16.msrb.mxu0 %v952_v32  ;;  %v951_v57 = vld [vmem:[%s1406_s6 + $0x30] sm:$0xff]  ;;  %v950_v63 = vld [vmem:[%s1406_s6 + $0x28] sm:$0xff] }
 0x12e   : > { %956 = vmatpush.bf16.msra.mxu2 %v952_v32 }
 0x12f   : > { %v467_v12 = vmul.f32 %v1001_v36, %v466_v5  ;;  %v550_v45 = vmul.f32 %v1244_v38, %v538_v31  ;;  %v551_v37 = vmul.f32 %v1244_v38, %v539_v33 }
 0x131   : > { %v471_v16 = vsel %vm470_vm4, %v1001_v36, %v467_v12  ;;  %v562_v39 = vadd.f32 %v1253_v34, %v550_v45  ;;  %v563_v59 = vadd.f32 %v1253_v34, %v551_v37  ;;  %957 = vmatpush.bf16.msra.mxu1 %v951_v57  ;;  %774 = vmatpush.bf16.msrb.mxu0 %v951_v57  ;;  %v1347_v36 = vld [vmem:[%s1405_s5] ss:$0 sm:$0xff] }
 0x132   : > { %v533_v10 = vmul.f32 %v471_v16, %v1193_v13  ;;  %v556_v13 = vadd.f32 %v1253_v34, %v544_v17  ;;  %958 = vmatpush.bf16.msra.mxu2 %v951_v57 }
 0x133   : > { %v567_v40 = vpack.c.bf16 %v563_v59, %v562_v39 }
 0x134   : > { %v545_v44 = vmul.f32 %v1244_v38, %v533_v10  ;;  %v949_v38 = vld [vmem:[%s1406_s6 + $0x20] sm:$0xff] }
 0x135   : > { %959 = vmatpush.bf16.msra.mxu1 %v950_v63  ;;  %775 = vmatpush.bf16.msrb.mxu0 %v950_v63 }
 0x136   : > { %v557_v23 = vadd.f32 %v1253_v34, %v545_v44  ;;  %960 = vmatpush.bf16.msra.mxu2 %v950_v63  ;;  %v948_v34 = vld [vmem:[%s1406_s6 + $0x18] sm:$0xff] }
 0x138   : > { %v564_v25 = vpack.c.bf16 %v557_v23, %v556_v13 }
 0x139   : > { %961 = vmatpush.bf16.msra.mxu1 %v949_v38  ;;  %776 = vmatpush.bf16.msrb.mxu0 %v949_v38 }
 0x13a   : > { %905 = vmatmul.msk.bf16.vlgmr.msra.gmra.mxu0 %vm356_vm0, %v564_v25  ;;  %962 = vmatpush.bf16.msra.mxu2 %v949_v38 }
 0x13b   : > { %907 = vmatmul.msk.bf16.gmra.mxu3 %vm356_vm0, %v566_v26 }
 0x13d   : > { %963 = vmatpush.bf16.msra.mxu1 %v948_v34  ;;  %777 = vmatpush.bf16.msrb.mxu0 %v948_v34 }
 0x13e   : > { %964 = vmatpush.bf16.msra.mxu2 %v948_v34 }
 0x141   : > { %965 = vmatpush.bf16.msra.mxu1 %v947_v35  ;;  %778 = vmatpush.bf16.msrb.mxu0 %v947_v35 }
 0x142   : > { %966 = vmatpush.bf16.msra.mxu2 %v947_v35 }
 0x145   : > { %967 = vmatpush.bf16.msra.mxu1 %v946_v41  ;;  %779 = vmatpush.bf16.msrb.mxu0 %v946_v41 }
 0x146   : > { %968 = vmatpush.bf16.msra.mxu2 %v946_v41 }
 0x149   : > { %969 = vmatpush.bf16.msra.mxu1 %v945_v42  ;;  %780 = vmatpush.bf16.msrb.mxu0 %v945_v42 }
 0x14a   : > { %970 = vmatpush.bf16.msra.mxu2 %v945_v42 }
 0x14b   : > { %908 = vmatmul.msk.bf16.gmra.mxu3 %vm356_vm0, %v567_v40 }
 0x1ae   : > { %v614_v43 = vpop.f32.mrf.mxu3 }
 0x1af   : > { %v615_v30 = vadd.f32 %v1347_v36, %v614_v43 }
 0x1b1   : > { %v631_v46 = vmul.f32 %v615_v30, %v615_v30 }
 0x1b3   : > { %v639_v48 = vmul.f32 %v631_v46, %v615_v30 }
 0x1b5   : > { %v647_v50 = vmul.f32 0.044715, %v639_v48 }
 0x1b6   : > { %v616_v51 = vpop.f32.mrf.mxu3 }
 0x1b7   : > { %v655_v52 = vadd.f32 %v647_v50, %v615_v30  ;;  %v617_v53 = vadd.f32 %v1347_v36, %v616_v51  ;;  %v609_v54 = vpop.f32.mrf.mxu0 }
 0x1b8   : > { %v1355_v56 = vadd.f32 %v1347_v36, %v609_v54 }
 0x1b9   : > { %v632_v55 = vmul.f32 %v617_v53, %v617_v53  ;;  %v663_v60 = vmul.f32 0.7978846, %v655_v52 }
 0x1ba   : > { %v629_v62 = vmul.f32 %v1355_v56, %v1355_v56 }
 0x1bb   : > { %v640_v61 = vmul.f32 %v632_v55, %v617_v53  ;;  %1002 = vtanh.f32 %v663_v60 }
 0x1bc   : > { %v637_v4 = vmul.f32 %v629_v62, %v1355_v56 }
 0x1bd   : > { %v648_v1 = vmul.f32 0.044715, %v640_v61 }
 0x1be   : > { %v619_v49 = vpop.f32.mrf.mxu3  ;;  %v645_v6 = vmul.f32 0.044715, %v637_v4 }
 0x1bf   : > { %v656_v5 = vadd.f32 %v648_v1, %v617_v53  ;;  %v1361_v9 = vadd.f32 %v1347_v36, %v619_v49  ;;  %v611_v47 = vpop.f32.mrf.mxu0 }
 0x1c0   : > { %v653_v12 = vadd.f32 %v645_v6, %v1355_v56  ;;  %v612_v15 = vadd.f32 %v1347_v36, %v611_v47 }
 0x1c1   : > { %v633_v14 = vmul.f32 %v1361_v9, %v1361_v9  ;;  %v664_v16 = vmul.f32 0.7978846, %v656_v5  ;;  %v1003_v10 = vpop.eup %1002 }
 0x1c2   : > { %v661_v17 = vmul.f32 0.7978846, %v653_v12  ;;  %v630_v58 = vmul.f32 %v612_v15, %v612_v15  ;;  %v679_v13 = vadd.f32 1.0, %v1003_v10 }
 0x1c3   : > { %v641_v21 = vmul.f32 %v633_v14, %v1361_v9  ;;  %1004 = vtanh.f32 %v664_v16 }
 0x1c4   : > { %v638_v11 = vmul.f32 %v630_v58, %v612_v15  ;;  %1006 = vtanh.f32 %v661_v17  ;;  %v687_v33 = vmul.f32 0.5, %v679_v13 }
 0x1c5   : > { %v649_v44 = vmul.f32 0.044715, %v641_v21 }
 0x1c6   : > { %v621_v22 = vpop.f32.mrf.mxu3  ;;  %v646_v24 = vmul.f32 0.044715, %v638_v11  ;;  %v695_v57 = vmul.f32 %v687_v33, %v615_v30 }
 0x1c7   : > { %v657_v23 = vadd.f32 %v649_v44, %v1361_v9  ;;  %v622_v0 = vadd.f32 %v1347_v36, %v621_v22 }
 0x1c8   : > { %v654_v26 = vadd.f32 %v646_v24, %v612_v15 }
 0x1c9   : > { %v1005_v25 = vpop.eup %1004  ;;  %v634_v27 = vmul.f32 %v622_v0, %v622_v0  ;;  %v665_v2 = vmul.f32 0.7978846, %v657_v23 }
 0x1ca   : > { %v680_v31 = vadd.f32 1.0, %v1005_v25  ;;  %v662_v45 = vmul.f32 0.7978846, %v654_v26  ;;  %v1007_v59 = vpop.eup %1006 }
 0x1cb   : > { %v642_v37 = vmul.f32 %v634_v27, %v622_v0  ;;  %1008 = vtanh.f32 %v665_v2  ;;  %v677_v41 = vadd.f32 1.0, %v1007_v59 }
 0x1cc   : > { %v688_v39 = vmul.f32 0.5, %v680_v31  ;;  %1010 = vtanh.f32 %v662_v45 }
 0x1cd   : > { %v650_v40 = vmul.f32 0.044715, %v642_v37  ;;  %v685_v52 = vmul.f32 0.5, %v677_v41 }
 0x1ce   : > { %v624_v32 = vpop.f32.mrf.mxu3  ;;  %v696_v63 = vmul.f32 %v688_v39, %v617_v53 }
 0x1cf   : > { %v658_v38 = vadd.f32 %v650_v40, %v622_v0  ;;  %v625_v34 = vadd.f32 %v1347_v36, %v624_v32  ;;  %v693_v62 = vmul.f32 %v685_v52, %v1355_v56 }
 0x1d0   : > { %v702_v35 = vpack.c.bf16 %v696_v63, %v695_v57 }
 0x1d1   : > { %v635_v42 = vmul.f32 %v625_v34, %v625_v34  ;;  %v666_v43 = vmul.f32 0.7978846, %v658_v38  ;;  %v1009_v46 = vpop.eup %1008 }
 0x1d2   : > { %786 = vmatmul.bf16.vlgmr.msra.gmra.mxu1 %v702_v35  ;;  %v1011_v48 = vpop.eup %1010  ;;  %v681_v61 = vadd.f32 1.0, %v1009_v46 }
 0x1d3   : > { %v643_v50 = vmul.f32 %v635_v42, %v625_v34  ;;  %1012 = vtanh.f32 %v666_v43  ;;  %v678_v51 = vadd.f32 1.0, %v1011_v48 }
 0x1d4   : > { %v689_v12 = vmul.f32 0.5, %v681_v61 }
 0x1d5   : > { %v651_v54 = vmul.f32 0.044715, %v643_v50  ;;  %v686_v60 = vmul.f32 0.5, %v678_v51 }
 0x1d6   : > { %v626_v55 = vpop.f32.mrf.mxu3  ;;  %v697_v17 = vmul.f32 %v689_v12, %v1361_v9  ;;  %v983_v9 = vld [vmem:[%s1407_s7] ss:$0 sm:$0xff] }
 0x1d7   : > { %v659_v30 = vadd.f32 %v651_v54, %v625_v34  ;;  %v627_v53 = vadd.f32 %v1347_v36, %v626_v55  ;;  %v694_v1 = vmul.f32 %v686_v60, %v612_v15 }
 0x1d9   : > { %v1013_v4 = vpop.eup %1012  ;;  %v636_v49 = vmul.f32 %v627_v53, %v627_v53  ;;  %v667_v5 = vmul.f32 0.7978846, %v659_v30  ;;  %v701_v6 = vpack.c.bf16 %v694_v1, %v693_v62 }
 0x1da   : > { %v682_v47 = vadd.f32 1.0, %v1013_v4 }
 0x1db   : > { %v644_v14 = vmul.f32 %v636_v49, %v627_v53  ;;  %781 = vmatmul.bf16.vlgmr.msrb.gmra.mxu0 %v701_v6  ;;  %1014 = vtanh.f32 %v667_v5 }
 0x1dc   : > { %v690_v16 = vmul.f32 0.5, %v682_v47 }
 0x1dd   : > { %v652_v10 = vmul.f32 0.044715, %v644_v14 }
 0x1de   : > { %v698_v21 = vmul.f32 %v690_v16, %v622_v0 }
 0x1df   : > { %v660_v58 = vadd.f32 %v652_v10, %v627_v53 }
 0x1e0   : > { %v703_v44 = vpack.c.bf16 %v698_v21, %v697_v17 }
 0x1e1   : > { %v668_v36 = vmul.f32 0.7978846, %v660_v58  ;;  %v1015_v56 = vpop.eup %1014 }
 0x1e2   : > { %791 = vmatmul.bf16.vlgmr.msra.gmra.mxu2 %v703_v44  ;;  %v683_v15 = vadd.f32 1.0, %v1015_v56 }
 0x1e3   : > { %1016 = vtanh.f32 %v668_v36 }
 0x1e4   : > { %v691_v13 = vmul.f32 0.5, %v683_v15 }
 0x1e6   : > { %v699_v24 = vmul.f32 %v691_v13, %v625_v34 }
 0x1e9   : > { %v1017_v11 = vpop.eup %1016 }
 0x1ea   : > { %v684_v22 = vadd.f32 1.0, %v1017_v11 }
 0x1ec   : > { %v692_v23 = vmul.f32 0.5, %v684_v22 }
 0x1ee   : > { %v700_v25 = vmul.f32 %v692_v23, %v627_v53 }
 0x1f0   : > { %v704_v26 = vpack.c.bf16 %v700_v25, %v699_v24 }
 0x1f2   : > { %796 = vmatmul.bf16.gmra.mxu2 %v704_v26 }
 0x24f   : > { %v787_v0 = vpop.f32.mrf.mxu1 }
 0x250   : > { %v788_v27 = vadd.f32 %v983_v9, %v787_v0 }
 0x252   : > { %v804_v2 = vadd.f32 %v788_v27, %v1104_v8 }
 0x254   : > { %812 = vst.msk [vmem:[%s329_s25 + $0x10] sm:$0xff] %vm356_vm0, %v804_v2 }
 0x257   : > { %v789_v31 = vpop.f32.mrf.mxu1 }
 0x258   : > { %v790_v33 = vadd.f32 %v983_v9, %v789_v31  ;;  %v782_v45 = vpop.f32.mrf.mxu0 }
 0x259   : > { %v783_v39 = vadd.f32 %v983_v9, %v782_v45 }
 0x25a   : > { %v805_v37 = vadd.f32 %v790_v33, %v1122_v20 }
 0x25b   : > { %v802_v59 = vadd.f32 %v783_v39, %v1134_v28 }
 0x25c   : > { %813 = vst.msk [vmem:[%s329_s25 + $0x18] sm:$0xff] %vm356_vm0, %v805_v37 }
 0x25d   : > { %810 = vst.msk [vmem:[%s329_s25] sm:$0xff] %vm356_vm0, %v802_v59 }
 0x260   : > { %v784_v40 = vpop.f32.mrf.mxu0 }
 0x261   : > { %v785_v32 = vadd.f32 %v983_v9, %v784_v40 }
 0x263   : > { %v803_v57 = vadd.f32 %v785_v32, %v1136_v29 }
 0x265   : > { %v792_v63 = vpop.f32.mrf.mxu2  ;;  %811 = vst.msk [vmem:[%s329_s25 + $0x8] sm:$0xff] %vm356_vm0, %v803_v57 }
 0x266   : > { %v793_v8 = vadd.f32 %v983_v9, %v792_v63 }
 0x268   : > { %v806_v38 = vadd.f32 %v793_v8, %v1102_v7 }
 0x26a   : > { %814 = vst.msk [vmem:[%s329_s25 + $0x20] sm:$0xff] %vm356_vm0, %v806_v38 }
 0x26d   : > { %v794_v20 = vpop.f32.mrf.mxu2 }
 0x26e   : > { %v795_v34 = vadd.f32 %v983_v9, %v794_v20 }
 0x270   : > { %v807_v35 = vadd.f32 %v795_v34, %v1120_v19 }
 0x272   : > { %815 = vst.msk [vmem:[%s329_s25 + $0x28] sm:$0xff] %vm356_vm0, %v807_v35 }
 0x275   : > { %v797_v28 = vpop.f32.mrf.mxu2 }
 0x276   : > { %v798_v41 = vadd.f32 %v983_v9, %v797_v28 }
 0x278   : > { %v808_v42 = vadd.f32 %v798_v41, %v1097_v3 }
 0x27a   : > { %816 = vst.msk [vmem:[%s329_s25 + $0x30] sm:$0xff] %vm356_vm0, %v808_v42 }
 0x27d   : > { %v799_v29 = vpop.f32.mrf.mxu2 }
 0x27e   : > { %v800_v43 = vadd.f32 %v983_v9, %v799_v29 }
 0x280   : > { %v809_v46 = vadd.f32 %v800_v43, %v1118_v18 }
 0x282   : > { %817 = vst.msk [vmem:[%s329_s25 + $0x38] sm:$0xff] %vm356_vm0, %v809_v46 }
 0x283 PF: > { %s18_s27 = sadd.s32 1, %s1024_s27  }
 0x284   : > { %p15_p4 = scmp.ge.s32.totalorder %s18_s27, 4  }
 0x286   :  { %17 = sbr.rel (!%p15_p4) target bundleno = 1 (0x1), region = 85 }

// kernel: swin_block_forward.2
= control target key start
LH: loop header
LB: loop body
LE: loop exit
PB: predicated region body
PF: predicated region fallthrough
CT: control target
= control target key end

     0   :  { %s2706_s17 = smov 0   ;;  %s3630_s0 = inlined_call_operand.vmem [shape: f32[8,16,32], index: 0, kind: input, shape index: {}]   ;;  %s3631_s1 = inlined_call_operand.vmem [shape: f32[1,32], index: 1, kind: input, shape index: {}]   ;;  %s3632_s2 = inlined_call_operand.vmem [shape: f32[1,32], index: 2, kind: input, shape index: {}]   ;;  %s3633_s3 = inlined_call_operand.vmem [shape: bf16[4,32,8], index: 3, kind: input, shape index: {}]   ;;  %s3634_s4 = inlined_call_operand.vmem [shape: f32[4,1,8], index: 4, kind: input, shape index: {}]   ;;  %s3635_s5 = inlined_call_operand.vmem [shape: bf16[4,32,8], index: 5, kind: input, shape index: {}]   ;;  %s3636_s6 = inlined_call_operand.vmem [shape: f32[4,1,8], index: 6, kind: input, shape index: {}]   ;;  %s3637_s7 = inlined_call_operand.vmem [shape: bf16[4,32,32], index: 7, kind: input, shape index: {}]   ;;  %s3638_s8 = inlined_call_operand.vmem [shape: f32[1,32], index: 8, kind: input, shape index: {}]   ;;  %s3639_s9 = inlined_call_operand.vmem [shape: f32[4,64,64], index: 9, kind: input, shape index: {}]   ;;  %s3640_s10 = inlined_call_operand.vmem [shape: f32[1,64,64], index: 10, kind: input, shape index: {}]   ;;  %s3641_s11 = inlined_call_operand.vmem [shape: f32[8,16,32], index: 11, kind: output, shape index: {}]  }
   0x1 LB: > { %s2178_s18 = sadd.s32 4294967295, %s2643_s17   ;;  %p2182_p0 = scmp.ge.s32.totalorder %s2643_s17, 1  ;;  %s2643_s17 = sphi %s2706_s17, %s21_s17  }
   0x2   : > { %p339_p1 = scmp.lt.s32.totalorder %s2643_s17, 3 }
   0x4   : > { %p340_p2 = pnand %p2182_p0, %p339_p1 }
   0x5   : > { %s2183_s19 = sshll.u32 (!%p340_p2), %s2178_s18, 2 }
   0x6   : > { %343 = sbr.rel (%p340_p2) target bundleno = 2225 (0x8b1), region = 64  ;;  %p382_p3 = scmp.lt.s32.totalorder (!%p340_p2), %s2183_s19, 7 }
   0xb   : > { %s3643_s19 = smov (!%p382_p3, %s2183_s19), 7  ;;  %vm404_vm0 = vcmask 261120   ;;  %v2645_v14 = vmov 32.0   ;;  %v2436_v58 = vld [vmem:[%s3633_s3 + $0x8] sm:$0xff] }
   0xc   : > { %s2433_s20 = sshll.u32 %s3643_s19, 4  ;;  %2483 = vrcp.f32 %v2645_v14  ;;  %v2438_v59 = vld [vmem:[%s3635_s5 + $0x8] sm:$0xff]  ;;  %662 = vmatpush.bf16.msra.mxu0 %v2436_v58 }
   0xd   : > { %s2722_s23 = scalar_lea.vmem %s3630_s0, %s2433_s20  ;;  %v2440_v60 = vld [vmem:[%s3637_s7 + $0x8] sm:$0xff]  ;;  %711 = vmatpush.bf16.msra.mxu1 %v2438_v59  ;;  %s393_s13 = scalar_lea.vmem %s3641_s11, %s2433_s20 }
   0xe   : > { %v400_v0 = vld [vmem:[%s2722_s23 + $0x20] sm:$0xff]  ;;  %v398_v1 = vld [vmem:[%s2722_s23 + $0x10] sm:$0xff]  ;;  %v401_v6 = vld [vmem:[%s2722_s23 + $0x28] sm:$0xff]  ;;  %756 = vmatpush.bf16.msra.mxu2 %v2440_v60 }
   0xf   : > { %v396_v2 = vld [vmem:[%s2722_s23] sm:$0xff]  ;;  %v417_v3 = vsel %vm404_vm0, %v400_v0, 0.0  ;;  %v411_v4 = vsel %vm404_vm0, %v398_v1, 0.0  ;;  %v399_v7 = vld [vmem:[%s2722_s23 + $0x18] sm:$0xff]  ;;  %v397_v8 = vld [vmem:[%s2722_s23 + $0x8] sm:$0xff]  ;;  %v420_v9 = vsel %vm404_vm0, %v401_v6, 0.0 }
  0x10   : > { %v405_v5 = vsel %vm404_vm0, %v396_v2, 0.0  ;;  %418 = vadd.xlane.f32.xlu2 %v417_v3  ;;  %412 = vadd.xlane.f32.xlu1 %v411_v4  ;;  %v414_v10 = vsel %vm404_vm0, %v399_v7, 0.0  ;;  %v408_v11 = vsel %vm404_vm0, %v397_v8, 0.0  ;;  %v402_v12 = vld [vmem:[%s2722_s23 + $0x30] sm:$0xff]  ;;  %v403_v36 = vld [vmem:[%s2722_s23 + $0x38] sm:$0xff] }
  0x11   : > { %406 = vadd.xlane.f32.xlu0 %v405_v5  ;;  %v423_v13 = vsel %vm404_vm0, %v402_v12, 0.0  ;;  %v426_v41 = vsel %vm404_vm0, %v403_v36, 0.0 }
  0x12   : > { %v2484_v15 = vpop.eup %2483 }
  0x13   : > { %v430_v16 = vmul.f32 32.0, %v2484_v15  ;;  %vm434_vm1 = vweird.f32 %v2484_v15 }
  0x15   : > { %v431_v17 = vsub.f32 1.0, %v430_v16 }
  0x17   : > { %v432_v18 = vmul.f32 %v2484_v15, %v431_v17 }
  0x18   : > { %421 = vadd.xlane.f32.xlu2 %v420_v9  ;;  %415 = vadd.xlane.f32.xlu1 %v414_v10 }
  0x19   : > { %409 = vadd.xlane.f32.xlu0 %v408_v11  ;;  %v433_v19 = vadd.f32 %v2484_v15, %v432_v18 }
  0x1b   : > { %v2738_v20 = vsel %vm434_vm1, %v2484_v15, %v433_v19 }
  0x20   : > { %424 = vadd.xlane.f32.xlu2 %v423_v13 }
  0x83   : > { %v419_v21 = vpop.xlane.xlu2 %418  ;;  %v413_v22 = vpop.xlane.xlu1 %412 }
  0x84   : > { %v407_v23 = vpop.xlane.xlu0 %406  ;;  %v440_v32 = vmul.f32 %v2738_v20, %v419_v21  ;;  %v438_v33 = vmul.f32 %v2738_v20, %v413_v22 }
  0x85   : > { %v436_v24 = vmul.f32 %v2738_v20, %v407_v23 }
  0x86   : > { %v2757_v39 = vsub.f32 %v400_v0, %v440_v32  ;;  %v2759_v40 = vsub.f32 %v398_v1, %v438_v33  ;;  %v2435_v0 = vld [vmem:[%s3633_s3] sm:$0xff] }
  0x87   : > { %v2741_v25 = vsub.f32 %v396_v2, %v436_v24  ;;  %v2437_v1 = vld [vmem:[%s3635_s5] sm:$0xff]  ;;  %663 = vmatpush.bf16.msra.mxu0 %v2435_v0 }
  0x88   : > { %v456_v48 = vmul.f32 %v2757_v39, %v2757_v39  ;;  %v454_v49 = vmul.f32 %v2759_v40, %v2759_v40  ;;  %v2439_v2 = vld [vmem:[%s3637_s7] sm:$0xff]  ;;  %712 = vmatpush.bf16.msra.mxu1 %v2437_v1 }
  0x89   : > { %v452_v26 = vmul.f32 %v2741_v25, %v2741_v25  ;;  %757 = vmatpush.bf16.msra.mxu2 %v2439_v2 }
  0x8a   : > { %v472_v53 = vsel %vm404_vm0, %v456_v48, 0.0  ;;  %v466_v54 = vsel %vm404_vm0, %v454_v49, 0.0 }
  0x8b   : > { %v422_v27 = vpop.xlane.xlu2 %421  ;;  %v416_v28 = vpop.xlane.xlu1 %415  ;;  %v460_v29 = vsel %vm404_vm0, %v452_v26, 0.0 }
  0x8c   : > { %v439_v30 = vmul.f32 %v2738_v20, %v416_v28  ;;  %461 = vadd.xlane.f32.xlu0 %v460_v29  ;;  %v410_v31 = vpop.xlane.xlu0 %409  ;;  %v441_v47 = vmul.f32 %v2738_v20, %v422_v27 }
  0x8d   : > { %v437_v34 = vmul.f32 %v2738_v20, %v410_v31 }
  0x8e   : > { %v2750_v35 = vsub.f32 %v399_v7, %v439_v30  ;;  %v2776_v52 = vsub.f32 %v401_v6, %v441_v47 }
  0x8f   : > { %v2753_v37 = vsub.f32 %v397_v8, %v437_v34 }
  0x90   : > { %v455_v38 = vmul.f32 %v2750_v35, %v2750_v35  ;;  %v457_v56 = vmul.f32 %v2776_v52, %v2776_v52 }
  0x91   : > { %v453_v42 = vmul.f32 %v2753_v37, %v2753_v37 }
  0x92   : > { %v469_v43 = vsel %vm404_vm0, %v455_v38, 0.0  ;;  %v475_v57 = vsel %vm404_vm0, %v457_v56, 0.0 }
  0x93   : > { %v425_v44 = vpop.xlane.xlu2 %424  ;;  %470 = vadd.xlane.f32.xlu2 %v469_v43  ;;  %v463_v45 = vsel %vm404_vm0, %v453_v42, 0.0 }
  0x94   : > { %v442_v46 = vmul.f32 %v2738_v20, %v425_v44  ;;  %427 = vadd.xlane.f32.xlu0 %v426_v41  ;;  %464 = vadd.xlane.f32.xlu1 %v463_v45  ;;  %v2827_v44 = vld [vmem:[%s3631_s1] ss:$0 sm:$0xff] }
  0x96   : > { %v2772_v50 = vsub.f32 %v402_v12, %v442_v46 }
  0x98   : > { %v458_v51 = vmul.f32 %v2772_v50, %v2772_v50 }
  0x9a   : > { %v478_v55 = vsel %vm404_vm0, %v458_v51, 0.0 }
  0x9b   : > { %479 = vadd.xlane.f32.xlu2 %v478_v55 }
  0x9c   : > { %473 = vadd.xlane.f32.xlu0 %v472_v53  ;;  %467 = vadd.xlane.f32.xlu1 %v466_v54  ;;  %v2834_v54 = vld [vmem:[%s3632_s2] ss:$0 sm:$0xff] }
  0xa4   : > { %476 = vadd.xlane.f32.xlu1 %v475_v57 }
  0xff   : > { %v462_v61 = vpop.xlane.xlu0 %461 }
 0x100   : > { %v484_v62 = vmul.f32 %v462_v61, %v2738_v20 }
 0x102   : > { %v492_v63 = vadd.f32 1e-05, %v484_v62 }
 0x104   : > { %2485 = vrsqrt.f32 %v492_v63  ;;  %vm506_vm3 = vweird.f32 %v492_v63 }
 0x106   : > { %v471_v3 = vpop.xlane.xlu2 %470 }
 0x107   : > { %v487_v4 = vmul.f32 %v471_v3, %v2738_v20  ;;  %v465_v5 = vpop.xlane.xlu1 %464  ;;  %v428_v6 = vpop.xlane.xlu0 %427 }
 0x108   : > { %v485_v7 = vmul.f32 %v465_v5, %v2738_v20  ;;  %v443_v8 = vmul.f32 %v2738_v20, %v428_v6 }
 0x109   : > { %v2806_v9 = vadd.f32 1e-05, %v487_v4 }
 0x10a   : > { %v2486_v10 = vpop.eup %2485  ;;  %v493_v11 = vadd.f32 1e-05, %v485_v7  ;;  %v2808_v12 = vsub.f32 %v403_v36, %v443_v8 }
 0x10b   : > { %v501_v13 = vmul.f32 %v2486_v10, %v492_v63  ;;  %2487 = vrsqrt.f32 %v2806_v9  ;;  %vm507_vm2 = vweird.f32 %v2486_v10  ;;  %vm536_vm10 = vweird.f32 %v2806_v9 }
 0x10c   : > { %2489 = vrsqrt.f32 %v493_v11  ;;  %v459_v14 = vmul.f32 %v2808_v12, %v2808_v12  ;;  %vm508_vm4 = vmor %vm506_vm3, %vm507_vm2  ;;  %vm516_vm5 = vweird.f32 %v493_v11 }
 0x10d   : > { %v502_v15 = vmul.f32 %v2486_v10, %v501_v13 }
 0x10e   : > { %v481_v16 = vsel %vm404_vm0, %v459_v14, 0.0 }
 0x10f   : > { %v503_v17 = vmul.f32 0.5, %v502_v15  ;;  %v468_v18 = vpop.xlane.xlu1 %467  ;;  %482 = vadd.xlane.f32.xlu0 %v481_v16  ;;  %v474_v19 = vpop.xlane.xlu0 %473 }
 0x110   : > { %v486_v21 = vmul.f32 %v468_v18, %v2738_v20  ;;  %v488_v27 = vmul.f32 %v474_v19, %v2738_v20 }
 0x111   : > { %v2815_v22 = vpop.eup %2487  ;;  %v504_v23 = vsub.f32 1.5, %v503_v17 }
 0x112   : > { %v2490_v24 = vpop.eup %2489  ;;  %v494_v26 = vadd.f32 1e-05, %v486_v21  ;;  %v531_v29 = vmul.f32 %v2815_v22, %v2806_v9  ;;  %v2820_v32 = vadd.f32 1e-05, %v488_v27  ;;  %vm537_vm11 = vweird.f32 %v2815_v22 }
 0x113   : > { %v505_v28 = vmul.f32 %v2486_v10, %v504_v23  ;;  %v511_v30 = vmul.f32 %v2490_v24, %v493_v11  ;;  %vm517_vm6 = vweird.f32 %v2490_v24  ;;  %vm538_vm13 = vmor %vm536_vm10, %vm537_vm11  ;;  %vm787_vm11 = vcmask 64512  }
 0x114   : > { %2491 = vrsqrt.f32 %v494_v26  ;;  %v532_v34 = vmul.f32 %v2815_v22, %v531_v29  ;;  %vm518_vm7 = vmor %vm516_vm5, %vm517_vm6  ;;  %vm526_vm8 = vweird.f32 %v494_v26  ;;  %vm546_vm1 = vweird.f32 %v2820_v32 }
 0x115   : > { %v512_v31 = vmul.f32 %v2490_v24, %v511_v30  ;;  %v509_v33 = vsel %vm508_vm4, %v2486_v10, %v505_v28  ;;  %2493 = vrsqrt.f32 %v2820_v32 }
 0x116   : > { %v580_v45 = vmul.f32 %v509_v33, %v2741_v25  ;;  %v533_v46 = vmul.f32 0.5, %v532_v34 }
 0x117   : > { %v513_v36 = vmul.f32 0.5, %v512_v31  ;;  %v477_v38 = vpop.xlane.xlu1 %476 }
 0x118   : > { %v489_v41 = vmul.f32 %v477_v38, %v2738_v20  ;;  %v592_v55 = vmul.f32 %v2827_v44, %v580_v45  ;;  %v534_v25 = vsub.f32 1.5, %v533_v46  ;;  %v2446_v45 = vld [vmem:[%s3637_s7 + $0x18] sm:$0xff] }
 0x119   : > { %v514_v42 = vsub.f32 1.5, %v513_v36  ;;  %1079 = vmatpush.bf16.msrb.mxu2 %v2446_v45 }
 0x11a   : > { %v2492_v43 = vpop.eup %2491  ;;  %v497_v49 = vadd.f32 1e-05, %v489_v41  ;;  %v604_v61 = vadd.f32 %v2834_v54, %v592_v55 }
 0x11b   : > { %v515_v47 = vmul.f32 %v2490_v24, %v514_v42  ;;  %v521_v48 = vmul.f32 %v2492_v43, %v494_v26  ;;  %vm527_vm9 = vweird.f32 %v2492_v43  ;;  %v2494_v58 = vpop.eup %2493 }
 0x11c   : > { %2495 = vrsqrt.f32 %v497_v49  ;;  %vm528_vm12 = vmor %vm526_vm8, %vm527_vm9  ;;  %v541_v1 = vmul.f32 %v2494_v58, %v2820_v32  ;;  %vm556_vm14 = vweird.f32 %v497_v49  ;;  %vm547_vm2 = vweird.f32 %v2494_v58 }
 0x11d   : > { %v519_v51 = vsel %vm518_vm7, %v2490_v24, %v515_v47  ;;  %v522_v53 = vmul.f32 %v2492_v43, %v521_v48  ;;  %vm548_vm4 = vmor %vm546_vm1, %vm547_vm2  ;;  %v2445_v48 = vld [vmem:[%s3637_s7 + $0x10] sm:$0xff] }
 0x11e   : > { %v581_v56 = vmul.f32 %v519_v51, %v2753_v37  ;;  %v535_v37 = vmul.f32 %v2815_v22, %v534_v25  ;;  %v542_v7 = vmul.f32 %v2494_v58, %v541_v1  ;;  %1080 = vmatpush.bf16.msrb.mxu2 %v2445_v48 }
 0x11f   : > { %v523_v57 = vmul.f32 0.5, %v522_v53 }
 0x120   : > { %v593_v59 = vmul.f32 %v2827_v44, %v581_v56  ;;  %v539_v6 = vsel %vm538_vm13, %v2815_v22, %v535_v37  ;;  %v543_v11 = vmul.f32 0.5, %v542_v7 }
 0x121   : > { %v524_v60 = vsub.f32 1.5, %v523_v57  ;;  %v583_v10 = vmul.f32 %v539_v6, %v2750_v35 }
 0x122   : > { %v605_v62 = vadd.f32 %v2834_v54, %v593_v59  ;;  %v2496_v63 = vpop.eup %2495  ;;  %v544_v16 = vsub.f32 1.5, %v543_v11 }
 0x123   : > { %v525_v0 = vmul.f32 %v2492_v43, %v524_v60  ;;  %v551_v3 = vmul.f32 %v2496_v63, %v497_v49  ;;  %v595_v15 = vmul.f32 %v2827_v44, %v583_v10  ;;  %vm557_vm15 = vweird.f32 %v2496_v63 }
 0x124   : > { %v2845_v2 = vpack.c.bf16 %v605_v62, %v604_v61  ;;  %vm558_vm3 = vmor %vm556_vm14, %vm557_vm15  ;;  %v545_v19 = vmul.f32 %v2494_v58, %v544_v16 }
 0x125   : > { %v529_v4 = vsel %vm528_vm12, %v2492_v43, %v525_v0  ;;  %v552_v5 = vmul.f32 %v2496_v63, %v551_v3  ;;  %v2444_v43 = vld [vmem:[%s3635_s5 + $0x18] sm:$0xff]  ;;  %vm857_vm12 = vcmask 523264  }
 0x126   : > { %2197 = vmatmul.msk.bf16.vlgmr.msra.gmra.mxu0 %vm404_vm0, %v2845_v2  ;;  %2209 = vmatmul.msk.bf16.vlgmr.msra.gmra.mxu1 %vm404_vm0, %v2845_v2  ;;  %v582_v8 = vmul.f32 %v529_v4, %v2759_v40  ;;  %v607_v40 = vadd.f32 %v2834_v54, %v595_v15  ;;  %v549_v22 = vsel %vm548_vm4, %v2494_v58, %v545_v19  ;;  %v2475_v15 = vld [vmem:[%s3636_s6] ss:$0 sm:$0xff] }
 0x127   : > { %2221 = vmatmul.msk.bf16.vlgmr.msra.gmra.mxu2 %vm404_vm0, %v2845_v2  ;;  %v553_v9 = vmul.f32 0.5, %v552_v5  ;;  %v584_v24 = vmul.f32 %v549_v22, %v2757_v39  ;;  %v480_v39 = vpop.xlane.xlu2 %479  ;;  %1033 = vmatpush.bf16.msrb.mxu1 %v2444_v43 }
 0x128   : > { %v594_v13 = vmul.f32 %v2827_v44, %v582_v8 }
 0x129   : > { %v554_v14 = vsub.f32 1.5, %v553_v9  ;;  %v596_v27 = vmul.f32 %v2827_v44, %v584_v24 }
 0x12a   : > { %v606_v17 = vadd.f32 %v2834_v54, %v594_v13 }
 0x12b   : > { %v555_v18 = vmul.f32 %v2496_v63, %v554_v14  ;;  %v608_v29 = vadd.f32 %v2834_v54, %v596_v27 }
 0x12c   : > { %v2861_v35 = vpack.c.bf16 %v607_v40, %v606_v17 }
 0x12d   : > { %v559_v21 = vsel %vm558_vm3, %v2496_v63, %v555_v18 }
 0x12e   : > { %v585_v23 = vmul.f32 %v559_v21, %v2776_v52  ;;  %v490_v52 = vmul.f32 %v480_v39, %v2738_v20 }
 0x130   : > { %v597_v26 = vmul.f32 %v2827_v44, %v585_v23  ;;  %v498_v31 = vadd.f32 1e-05, %v490_v52 }
 0x132   : > { %v609_v28 = vadd.f32 %v2834_v54, %v597_v26  ;;  %2497 = vrsqrt.f32 %v498_v31  ;;  %vm566_vm5 = vweird.f32 %v498_v31 }
 0x134   : > { %v2875_v30 = vpack.c.bf16 %v609_v28, %v608_v29 }
 0x136   : > { %2198 = vmatmul.msk.bf16.gmra.mxu0 %vm404_vm0, %v2861_v35  ;;  %2210 = vmatmul.msk.bf16.gmra.mxu1 %vm404_vm0, %v2861_v35 }
 0x137   : > { %2222 = vmatmul.msk.bf16.gmra.mxu2 %vm404_vm0, %v2861_v35 }
 0x138   : > { %v2498_v32 = vpop.eup %2497 }
 0x139   : > { %v561_v33 = vmul.f32 %v2498_v32, %v498_v31  ;;  %vm567_vm6 = vweird.f32 %v2498_v32 }
 0x13a   : > { %vm568_vm7 = vmor %vm566_vm5, %vm567_vm6 }
 0x13b   : > { %v562_v34 = vmul.f32 %v2498_v32, %v561_v33 }
 0x13d   : > { %v563_v42 = vmul.f32 0.5, %v562_v34 }
 0x13f   : > { %v564_v46 = vsub.f32 1.5, %v563_v42 }
 0x141   : > { %v565_v49 = vmul.f32 %v2498_v32, %v564_v46 }
 0x143   : > { %v569_v55 = vsel %vm568_vm7, %v2498_v32, %v565_v49 }
 0x144   : > { %v586_v57 = vmul.f32 %v569_v55, %v2772_v50  ;;  %v2448_v50 = vld [vmem:[%s3633_s3 + $0x28] sm:$0xff] }
 0x145   : > { %1386 = vmatpush.bf16.msra.mxu2 %v2448_v50 }
 0x146   : > { %2199 = vmatmul.msk.bf16.gmra.mxu0 %vm404_vm0, %v2875_v30  ;;  %2211 = vmatmul.msk.bf16.gmra.mxu1 %vm404_vm0, %v2875_v30  ;;  %v598_v60 = vmul.f32 %v2827_v44, %v586_v57  ;;  %v2441_v57 = vld [vmem:[%s3633_s3 + $0x10] sm:$0xff] }
 0x147   : > { %2223 = vmatmul.msk.bf16.gmra.mxu2 %vm404_vm0, %v2875_v30 }
 0x148   : > { %v610_v63 = vadd.f32 %v2834_v54, %v598_v60 }
 0x182   : > { %v483_v36 = vpop.xlane.xlu0 %482 }
 0x183   : > { %v491_v38 = vmul.f32 %v483_v36, %v2738_v20  ;;  %v2443_v20 = vld [vmem:[%s3635_s5 + $0x10] sm:$0xff] }
 0x184   : > { %1034 = vmatpush.bf16.msrb.mxu1 %v2443_v20 }
 0x185   : > { %v499_v41 = vadd.f32 1e-05, %v491_v38 }
 0x187   : > { %2499 = vrsqrt.f32 %v499_v41  ;;  %vm576_vm9 = vweird.f32 %v499_v41 }
 0x18d   : > { %v2500_v47 = vpop.eup %2499 }
 0x18e   : > { %v571_v51 = vmul.f32 %v2500_v47, %v499_v41  ;;  %vm577_vm8 = vweird.f32 %v2500_v47 }
 0x18f   : > { %vm578_vm10 = vmor %vm576_vm9, %vm577_vm8 }
 0x190   : > { %v572_v53 = vmul.f32 %v2500_v47, %v571_v51  ;;  %v2442_v51 = vld [vmem:[%s3633_s3 + $0x18] sm:$0xff] }
 0x192   : > { %v573_v56 = vmul.f32 0.5, %v572_v53  ;;  %v2474_v53 = vld [vmem:[%s3634_s4] ss:$0 sm:$0xff] }
 0x194   : > { %v574_v25 = vsub.f32 1.5, %v573_v56 }
 0x196   : > { %v575_v58 = vmul.f32 %v2500_v47, %v574_v25 }
 0x198   : > { %v579_v59 = vsel %vm578_vm10, %v2500_v47, %v575_v58 }
 0x199   : > { %v587_v61 = vmul.f32 %v579_v59, %v2808_v12  ;;  %v2447_v12 = vld [vmem:[%s3633_s3 + $0x20] sm:$0xff] }
 0x19a   : > { %1387 = vmatpush.bf16.msra.mxu2 %v2447_v12 }
 0x19b   : > { %v599_v62 = vmul.f32 %v2827_v44, %v587_v61 }
 0x19d   : > { %v611_v37 = vadd.f32 %v2834_v54, %v599_v62 }
 0x19f   : > { %v2903_v0 = vpack.c.bf16 %v611_v37, %v610_v63 }
 0x1a1   : > { %2200 = vmatmul.msk.bf16.gmra.mxu0 %vm404_vm0, %v2903_v0  ;;  %2212 = vmatmul.msk.bf16.gmra.mxu1 %vm404_vm0, %v2903_v0 }
 0x1a2   : > { %2224 = vmatmul.msk.bf16.gmra.mxu2 %vm404_vm0, %v2903_v0 }
 0x1a3   : > { %v714_v44 = vpop.f32.mrf.mxu1  ;;  %v665_v14 = vpop.f32.mrf.mxu0 }
 0x1a4   : > { %v715_v46 = vadd.f32 %v2475_v15, %v714_v44  ;;  %v666_v60 = vadd.f32 %v2474_v53, %v665_v14 }
 0x1aa   : > { %v759_v54 = vpop.f32.mrf.mxu2 }
 0x1ab   : > { %v716_v1 = vpop.f32.mrf.mxu1  ;;  %v667_v19 = vpop.f32.mrf.mxu0 }
 0x1ac   : > { %v717_v43 = vadd.f32 %v2475_v15, %v716_v1  ;;  %v668_v56 = vadd.f32 %v2474_v53, %v667_v19 }
 0x1ae   : > { %v783_v49 = vpack.c.bf16 %v717_v43, %v715_v46  ;;  %v779_v63 = vpack.c.bf16 %v668_v56, %v666_v60 }
 0x1b0   : > { %v801_v55 = vsel %vm787_vm11, %v783_v49, 0  ;;  %v3009_v49 = vld [vmem:[%s3640_s10 + $0x8] sm:$0xff] }
 0x1b1   : > { %2259 = vmatmul.msk.bf16.vlgmr.msrb.gmra.mxu1 %vm404_vm0, %v2845_v2 }
 0x1b2   : > { %2275 = vmatmul.msk.bf16.vlgmr.msrb.gmra.mxu2 %vm404_vm0, %v2845_v2  ;;  %v761_v3 = vpop.f32.mrf.mxu2 }
 0x1b3   : > { %v719_v4 = vpop.f32.mrf.mxu1  ;;  %v670_v52 = vpop.f32.mrf.mxu0  ;;  %v950_v42 = vpack.c.bf16 %v761_v3, %v759_v54 }
 0x1b4   : > { %v720_v33 = vadd.f32 %v2475_v15, %v719_v4  ;;  %v671_v62 = vadd.f32 %v2474_v53, %v670_v52 }
 0x1ba   : > { %v764_v5 = vpop.f32.mrf.mxu2 }
 0x1bb   : > { %v721_v6 = vpop.f32.mrf.mxu1  ;;  %v672_v47 = vpop.f32.mrf.mxu0 }
 0x1bc   : > { %v722_v31 = vadd.f32 %v2475_v15, %v721_v6  ;;  %v673_v58 = vadd.f32 %v2474_v53, %v672_v47 }
 0x1be   : > { %v784_v41 = vpack.c.bf16 %v722_v31, %v720_v33  ;;  %v780_v37 = vpack.c.bf16 %v673_v58, %v671_v62 }
 0x1c0   : > { %v804_v45 = vsel %vm787_vm11, %v784_v41, 0 }
 0x1c1   : > { %2260 = vmatmul.msk.bf16.gmra.mxu1 %vm404_vm0, %v2861_v35 }
 0x1c2   : > { %2276 = vmatmul.msk.bf16.gmra.mxu2 %vm404_vm0, %v2861_v35  ;;  %v766_v7 = vpop.f32.mrf.mxu2 }
 0x1c3   : > { %v724_v8 = vpop.f32.mrf.mxu1  ;;  %v951_v36 = vpack.c.bf16 %v766_v7, %v764_v5  ;;  %v675_v61 = vpop.f32.mrf.mxu0 }
 0x1c4   : > { %v725_v24 = vadd.f32 %v2475_v15, %v724_v8  ;;  %v676_v4 = vadd.f32 %v2474_v53, %v675_v61  ;;  %v3028_v61 = vld [vmem:[%s3640_s10 + $0x18] sm:$0xff] }
 0x1ca   : > { %v769_v9 = vpop.f32.mrf.mxu2 }
 0x1cb   : > { %v726_v10 = vpop.f32.mrf.mxu1  ;;  %v677_v44 = vpop.f32.mrf.mxu0 }
 0x1cc   : > { %v727_v22 = vadd.f32 %v2475_v15, %v726_v10  ;;  %v678_v1 = vadd.f32 %v2474_v53, %v677_v44  ;;  %v2476_v10 = vld [vmem:[%s3636_s6 + $0x1] ss:$0 sm:$0xff] }
 0x1ce   : > { %v785_v29 = vpack.c.bf16 %v727_v22, %v725_v24  ;;  %v781_v6 = vpack.c.bf16 %v678_v1, %v676_v4  ;;  %v2478_v1 = vld [vmem:[%s3634_s4 + $0x1] ss:$0 sm:$0xff] }
 0x1d0   : > { %v807_v32 = vsel %vm787_vm11, %v785_v29, 0 }
 0x1d1   : > { %2261 = vmatmul.msk.bf16.gmra.mxu1 %vm404_vm0, %v2875_v30 }
 0x1d2   : > { %2277 = vmatmul.msk.bf16.gmra.mxu2 %vm404_vm0, %v2875_v30  ;;  %v771_v11 = vpop.f32.mrf.mxu2 }
 0x1d3   : > { %v952_v39 = vpack.c.bf16 %v771_v11, %v769_v9 }
 0x1e1   : > { %2262 = vmatmul.msk.bf16.gmra.mxu1 %vm404_vm0, %v2903_v0 }
 0x1e2   : > { %2278 = vmatmul.msk.bf16.gmra.mxu2 %vm404_vm0, %v2903_v0 }
 0x1f2   : > { %2312 = vmatmul.msk.bf16.vlgmr.msra.gmra.mxu2 %vm404_vm0, %v2845_v2 }
 0x202   : > { %2313 = vmatmul.msk.bf16.gmra.mxu2 %vm404_vm0, %v2861_v35 }
 0x212   : > { %2314 = vmatmul.msk.bf16.gmra.mxu2 %vm404_vm0, %v2875_v30 }
 0x21e   : > { %v729_v13 = vpop.f32.mrf.mxu1  ;;  %v680_v5 = vpop.f32.mrf.mxu0 }
 0x21f   : > { %v730_v18 = vadd.f32 %v2475_v15, %v729_v13 }
 0x222   : > { %2315 = vmatmul.msk.bf16.gmra.mxu2 %vm404_vm0, %v2903_v0 }
 0x225   : > { %v774_v16 = vpop.f32.mrf.mxu2 }
 0x226   : > { %v731_v17 = vpop.f32.mrf.mxu1  ;;  %v682_v9 = vpop.f32.mrf.mxu0 }
 0x227   : > { %v732_v40 = vadd.f32 %v2475_v15, %v731_v17  ;;  %v683_v13 = vadd.f32 %v2474_v53, %v682_v9  ;;  %v681_v17 = vadd.f32 %v2474_v53, %v680_v5  ;;  %v843_v53 = vld [vmem:[%s3639_s9 + $0x10] sm:$0xff]  ;;  %v845_v5 = vld [vmem:[%s3639_s9 + $0x20] sm:$0xff] }
 0x229   : > { %v786_v21 = vpack.c.bf16 %v732_v40, %v730_v18  ;;  %v782_v40 = vpack.c.bf16 %v683_v13, %v681_v17 }
 0x22b   : > { %v810_v23 = vsel %vm787_vm11, %v786_v21, 0 }
 0x22c   : > { %816 = vmatpush.bf16.xpose.msrb.mxu0 %v810_v23  ;;  %2459 = vmatpush.bf16.xpose.msra.mxu3 %v810_v23 }
 0x22d   : > { %v776_v26 = vpop.f32.mrf.mxu2 }
 0x22e   : > { %v953_v27 = vpack.c.bf16 %v776_v26, %v774_v16  ;;  %v2945_v28 = vpop.f32.mrf.mxu1 }
 0x230   : > { %1333 = vmatpush.bf16.msra.mxu1 %v953_v27 }
 0x234   : > { %1334 = vmatpush.bf16.msra.mxu1 %v952_v39  ;;  %817 = vmatpush.bf16.xpose.msrb.mxu0 %v807_v32 }
 0x235   : > { %2460 = vmatpush.bf16.xpose.msra.mxu3 %v807_v32  ;;  %v2948_v34 = vpop.f32.mrf.mxu2 }
 0x236   : > { %v2950_v38 = vpop.f32.mrf.mxu1 }
 0x238   : > { %1335 = vmatpush.bf16.msra.mxu1 %v951_v36  ;;  %v1039_v36 = vadd.f32 %v2476_v10, %v2950_v38  ;;  %v841_v38 = vld [vmem:[%s3639_s9] sm:$0xff] }
 0x23c   : > { %1336 = vmatpush.bf16.msra.mxu1 %v950_v42  ;;  %818 = vmatpush.bf16.xpose.msrb.mxu0 %v804_v45  ;;  %v1037_v42 = vadd.f32 %v2476_v10, %v2945_v28 }
 0x23d   : > { %2461 = vmatpush.bf16.xpose.msra.mxu3 %v804_v45  ;;  %v2953_v20 = vpop.f32.mrf.mxu2 }
 0x23e   : > { %v1041_v48 = vpop.f32.mrf.mxu1  ;;  %v1272_v33 = vpack.c.bf16 %v2953_v20, %v2948_v34  ;;  %v1106_v43 = vpack.c.bf16 %v1039_v36, %v1037_v42  ;;  %v2991_v34 = vld [vmem:[%s3640_s10] sm:$0xff]  ;;  %v3002_v20 = vld [vmem:[%s3640_s10 + $0x10] sm:$0xff] }
 0x23f   : > { %v1042_v52 = vadd.f32 %v2476_v10, %v1041_v48 }
 0x240   : > { %v1123_v45 = vsel %vm787_vm11, %v1106_v43, 0 }
 0x244   : > { %819 = vmatpush.bf16.xpose.msrb.mxu0 %v801_v55 }
 0x245   : > { %2462 = vmatpush.bf16.xpose.msra.mxu3 %v801_v55  ;;  %v1087_v25 = vpop.f32.mrf.mxu2 }
 0x246   : > { %v1043_v59 = vpop.f32.mrf.mxu1 }
 0x247   : > { %v1044_v29 = vadd.f32 %v2476_v10, %v1043_v59 }
 0x249   : > { %v1107_v32 = vpack.c.bf16 %v1044_v29, %v1042_v52 }
 0x24b   : > { %2225 = vmatmul.msk.bf16.vlgmr.msrb.gmra.mxu0 %vm787_vm11, %v779_v63  ;;  %v1126_v41 = vsel %vm787_vm11, %v1107_v32, 0  ;;  %v2454_v32 = vld [vmem:[%s3633_s3 + $0x38] sm:$0xff] }
 0x24c   : > { %982 = vmatpush.bf16.msra.mxu0 %v2442_v51  ;;  %2226 = vmatmul.msk.bf16.vlgmr.msra.gmra.mxu3 %vm787_vm11, %v780_v37  ;;  %v844_v37 = vld [vmem:[%s3639_s9 + $0x18] sm:$0xff] }
 0x24d   : > { %v1089_v50 = vpop.f32.mrf.mxu2 }
 0x24e   : > { %v1046_v12 = vpop.f32.mrf.mxu1  ;;  %v1273_v31 = vpack.c.bf16 %v1089_v50, %v1087_v25  ;;  %v842_v25 = vld [vmem:[%s3639_s9 + $0x8] sm:$0xff] }
 0x24f   : > { %v1047_v23 = vadd.f32 %v2476_v10, %v1046_v12 }
 0x250   : > { %983 = vmatpush.bf16.msra.mxu0 %v2441_v57 }
 0x255   : > { %v1092_v54 = vpop.f32.mrf.mxu2 }
 0x256   : > { %v1048_v3 = vpop.f32.mrf.mxu1 }
 0x257   : > { %v1049_v21 = vadd.f32 %v2476_v10, %v1048_v3  ;;  %v3046_v3 = vld [vmem:[%s3640_s10 + $0x20] sm:$0xff] }
 0x259   : > { %v1108_v26 = vpack.c.bf16 %v1049_v21, %v1047_v23 }
 0x25b   : > { %2242 = vmatmul.msk.bf16.vlgmr.msra.gmra.mxu0 %vm404_vm0, %v2845_v2  ;;  %v1129_v39 = vsel %vm787_vm11, %v1108_v26, 0 }
 0x25c   : > { %2227 = vmatmul.msk.bf16.gmra.mxu3 %vm787_vm11, %v781_v6 }
 0x25d   : > { %v1094_v7 = vpop.f32.mrf.mxu2 }
 0x25e   : > { %v1051_v8 = vpop.f32.mrf.mxu1  ;;  %v1274_v27 = vpack.c.bf16 %v1094_v7, %v1092_v54 }
 0x25f   : > { %v1052_v15 = vadd.f32 %v2476_v10, %v1051_v8 }
 0x265   : > { %v1097_v11 = vpop.f32.mrf.mxu2 }
 0x266   : > { %v1053_v14 = vpop.f32.mrf.mxu1 }
 0x267   : > { %v1054_v16 = vadd.f32 %v2476_v10, %v1053_v14 }
 0x269   : > { %v1109_v18 = vpack.c.bf16 %v1054_v16, %v1052_v15 }
 0x26b   : > { %2243 = vmatmul.msk.bf16.gmra.mxu0 %vm404_vm0, %v2861_v35  ;;  %v1132_v19 = vsel %vm787_vm11, %v1109_v18, 0 }
 0x26c   : > { %2228 = vmatmul.msk.bf16.gmra.mxu3 %vm787_vm11, %v782_v40  ;;  %v2450_v40 = vld [vmem:[%s3635_s5 + $0x28] sm:$0xff] }
 0x26d   : > { %v1099_v22 = vpop.f32.mrf.mxu2  ;;  %1138 = vmatpush.bf16.xpose.msrb.mxu3 %v1132_v19  ;;  %v2449_v19 = vld [vmem:[%s3635_s5 + $0x20] sm:$0xff] }
 0x26e   : > { %v1275_v24 = vpack.c.bf16 %v1099_v22, %v1097_v11 }
 0x270   : > { %1292 = vmatpush.bf16.msrb.mxu0 %v1275_v24 }
 0x274   : > { %1293 = vmatpush.bf16.msrb.mxu0 %v1274_v27 }
 0x275   : > { %1139 = vmatpush.bf16.xpose.msrb.mxu3 %v1129_v39 }
 0x278   : > { %1294 = vmatpush.bf16.msrb.mxu0 %v1273_v31 }
 0x27b   : > { %2244 = vmatmul.msk.bf16.gmra.mxu0 %vm404_vm0, %v2875_v30 }
 0x27c   : > { %1295 = vmatpush.bf16.msrb.mxu0 %v1272_v33  ;;  %v2453_v33 = vld [vmem:[%s3633_s3 + $0x30] sm:$0xff] }
 0x27d   : > { %1140 = vmatpush.bf16.xpose.msrb.mxu3 %v1126_v41 }
 0x285   : > { %1141 = vmatpush.bf16.xpose.msrb.mxu3 %v1123_v45  ;;  %v2283_v45 = vld [vmem:[%s3639_s9 + $0x40] sm:$0xff] }
 0x28b   : > { %2245 = vmatmul.msk.bf16.gmra.mxu0 %vm404_vm0, %v2903_v0 }
 0x28d   : > { %1437 = vmatpush.bf16.msra.mxu3 %v2450_v40  ;;  %v848_v40 = vld [vmem:[%s3639_s9 + $0x38] sm:$0xff] }
 0x291   : > { %1438 = vmatpush.bf16.msra.mxu3 %v2449_v19 }
 0x2c8   : > { %v821_v46 = vpop.f32.mrf.mxu0 }
 0x2c9   : > { %v822_v47 = vadd.f32 %v821_v46, %v2991_v34 }
 0x2cb   : > { %v2997_v28 = vadd.f32 %v841_v38, %v822_v47  ;;  %v3089_v38 = vld [vmem:[%s3640_s10 + $0x28] sm:$0xff] }
 0x2cd   : > { %v858_v48 = vsel %vm857_vm12, %v2997_v28, -inf }
 0x2ce   : > { %859 = vmax.xlane.f32.xlu1 %v858_v48 }
 0x2cf   : > { %v826_v51 = vpop.f32.mrf.mxu3 }
 0x2d0   : > { %v827_v55 = vadd.f32 %v826_v51, %v3002_v20  ;;  %v823_v56 = vpop.f32.mrf.mxu0 }
 0x2d1   : > { %v824_v57 = vadd.f32 %v823_v56, %v3009_v49  ;;  %v2284_v56 = vld [vmem:[%s3639_s9 + $0x48] sm:$0xff] }
 0x2d2   : > { %v3019_v58 = vadd.f32 %v843_v53, %v827_v55  ;;  %v846_v53 = vld [vmem:[%s3639_s9 + $0x28] sm:$0xff] }
 0x2d3   : > { %v3021_v59 = vadd.f32 %v842_v25, %v824_v57  ;;  %v3105_v25 = vld [vmem:[%s3640_s10 + $0x30] sm:$0xff] }
 0x2d4   : > { %v864_v60 = vsel %vm857_vm12, %v3019_v58, -inf }
 0x2d5   : > { %865 = vmax.xlane.f32.xlu0 %v864_v60  ;;  %v861_v62 = vsel %vm857_vm12, %v3021_v59, -inf }
 0x2d6   : > { %862 = vmax.xlane.f32.xlu2 %v861_v62 }
 0x2d7   : > { %v828_v63 = vpop.f32.mrf.mxu3 }
 0x2d8   : > { %v829_v50 = vadd.f32 %v828_v63, %v3028_v61  ;;  %v985_v12 = vpop.f32.mrf.mxu0 }
 0x2d9   : > { %v986_v8 = vadd.f32 %v2478_v1, %v985_v12 }
 0x2da   : > { %v3036_v44 = vadd.f32 %v844_v37, %v829_v50 }
 0x2dc   : > { %v867_v54 = vsel %vm857_vm12, %v3036_v44, -inf }
 0x2dd   : > { %868 = vmax.xlane.f32.xlu1 %v867_v54 }
 0x2df   : > { %v831_v4 = vpop.f32.mrf.mxu3 }
 0x2e0   : > { %v832_v6 = vadd.f32 %v831_v4, %v3046_v3  ;;  %v987_v7 = vpop.f32.mrf.mxu0 }
 0x2e1   : > { %v988_v9 = vadd.f32 %v2478_v1, %v987_v7 }
 0x2e2   : > { %v3052_v10 = vadd.f32 %v845_v5, %v832_v6 }
 0x2e3   : > { %v1102_v11 = vpack.c.bf16 %v988_v9, %v986_v8  ;;  %v3132_v9 = vld [vmem:[%s3640_s10 + $0x38] sm:$0xff] }
 0x2e4   : > { %v870_v13 = vsel %vm857_vm12, %v3052_v10, -inf }
 0x2e5   : > { %871 = vmax.xlane.f32.xlu1 %v870_v13  ;;  %2279 = vmatmul.msk.bf16.vlgmr.msrb.gmra.mxu3 %vm787_vm11, %v1102_v11 }
 0x2e6   : > { %1757 = vmatpush.bf16.msrb.mxu3 %v2454_v32 }
 0x2e7   : > { %v833_v36 = vpop.f32.mrf.mxu3 }
 0x2e8   : > { %v990_v14 = vpop.f32.mrf.mxu0  ;;  %v834_v48 = vadd.f32 %v833_v36, %v3089_v38 }
 0x2e9   : > { %v991_v16 = vadd.f32 %v2478_v1, %v990_v14 }
 0x2ea   : > { %1758 = vmatpush.bf16.msrb.mxu3 %v2453_v33  ;;  %v3108_v60 = vadd.f32 %v846_v53, %v834_v48  ;;  %v2288_v53 = vld [vmem:[%s3639_s9 + $0x68] sm:$0xff] }
 0x2ec   : > { %v873_v54 = vsel %vm857_vm12, %v3108_v60, -inf }
 0x2ef   : > { %v836_v41 = vpop.f32.mrf.mxu3 }
 0x2f0   : > { %v992_v15 = vpop.f32.mrf.mxu0  ;;  %v837_v37 = vadd.f32 %v836_v41, %v3105_v25 }
 0x2f1   : > { %v993_v17 = vadd.f32 %v2478_v1, %v992_v15 }
 0x2f3   : > { %v1103_v18 = vpack.c.bf16 %v993_v17, %v991_v16 }
 0x2f5   : > { %2280 = vmatmul.msk.bf16.gmra.mxu3 %vm787_vm11, %v1103_v18 }
 0x2f7   : > { %v838_v42 = vpop.f32.mrf.mxu3 }
 0x2f8   : > { %v995_v21 = vpop.f32.mrf.mxu0  ;;  %v839_v16 = vadd.f32 %v838_v42, %v3132_v9 }
 0x2f9   : > { %v996_v23 = vadd.f32 %v2478_v1, %v995_v21 }
 0x300   : > { %v997_v22 = vpop.f32.mrf.mxu0 }
 0x301   : > { %v998_v24 = vadd.f32 %v2478_v1, %v997_v22 }
 0x303   : > { %v1104_v26 = vpack.c.bf16 %v998_v24, %v996_v23  ;;  %v3150_v24 = vadd.f32 %v848_v40, %v839_v16 }
 0x305   : > { %2281 = vmatmul.msk.bf16.gmra.mxu3 %vm787_vm11, %v1104_v26 }
 0x308   : > { %v1000_v27 = vpop.f32.mrf.mxu0 }
 0x309   : > { %v1001_v39 = vadd.f32 %v2478_v1, %v1000_v27 }
 0x310   : > { %v1002_v29 = vpop.f32.mrf.mxu0 }
 0x311   : > { %v1003_v52 = vadd.f32 %v2478_v1, %v1002_v29  ;;  %v847_v1 = vld [vmem:[%s3639_s9 + $0x30] sm:$0xff] }
 0x312   : > { %v3126_v5 = vadd.f32 %v847_v1, %v837_v37 }
 0x313   : > { %v1105_v31 = vpack.c.bf16 %v1003_v52, %v1001_v39  ;;  %v879_v52 = vsel %vm857_vm12, %v3150_v24, -inf }
 0x314   : > { %v876_v15 = vsel %vm857_vm12, %v3126_v5, -inf }
 0x315   : > { %2282 = vmatmul.msk.bf16.gmra.mxu3 %vm787_vm11, %v1105_v31 }
 0x325   : > { %2329 = vmatmul.msk.bf16.vlgmr.msra.gmra.mxu3 %vm404_vm0, %v2845_v2 }
 0x335   : > { %2330 = vmatmul.msk.bf16.gmra.mxu3 %vm404_vm0, %v2861_v35 }
 0x341   : > { %v860_v6 = vpop.xlane.xlu1 %859 }
 0x342   : > { %v882_v14 = vsub.f32 %v2997_v28, %v860_v6  ;;  %v2286_v28 = vld [vmem:[%s3639_s9 + $0x58] sm:$0xff] }
 0x344   : > { %v890_v19 = vmul.f32 1.442695, %v882_v14 }
 0x345   : > { %2331 = vmatmul.msk.bf16.gmra.mxu3 %vm404_vm0, %v2875_v30 }
 0x348   : > { %v866_v11 = vpop.xlane.xlu0 %865 }
 0x349   : > { %v863_v62 = vpop.xlane.xlu2 %862  ;;  %v884_v17 = vsub.f32 %v3019_v58, %v866_v11  ;;  %v2290_v11 = vld [vmem:[%s3639_s9 + $0x78] sm:$0xff] }
 0x34a   : > { %v883_v50 = vsub.f32 %v3021_v59, %v863_v62  ;;  %v2285_v59 = vld [vmem:[%s3639_s9 + $0x50] sm:$0xff] }
 0x34b   : > { %v894_v22 = vmul.f32 1.442695, %v884_v17 }
 0x34c   : > { %v892_v7 = vmul.f32 1.442695, %v883_v50 }
 0x34e   : > { %2501 = vpow2.f32 %v892_v7 }
 0x34f   : > { %2503 = vpow2.f32 %v890_v19 }
 0x350   : > { %v869_v23 = vpop.xlane.xlu1 %868  ;;  %2505 = vpow2.f32 %v894_v22 }
 0x351   : > { %v885_v29 = vsub.f32 %v3036_v44, %v869_v23  ;;  %v2287_v44 = vld [vmem:[%s3639_s9 + $0x60] sm:$0xff] }
 0x353   : > { %v896_v32 = vmul.f32 1.442695, %v885_v29 }
 0x354   : > { %v3152_v26 = vpop.eup %2501 }
 0x355   : > { %2332 = vmatmul.msk.bf16.gmra.mxu3 %vm404_vm0, %v2903_v0  ;;  %v909_v31 = vsel %vm857_vm12, %v3152_v26, 0.0  ;;  %v3169_v41 = vpop.eup %2503  ;;  %2507 = vpow2.f32 %v896_v32 }
 0x356   : > { %v3171_v42 = vpop.eup %2505 }
 0x357   : > { %v912_v48 = vsel %vm857_vm12, %v3171_v42, 0.0 }
 0x365   : > { %2378 = vmatmul.msk.bf16.vlgmr.msrb.gmra.mxu3 %vm404_vm0, %v2845_v2 }
 0x368   : > { %v1143_v43 = vpop.f32.mrf.mxu3 }
 0x369   : > { %v1144_v46 = vadd.f32 %v1143_v43, %v2991_v34 }
 0x36b   : > { %v3091_v47 = vadd.f32 %v2283_v45, %v1144_v46  ;;  %v906_v45 = vsel %vm857_vm12, %v3169_v41, 0.0 }
 0x36d   : > { %v1180_v51 = vsel %vm857_vm12, %v3091_v47, -inf }
 0x36e   : > { %1181 = vmax.xlane.f32.xlu2 %v1180_v51 }
 0x370   : > { %v1145_v55 = vpop.f32.mrf.mxu3 }
 0x371   : > { %v1146_v57 = vadd.f32 %v1145_v55, %v3009_v49 }
 0x373   : > { %v3110_v63 = vadd.f32 %v2284_v56, %v1146_v57  ;;  %v3185_v56 = vpop.eup %2507 }
 0x374   : > { %v915_v37 = vsel %vm857_vm12, %v3185_v56, 0.0 }
 0x375   : > { %2379 = vmatmul.msk.bf16.gmra.mxu3 %vm404_vm0, %v2861_v35  ;;  %v1183_v12 = vsel %vm857_vm12, %v3110_v63, -inf }
 0x376   : > { %1184 = vmax.xlane.f32.xlu0 %v1183_v12  ;;  %874 = vmax.xlane.f32.xlu2 %v873_v54  ;;  %v2289_v12 = vld [vmem:[%s3639_s9 + $0x70] sm:$0xff]  ;;  %v872_v54 = vpop.xlane.xlu1 %871 }
 0x378   : > { %v1148_v4 = vpop.f32.mrf.mxu3 }
 0x379   : > { %v1149_v8 = vadd.f32 %v1148_v4, %v3002_v20 }
 0x37b   : > { %v3134_v13 = vadd.f32 %v2285_v59, %v1149_v8  ;;  %v886_v59 = vsub.f32 %v3052_v10, %v872_v54 }
 0x37d   : > { %v1186_v18 = vsel %vm857_vm12, %v3134_v13, -inf  ;;  %v898_v7 = vmul.f32 1.442695, %v886_v59 }
 0x37e   : > { %1187 = vmax.xlane.f32.xlu0 %v1186_v18  ;;  %877 = vmax.xlane.f32.xlu2 %v876_v15  ;;  %v2479_v18 = vld [vmem:[%s3636_s6 + $0x2] ss:$0 sm:$0xff] }
 0x37f   : > { %2509 = vpow2.f32 %v898_v7 }
 0x380   : > { %v1150_v21 = vpop.f32.mrf.mxu3 }
 0x381   : > { %v1151_v58 = vadd.f32 %v1150_v21, %v3028_v61 }
 0x383   : > { %v3154_v27 = vadd.f32 %v2286_v28, %v1151_v58 }
 0x385   : > { %2380 = vmatmul.msk.bf16.gmra.mxu3 %vm404_vm0, %v2875_v30  ;;  %v1189_v39 = vsel %vm857_vm12, %v3154_v27, -inf  ;;  %v3212_v17 = vpop.eup %2509 }
 0x386   : > { %1190 = vmax.xlane.f32.xlu1 %v1189_v39  ;;  %880 = vmax.xlane.f32.xlu0 %v879_v52  ;;  %v918_v40 = vsel %vm857_vm12, %v3212_v17, 0.0 }
 0x387   : > { %910 = vadd.xlane.f32.xlu2 %v909_v31 }
 0x388   : > { %v1153_v33 = vpop.f32.mrf.mxu3 }
 0x389   : > { %v1154_v36 = vadd.f32 %v1153_v33, %v3046_v3 }
 0x38b   : > { %v3173_v43 = vadd.f32 %v2287_v44, %v1154_v36 }
 0x38d   : > { %v1192_v46 = vsel %vm857_vm12, %v3173_v43, -inf }
 0x38e   : > { %907 = vadd.xlane.f32.xlu1 %v906_v45  ;;  %1193 = vmax.xlane.f32.xlu0 %v1192_v46 }
 0x38f   : > { %913 = vadd.xlane.f32.xlu2 %v912_v48 }
 0x390   : > { %v1155_v51 = vpop.f32.mrf.mxu3 }
 0x391   : > { %v1156_v55 = vadd.f32 %v1155_v51, %v3089_v38 }
 0x393   : > { %v3187_v57 = vadd.f32 %v2288_v53, %v1156_v55 }
 0x395   : > { %2381 = vmatmul.msk.bf16.gmra.mxu3 %vm404_vm0, %v2903_v0  ;;  %v1195_v62 = vsel %vm857_vm12, %v3187_v57, -inf }
 0x396   : > { %1196 = vmax.xlane.f32.xlu1 %v1195_v62  ;;  %916 = vadd.xlane.f32.xlu0 %v915_v37 }
 0x398   : > { %v1158_v50 = vpop.f32.mrf.mxu3 }
 0x399   : > { %v1159_v1 = vadd.f32 %v1158_v50, %v3105_v25 }
 0x39b   : > { %v3199_v4 = vadd.f32 %v2289_v12, %v1159_v1 }
 0x39d   : > { %v1198_v6 = vsel %vm857_vm12, %v3199_v4, -inf }
 0x39e   : > { %1199 = vmax.xlane.f32.xlu1 %v1198_v6 }
 0x3a0   : > { %v1160_v8 = vpop.f32.mrf.mxu3 }
 0x3a1   : > { %v1161_v14 = vadd.f32 %v1160_v8, %v3132_v9 }
 0x3a3   : > { %v3208_v15 = vadd.f32 %v2290_v11, %v1161_v14 }
 0x3a5   : > { %v1201_v16 = vsel %vm857_vm12, %v3208_v15, -inf }
 0x3a6   : > { %1202 = vmax.xlane.f32.xlu2 %v1201_v16 }
 0x3a8   : > { %v1440_v10 = vpop.f32.mrf.mxu3 }
 0x3a9   : > { %v3219_v21 = vadd.f32 %v2479_v18, %v1440_v10 }
 0x3ae   : > { %919 = vadd.xlane.f32.xlu2 %v918_v40 }
 0x3b0   : > { %v1442_v19 = vpop.f32.mrf.mxu3 }
 0x3b1   : > { %v1443_v28 = vadd.f32 %v2479_v18, %v1442_v19 }
 0x3b3   : > { %v1510_v22 = vpack.c.bf16 %v1443_v28, %v3219_v21 }
 0x3b8   : > { %v1445_v23 = vpop.f32.mrf.mxu3 }
 0x3b9   : > { %v1446_v8 = vadd.f32 %v2479_v18, %v1445_v23 }
 0x3c0   : > { %v1447_v58 = vpop.f32.mrf.mxu3 }
 0x3c8   : > { %v1450_v29 = vpop.f32.mrf.mxu3 }
 0x3c9   : > { %v1451_v53 = vadd.f32 %v2479_v18, %v1450_v29 }
 0x3d0   : > { %v1452_v39 = vpop.f32.mrf.mxu3 }
 0x3d1   : > { %v1453_v48 = vadd.f32 %v2479_v18, %v1452_v39 }
 0x3d3   : > { %v1512_v55 = vpack.c.bf16 %v1453_v48, %v1451_v53 }
 0x3d5   : > { %v1533_v6 = vsel %vm787_vm11, %v1512_v55, 0 }
 0x3d8   : > { %v1455_v52 = vpop.f32.mrf.mxu3 }
 0x3d9   : > { %v1456_v32 = vadd.f32 %v2479_v18, %v1455_v52 }
 0x3e0   : > { %v1457_v31 = vpop.f32.mrf.mxu3 }
 0x3e1   : > { %v1458_v33 = vadd.f32 %v2479_v18, %v1457_v31  ;;  %v1182_v44 = vpop.xlane.xlu2 %1181 }
 0x3e2   : > { %v1204_v36 = vsub.f32 %v3091_v47, %v1182_v44  ;;  %v1448_v47 = vadd.f32 %v2479_v18, %v1447_v58  ;;  %v1527_v44 = vsel %vm787_vm11, %v1510_v22, 0 }
 0x3e3   : > { %v1513_v45 = vpack.c.bf16 %v1458_v33, %v1456_v32 }
 0x3e4   : > { %v1212_v46 = vmul.f32 1.442695, %v1204_v36  ;;  %v1511_v11 = vpack.c.bf16 %v1448_v47, %v1446_v8 }
 0x3e5   : > { %v1536_v51 = vsel %vm787_vm11, %v1513_v45, 0 }
 0x3e6   : > { %2511 = vpow2.f32 %v1212_v46  ;;  %1542 = vmatpush.bf16.xpose.msrb.mxu1 %v1536_v51  ;;  %v1530_v28 = vsel %vm787_vm11, %v1511_v11, 0 }
 0x3e9   : > { %v1185_v62 = vpop.xlane.xlu0 %1184  ;;  %v875_v37 = vpop.xlane.xlu2 %874 }
 0x3ea   : > { %v1205_v50 = vsub.f32 %v3110_v63, %v1185_v62  ;;  %v887_v12 = vsub.f32 %v3108_v60, %v875_v37 }
 0x3ec   : > { %v3226_v54 = vpop.eup %2511  ;;  %v1214_v1 = vmul.f32 1.442695, %v1205_v50  ;;  %v900_v59 = vmul.f32 1.442695, %v887_v12 }
 0x3ed   : > { %v1228_v7 = vsel %vm857_vm12, %v3226_v54, 0.0 }
 0x3ee   : > { %2513 = vpow2.f32 %v1214_v1  ;;  %1543 = vmatpush.bf16.xpose.msrb.mxu1 %v1533_v6  ;;  %1229 = vadd.xlane.f32.xlu0 %v1228_v7 }
 0x3ef   : > { %2515 = vpow2.f32 %v900_v59 }
 0x3f1   : > { %v1188_v14 = vpop.xlane.xlu0 %1187  ;;  %v878_v63 = vpop.xlane.xlu2 %877 }
 0x3f2   : > { %v1206_v60 = vsub.f32 %v3134_v13, %v1188_v14  ;;  %v888_v16 = vsub.f32 %v3126_v5, %v878_v63 }
 0x3f4   : > { %v3233_v10 = vpop.eup %2513  ;;  %v1216_v40 = vmul.f32 1.442695, %v1206_v60  ;;  %v902_v19 = vmul.f32 1.442695, %v888_v16 }
 0x3f5   : > { %v3235_v21 = vpop.eup %2515  ;;  %v1231_v58 = vsel %vm857_vm12, %v3233_v10, 0.0 }
 0x3f6   : > { %2517 = vpow2.f32 %v1216_v40  ;;  %1544 = vmatpush.bf16.xpose.msrb.mxu1 %v1530_v28  ;;  %1232 = vadd.xlane.f32.xlu1 %v1231_v58  ;;  %v921_v18 = vsel %vm857_vm12, %v3235_v21, 0.0 }
 0x3f7   : > { %2519 = vpow2.f32 %v902_v19  ;;  %922 = vadd.xlane.f32.xlu0 %v921_v18 }
 0x3f9   : > { %v1191_v5 = vpop.xlane.xlu1 %1190  ;;  %v881_v13 = vpop.xlane.xlu0 %880 }
 0x3fa   : > { %v1207_v23 = vsub.f32 %v3154_v27, %v1191_v5  ;;  %v889_v29 = vsub.f32 %v3150_v24, %v881_v13  ;;  %v911_v33 = vpop.xlane.xlu2 %910 }
 0x3fc   : > { %v3244_v39 = vpop.eup %2517  ;;  %v1218_v52 = vmul.f32 1.442695, %v1207_v23  ;;  %v904_v31 = vmul.f32 1.442695, %v889_v29 }
 0x3fd   : > { %v3246_v32 = vpop.eup %2519  ;;  %v1234_v36 = vsel %vm857_vm12, %v3244_v39, 0.0 }
 0x3fe   : > { %2521 = vpow2.f32 %v1218_v52  ;;  %1545 = vmatpush.bf16.xpose.msrb.mxu1 %v1527_v44  ;;  %1235 = vadd.xlane.f32.xlu1 %v1234_v36  ;;  %v924_v27 = vsel %vm857_vm12, %v3246_v32, 0.0 }
 0x3ff   : > { %2523 = vpow2.f32 %v904_v31  ;;  %925 = vadd.xlane.f32.xlu0 %v924_v27 }
 0x400   : > { %2525 = vrcp.f32 %v911_v33 }
 0x401   : > { %v908_v24 = vpop.xlane.xlu1 %907  ;;  %v1194_v45 = vpop.xlane.xlu0 %1193 }
 0x402   : > { %2527 = vrcp.f32 %v908_v24  ;;  %v1208_v46 = vsub.f32 %v3173_v43, %v1194_v45  ;;  %v914_v8 = vpop.xlane.xlu2 %913 }
 0x404   : > { %v3254_v48 = vpop.eup %2521  ;;  %v1220_v22 = vmul.f32 1.442695, %v1208_v46 }
 0x405   : > { %v3256_v51 = vpop.eup %2523  ;;  %v1237_v53 = vsel %vm857_vm12, %v3254_v48, 0.0 }
 0x406   : > { %v2526_v55 = vpop.eup %2525  ;;  %2529 = vpow2.f32 %v1220_v22  ;;  %v927_v62 = vsel %vm857_vm12, %v3256_v51, 0.0  ;;  %1238 = vadd.xlane.f32.xlu2 %v1237_v53 }
 0x407   : > { %928 = vadd.xlane.f32.xlu1 %v927_v62  ;;  %v939_v50 = vmul.f32 %v2526_v55, %v3152_v26 }
 0x408   : > { %v2528_v37 = vpop.eup %2527 }
 0x409   : > { %v938_v43 = vmul.f32 %v2528_v37, %v3169_v41  ;;  %v1197_v12 = vpop.xlane.xlu1 %1196  ;;  %v917_v59 = vpop.xlane.xlu0 %916 }
 0x40a   : > { %v1209_v1 = vsub.f32 %v3187_v57, %v1197_v12  ;;  %2531 = vrcp.f32 %v917_v59  ;;  %v1389_v37 = vpop.f32.mrf.mxu2 }
 0x40b   : > { %v946_v47 = vpack.c.bf16 %v939_v50, %v938_v43 }
 0x40c   : > { %v3265_v6 = vpop.eup %2529  ;;  %v1222_v7 = vmul.f32 1.442695, %v1209_v1 }
 0x40d   : > { %2295 = vmatmul.msk.bf16.vlgmr.msra.gmra.mxu1 %vm857_vm12, %v946_v47  ;;  %v1240_v11 = vsel %vm857_vm12, %v3265_v6, 0.0 }
 0x40e   : > { %2533 = vpow2.f32 %v1222_v7  ;;  %1241 = vadd.xlane.f32.xlu2 %v1240_v11 }
 0x40f   : > { %2535 = vrcp.f32 %v914_v8 }
 0x410   : > { %v2532_v14 = vpop.eup %2531 }
 0x411   : > { %v1200_v26 = vpop.xlane.xlu1 %1199  ;;  %v941_v40 = vmul.f32 %v2532_v14, %v3185_v56  ;;  %v2477_v14 = vld [vmem:[%s3634_s4 + $0x2] ss:$0 sm:$0xff] }
 0x412   : > { %v1210_v41 = vsub.f32 %v3199_v4, %v1200_v26  ;;  %v1391_v1 = vpop.f32.mrf.mxu2 }
 0x414   : > { %v3271_v57 = vpop.eup %2533  ;;  %v1224_v63 = vmul.f32 1.442695, %v1210_v41  ;;  %v2452_v41 = vld [vmem:[%s3637_s7 + $0x28] sm:$0xff] }
 0x415   : > { %v1243_v60 = vsel %vm857_vm12, %v3271_v57, 0.0  ;;  %v2536_v16 = vpop.eup %2535  ;;  %1483 = vmatpush.bf16.msra.mxu0 %v2452_v41 }
 0x416   : > { %2537 = vpow2.f32 %v1224_v63  ;;  %1244 = vadd.xlane.f32.xlu0 %v1243_v60  ;;  %v940_v28 = vmul.f32 %v2536_v16, %v3171_v42  ;;  %v1392_v60 = vadd.f32 %v2477_v14, %v1391_v1 }
 0x418   : > { %v947_v18 = vpack.c.bf16 %v941_v40, %v940_v28 }
 0x419   : > { %v1203_v19 = vpop.xlane.xlu2 %1202 }
 0x41a   : > { %v1211_v58 = vsub.f32 %v3208_v15, %v1203_v19  ;;  %v1390_v19 = vadd.f32 %v2477_v14, %v1389_v37 }
 0x41c   : > { %v3278_v5 = vpop.eup %2537  ;;  %v1226_v4 = vmul.f32 1.442695, %v1211_v58  ;;  %v1506_v58 = vpack.c.bf16 %v1392_v60, %v1390_v19  ;;  %v2354_v60 = vld [vmem:[%s3639_s9 + $0x88] sm:$0xff] }
 0x41d   : > { %2296 = vmatmul.msk.bf16.gmra.mxu1 %vm857_vm12, %v947_v18  ;;  %v1246_v13 = vsel %vm857_vm12, %v3278_v5, 0.0 }
 0x41e   : > { %2539 = vpow2.f32 %v1226_v4  ;;  %1247 = vadd.xlane.f32.xlu1 %v1246_v13 }
 0x421   : > { %v920_v29 = vpop.xlane.xlu2 %919 }
 0x424   : > { %v3283_v23 = vpop.eup %2539 }
 0x425   : > { %v1249_v56 = vsel %vm857_vm12, %v3283_v23, 0.0 }
 0x426   : > { %1250 = vadd.xlane.f32.xlu2 %v1249_v56 }
 0x461   : > { %v1230_v42 = vpop.xlane.xlu0 %1229 }
 0x462   : > { %2541 = vrcp.f32 %v1230_v42 }
 0x463   : > { %2543 = vrcp.f32 %v920_v29 }
 0x468   : > { %v2542_v31 = vpop.eup %2541 }
 0x469   : > { %v1233_v15 = vpop.xlane.xlu1 %1232  ;;  %v2544_v33 = vpop.eup %2543  ;;  %v1260_v27 = vmul.f32 %v2542_v31, %v3226_v54 }
 0x46a   : > { %2545 = vrcp.f32 %v1233_v15  ;;  %v923_v52 = vpop.xlane.xlu0 %922  ;;  %v942_v46 = vmul.f32 %v2544_v33, %v3212_v17 }
 0x46b   : > { %2547 = vrcp.f32 %v923_v52 }
 0x470   : > { %v2546_v44 = vpop.eup %2545 }
 0x471   : > { %v2548_v36 = vpop.eup %2547  ;;  %v1261_v24 = vmul.f32 %v2546_v44, %v3233_v10  ;;  %v1236_v45 = vpop.xlane.xlu1 %1235  ;;  %v2458_v44 = vld [vmem:[%s3637_s7 + $0x38] sm:$0xff] }
 0x472   : > { %v943_v22 = vmul.f32 %v2548_v36, %v3235_v21  ;;  %v926_v62 = vpop.xlane.xlu0 %925  ;;  %2549 = vrcp.f32 %v1236_v45  ;;  %1854 = vmatpush.bf16.msra.mxu1 %v2458_v44  ;;  %v2457_v36 = vld [vmem:[%s3637_s7 + $0x30] sm:$0xff] }
 0x473   : > { %v1268_v53 = vpack.c.bf16 %v1261_v24, %v1260_v27  ;;  %2551 = vrcp.f32 %v926_v62  ;;  %v2456_v62 = vld [vmem:[%s3635_s5 + $0x38] sm:$0xff] }
 0x474   : > { %v948_v55 = vpack.c.bf16 %v943_v22, %v942_v46 }
 0x475   : > { %2291 = vmatmul.msk.bf16.vlgmr.msrb.gmra.mxu0 %vm857_vm12, %v1268_v53 }
 0x476   : > { %2297 = vmatmul.msk.bf16.gmra.mxu1 %vm857_vm12, %v948_v55 }
 0x477   : > { %1855 = vmatpush.bf16.msra.mxu1 %v2457_v36 }
 0x478   : > { %v2550_v54 = vpop.eup %2549 }
 0x479   : > { %v1239_v50 = vpop.xlane.xlu2 %1238  ;;  %v2552_v10 = vpop.eup %2551  ;;  %v1262_v21 = vmul.f32 %v2550_v54, %v3244_v39  ;;  %v2451_v39 = vld [vmem:[%s3637_s7 + $0x20] sm:$0xff] }
 0x47a   : > { %v929_v43 = vpop.xlane.xlu1 %928  ;;  %2553 = vrcp.f32 %v1239_v50  ;;  %v944_v47 = vmul.f32 %v2552_v10, %v3246_v32  ;;  %1484 = vmatpush.bf16.msra.mxu0 %v2451_v39  ;;  %v2455_v50 = vld [vmem:[%s3635_s5 + $0x30] sm:$0xff]  ;;  %v2353_v39 = vld [vmem:[%s3639_s9 + $0x80] sm:$0xff] }
 0x47b   : > { %2555 = vrcp.f32 %v929_v43 }
 0x47e   : > { %1808 = vmatpush.bf16.msrb.mxu0 %v2456_v62 }
 0x480   : > { %v2554_v12 = vpop.eup %2553 }
 0x481   : > { %v2556_v17 = vpop.eup %2555  ;;  %v1263_v59 = vmul.f32 %v2554_v12, %v3254_v48  ;;  %v1242_v26 = vpop.xlane.xlu2 %1241 }
 0x482   : > { %v945_v7 = vmul.f32 %v2556_v17, %v3256_v51  ;;  %2557 = vrcp.f32 %v1242_v26  ;;  %v1394_v48 = vpop.f32.mrf.mxu2  ;;  %1809 = vmatpush.bf16.msrb.mxu0 %v2455_v50  ;;  %v2360_v50 = vld [vmem:[%s3639_s9 + $0xb8] sm:$0xff] }
 0x483   : > { %v1269_v8 = vpack.c.bf16 %v1263_v59, %v1262_v21  ;;  %v1395_v52 = vadd.f32 %v2477_v14, %v1394_v48 }
 0x484   : > { %v949_v11 = vpack.c.bf16 %v945_v7, %v944_v47 }
 0x485   : > { %2292 = vmatmul.msk.bf16.gmra.mxu0 %vm857_vm12, %v1269_v8 }
 0x486   : > { %2298 = vmatmul.msk.bf16.gmra.mxu1 %vm857_vm12, %v949_v11 }
 0x488   : > { %v2558_v51 = vpop.eup %2557 }
 0x489   : > { %v1245_v32 = vpop.xlane.xlu0 %1244  ;;  %v1264_v16 = vmul.f32 %v2558_v51, %v3265_v6 }
 0x48a   : > { %2559 = vrcp.f32 %v1245_v32  ;;  %v1396_v18 = vpop.f32.mrf.mxu2  ;;  %v3331_v37 = vpop.f32.mrf.mxu1 }
 0x48b   : > { %v1397_v15 = vadd.f32 %v2477_v14, %v1396_v18 }
 0x48d   : > { %v1507_v33 = vpack.c.bf16 %v1397_v15, %v1395_v52  ;;  %v2357_v52 = vld [vmem:[%s3639_s9 + $0xa0] sm:$0xff] }
 0x490   : > { %v2560_v63 = vpop.eup %2559 }
 0x491   : > { %v1265_v40 = vmul.f32 %v2560_v63, %v3271_v57  ;;  %v1248_v4 = vpop.xlane.xlu1 %1247 }
 0x492   : > { %2561 = vrcp.f32 %v1248_v4  ;;  %v1399_v42 = vpop.f32.mrf.mxu2  ;;  %v3340_v43 = vpop.f32.mrf.mxu1 }
 0x493   : > { %v1270_v28 = vpack.c.bf16 %v1265_v40, %v1264_v16 }
 0x495   : > { %2293 = vmatmul.msk.bf16.gmra.mxu0 %vm857_vm12, %v1270_v28 }
 0x496   : > { %2349 = vmatmul.msk.bf16.vlgmr.msrb.gmra.mxu1 %vm787_vm11, %v1506_v58  ;;  %v2355_v58 = vld [vmem:[%s3639_s9 + $0x90] sm:$0xff] }
 0x498   : > { %v2562_v56 = vpop.eup %2561 }
 0x499   : > { %v1251_v13 = vpop.xlane.xlu2 %1250  ;;  %v1266_v6 = vmul.f32 %v2562_v56, %v3278_v5 }
 0x49a   : > { %2563 = vrcp.f32 %v1251_v13  ;;  %v1401_v27 = vpop.f32.mrf.mxu2  ;;  %v3342_v54 = vpop.f32.mrf.mxu1 }
 0x49b   : > { %v1402_v5 = vadd.f32 %v2477_v14, %v1401_v27  ;;  %v2358_v27 = vld [vmem:[%s3639_s9 + $0xa8] sm:$0xff] }
 0x4a0   : > { %v2564_v29 = vpop.eup %2563 }
 0x4a1   : > { %v1267_v57 = vmul.f32 %v2564_v29, %v3283_v23  ;;  %v1400_v23 = vadd.f32 %v2477_v14, %v1399_v42  ;;  %v2356_v29 = vld [vmem:[%s3639_s9 + $0x98] sm:$0xff] }
 0x4a2   : > { %v1404_v24 = vpop.f32.mrf.mxu2  ;;  %v1345_v10 = vpop.f32.mrf.mxu1 }
 0x4a3   : > { %v1271_v31 = vpack.c.bf16 %v1267_v57, %v1266_v6  ;;  %v1508_v45 = vpack.c.bf16 %v1402_v5, %v1400_v23  ;;  %v1405_v53 = vadd.f32 %v2477_v14, %v1404_v24 }
 0x4a5   : > { %2294 = vmatmul.msk.bf16.gmra.mxu0 %vm857_vm12, %v1271_v31 }
 0x4a6   : > { %2350 = vmatmul.msk.bf16.gmra.mxu1 %vm787_vm11, %v1507_v33 }
 0x4aa   : > { %v1406_v46 = vpop.f32.mrf.mxu2 }
 0x4ab   : > { %v1407_v22 = vadd.f32 %v2477_v14, %v1406_v46  ;;  %v2359_v46 = vld [vmem:[%s3639_s9 + $0xb0] sm:$0xff] }
 0x4ad   : > { %v1509_v55 = vpack.c.bf16 %v1407_v22, %v1405_v53 }
 0x4b5   : > { %2345 = vmatmul.msk.bf16.vlgmr.msra.gmra.mxu0 %vm404_vm0, %v2845_v2 }
 0x4b6   : > { %2351 = vmatmul.msk.bf16.gmra.mxu1 %vm787_vm11, %v1508_v45 }
 0x4c5   : > { %2346 = vmatmul.msk.bf16.gmra.mxu0 %vm404_vm0, %v2861_v35 }
 0x4c6   : > { %2352 = vmatmul.msk.bf16.gmra.mxu1 %vm787_vm11, %v1509_v55 }
 0x4d5   : > { %2347 = vmatmul.msk.bf16.gmra.mxu0 %vm404_vm0, %v2875_v30 }
 0x4d6   : > { %2411 = vmatmul.msk.bf16.vlgmr.msra.gmra.mxu1 %vm404_vm0, %v2845_v2 }
 0x4e5   : > { %2348 = vmatmul.msk.bf16.gmra.mxu0 %vm404_vm0, %v2903_v0 }
 0x4e6   : > { %2412 = vmatmul.msk.bf16.gmra.mxu1 %vm404_vm0, %v2861_v35 }
 0x4f2   : > { %v3348_v12 = vpop.f32.mrf.mxu0 }
 0x4f3   : > { %v1348_v17 = vpop.f32.mrf.mxu1 }
 0x4f5   : > { %2395 = vmatmul.msk.bf16.vlgmr.msrb.gmra.mxu0 %vm404_vm0, %v2845_v2 }
 0x4f6   : > { %2413 = vmatmul.msk.bf16.gmra.mxu1 %vm404_vm0, %v2875_v30 }
 0x4fa   : > { %v3354_v1 = vpop.f32.mrf.mxu0 }
 0x4fb   : > { %v1350_v21 = vpop.f32.mrf.mxu1 }
 0x502   : > { %v3356_v59 = vpop.f32.mrf.mxu0 }
 0x503   : > { %v1353_v47 = vpop.f32.mrf.mxu1 }
 0x505   : > { %2396 = vmatmul.msk.bf16.gmra.mxu0 %vm404_vm0, %v2861_v35 }
 0x506   : > { %2414 = vmatmul.msk.bf16.gmra.mxu1 %vm404_vm0, %v2903_v0 }
 0x50a   : > { %v1304_v7 = vpop.f32.mrf.mxu0 }
 0x50b   : > { %v3362_v8 = vadd.f32 %v1345_v10, %v1304_v7  ;;  %v1355_v11 = vpop.f32.mrf.mxu1 }
 0x512   : > { %v1307_v2 = vpop.f32.mrf.mxu0 }
 0x513   : > { %v3364_v26 = vadd.f32 %v1348_v17, %v1307_v2  ;;  %v1547_v41 = vpop.f32.mrf.mxu1 }
 0x514   : > { %v1548_v32 = vadd.f32 %v1547_v41, %v2991_v34 }
 0x515   : > { %2397 = vmatmul.msk.bf16.gmra.mxu0 %vm404_vm0, %v2875_v30 }
 0x516   : > { %v3372_v35 = vadd.f32 %v2353_v39, %v1548_v32 }
 0x518   : > { %v1584_v48 = vsel %vm857_vm12, %v3372_v35, -inf }
 0x519   : > { %1585 = vmax.xlane.f32.xlu0 %v1584_v48 }
 0x51a   : > { %v1309_v51 = vpop.f32.mrf.mxu0 }
 0x51b   : > { %v3376_v14 = vadd.f32 %v1350_v21, %v1309_v51  ;;  %v1549_v63 = vpop.f32.mrf.mxu1 }
 0x51c   : > { %v1550_v16 = vadd.f32 %v1549_v63, %v3009_v49 }
 0x51e   : > { %v3382_v34 = vadd.f32 %v2354_v60, %v1550_v16 }
 0x520   : > { %v1587_v30 = vsel %vm857_vm12, %v3382_v34, -inf }
 0x521   : > { %1588 = vmax.xlane.f32.xlu1 %v1587_v30  ;;  %v3443_v30 = vld [vmem:[%s3636_s6 + $0x3] ss:$0 sm:$0xff] }
 0x522   : > { %v1312_v40 = vpop.f32.mrf.mxu0 }
 0x523   : > { %v3386_v19 = vadd.f32 %v1353_v47, %v1312_v40  ;;  %v1552_v28 = vpop.f32.mrf.mxu1 }
 0x524   : > { %v1553_v18 = vadd.f32 %v1552_v28, %v3002_v20 }
 0x525   : > { %2398 = vmatmul.msk.bf16.gmra.mxu0 %vm404_vm0, %v2903_v0 }
 0x526   : > { %v3394_v49 = vadd.f32 %v2355_v58, %v1553_v18 }
 0x528   : > { %v1590_v4 = vsel %vm857_vm12, %v3394_v49, -inf }
 0x529   : > { %1591 = vmax.xlane.f32.xlu2 %v1590_v4 }
 0x52a   : > { %v1314_v13 = vpop.f32.mrf.mxu0 }
 0x52b   : > { %v3398_v56 = vadd.f32 %v1355_v11, %v1314_v13  ;;  %v1554_v42 = vpop.f32.mrf.mxu1 }
 0x52c   : > { %v1555_v15 = vadd.f32 %v1554_v42, %v3028_v61 }
 0x52e   : > { %v3404_v20 = vadd.f32 %v2356_v29, %v1555_v15 }
 0x530   : > { %v1593_v0 = vsel %vm857_vm12, %v3404_v20, -inf }
 0x531   : > { %1594 = vmax.xlane.f32.xlu0 %v1593_v0 }
 0x532   : > { %v1486_v6 = vpop.f32.mrf.mxu0 }
 0x533   : > { %v1557_v57 = vpop.f32.mrf.mxu1 }
 0x534   : > { %v1558_v31 = vadd.f32 %v1557_v57, %v3046_v3 }
 0x536   : > { %v3412_v33 = vadd.f32 %v2357_v52, %v1558_v31 }
 0x538   : > { %v1596_v44 = vsel %vm857_vm12, %v3412_v33, -inf }
 0x539   : > { %1597 = vmax.xlane.f32.xlu1 %v1596_v44 }
 0x53a   : > { %v1488_v61 = vpop.f32.mrf.mxu0 }
 0x53b   : > { %v1559_v36 = vpop.f32.mrf.mxu1  ;;  %v1676_v16 = vpack.c.bf16 %v1488_v61, %v1486_v6 }
 0x53c   : > { %v1560_v5 = vadd.f32 %v1559_v36, %v3089_v38 }
 0x53e   : > { %v3420_v23 = vadd.f32 %v2358_v27, %v1560_v5 }
 0x540   : > { %v1599_v24 = vsel %vm857_vm12, %v3420_v23, -inf }
 0x541   : > { %1600 = vmax.xlane.f32.xlu2 %v1599_v24 }
 0x542   : > { %v1491_v3 = vpop.f32.mrf.mxu0 }
 0x543   : > { %v1562_v45 = vpop.f32.mrf.mxu1 }
 0x544   : > { %v1563_v22 = vadd.f32 %v1562_v45, %v3105_v25 }
 0x546   : > { %v3428_v53 = vadd.f32 %v2359_v46, %v1563_v22 }
 0x548   : > { %v1602_v55 = vsel %vm857_vm12, %v3428_v53, -inf }
 0x549   : > { %1603 = vmax.xlane.f32.xlu0 %v1602_v55 }
 0x54a   : > { %v1493_v38 = vpop.f32.mrf.mxu0 }
 0x54b   : > { %v1564_v62 = vpop.f32.mrf.mxu1 }
 0x54c   : > { %v1565_v10 = vadd.f32 %v1564_v62, %v3132_v9  ;;  %v1677_v9 = vpack.c.bf16 %v1493_v38, %v1491_v3 }
 0x54e   : > { %v3436_v17 = vadd.f32 %v2360_v50, %v1565_v10 }
 0x550   : > { %v1605_v21 = vsel %vm857_vm12, %v3436_v17, -inf }
 0x551   : > { %1606 = vmax.xlane.f32.xlu1 %v1605_v21 }
 0x552   : > { %v1496_v25 = vpop.f32.mrf.mxu0 }
 0x553   : > { %v1857_v47 = vpop.f32.mrf.mxu1 }
 0x55a   : > { %v1498_v7 = vpop.f32.mrf.mxu0 }
 0x55b   : > { %v1859_v11 = vpop.f32.mrf.mxu1  ;;  %v1678_v51 = vpack.c.bf16 %v1498_v7, %v1496_v25 }
 0x55c   : > { %v2047_v3 = vpack.c.bf16 %v1859_v11, %v1857_v47 }
 0x562   : > { %v1501_v2 = vpop.f32.mrf.mxu0 }
 0x563   : > { %v1862_v41 = vpop.f32.mrf.mxu1 }
 0x56a   : > { %v1503_v39 = vpop.f32.mrf.mxu0 }
 0x56b   : > { %v1679_v32 = vpack.c.bf16 %v1503_v39, %v1501_v2  ;;  %v1864_v48 = vpop.f32.mrf.mxu1 }
 0x56c   : > { %v2048_v61 = vpack.c.bf16 %v1864_v48, %v1862_v41 }
 0x56d   : > { %1696 = vmatpush.bf16.msrb.mxu2 %v1679_v32 }
 0x571   : > { %1697 = vmatpush.bf16.msrb.mxu2 %v1678_v51 }
 0x572   : > { %v1811_v63 = vpop.f32.mrf.mxu0 }
 0x573   : > { %v1867_v60 = vpop.f32.mrf.mxu1  ;;  %v3446_v28 = vadd.f32 %v3443_v30, %v1811_v63 }
 0x575   : > { %1698 = vmatpush.bf16.msrb.mxu2 %v1677_v9 }
 0x579   : > { %1699 = vmatpush.bf16.msrb.mxu2 %v1676_v16 }
 0x57a   : > { %v1813_v40 = vpop.f32.mrf.mxu0 }
 0x57b   : > { %v3449_v58 = vadd.f32 %v3443_v30, %v1813_v40  ;;  %v1869_v18 = vpop.f32.mrf.mxu1 }
 0x57c   : > { %v2049_v31 = vpack.c.bf16 %v1869_v18, %v1867_v60 }
 0x57d   : > { %v1881_v4 = vpack.c.bf16 %v3449_v58, %v3446_v28 }
 0x582   : > { %v3453_v13 = vpop.f32.mrf.mxu0 }
 0x583   : > { %v1872_v42 = vpop.f32.mrf.mxu1 }
 0x58a   : > { %v1818_v29 = vpop.f32.mrf.mxu0 }
 0x58b   : > { %v1874_v15 = vpop.f32.mrf.mxu1 }
 0x58c   : > { %v2050_v0 = vpack.c.bf16 %v1874_v15, %v1872_v42  ;;  %v1586_v6 = vpop.xlane.xlu0 %1585 }
 0x58d   : > { %v1608_v57 = vsub.f32 %v3372_v35, %v1586_v6  ;;  %v1817_v6 = vadd.f32 %v3443_v30, %v3453_v13  ;;  %v1898_v13 = vsel %vm787_vm11, %v1881_v4, 0 }
 0x58e   : > { %2067 = vmatpush.bf16.msra.mxu3 %v2050_v0 }
 0x58f   : > { %v1616_v52 = vmul.f32 1.442695, %v1608_v57 }
 0x591   : > { %2565 = vpow2.f32 %v1616_v52 }
 0x592   : > { %2068 = vmatpush.bf16.msra.mxu3 %v2049_v31  ;;  %v1821_v44 = vpop.f32.mrf.mxu0 }
 0x593   : > { %v1822_v9 = vadd.f32 %v3443_v30, %v1821_v44 }
 0x594   : > { %v1589_v36 = vpop.xlane.xlu1 %1588 }
 0x595   : > { %v1609_v27 = vsub.f32 %v3382_v34, %v1589_v36 }
 0x596   : > { %2069 = vmatpush.bf16.msra.mxu3 %v2048_v61 }
 0x597   : > { %v3457_v5 = vpop.eup %2565  ;;  %v1618_v24 = vmul.f32 1.442695, %v1609_v27 }
 0x598   : > { %v1632_v45 = vsel %vm857_vm12, %v3457_v5, 0.0 }
 0x599   : > { %2567 = vpow2.f32 %v1618_v24  ;;  %1633 = vadd.xlane.f32.xlu2 %v1632_v45 }
 0x59a   : > { %2070 = vmatpush.bf16.msra.mxu3 %v2047_v3  ;;  %v1823_v35 = vpop.f32.mrf.mxu0 }
 0x59c   : > { %v1592_v46 = vpop.xlane.xlu2 %1591 }
 0x59d   : > { %v1610_v22 = vsub.f32 %v3394_v49, %v1592_v46 }
 0x59f   : > { %v3462_v55 = vpop.eup %2567  ;;  %v1620_v38 = vmul.f32 1.442695, %v1610_v22 }
 0x5a0   : > { %v1635_v34 = vsel %vm857_vm12, %v3462_v55, 0.0 }
 0x5a1   : > { %2569 = vpow2.f32 %v1620_v38  ;;  %1636 = vadd.xlane.f32.xlu0 %v1635_v34 }
 0x5a2   : > { %v1826_v62 = vpop.f32.mrf.mxu0 }
 0x5a3   : > { %v1827_v7 = vadd.f32 %v3443_v30, %v1826_v62 }
 0x5a4   : > { %v1595_v50 = vpop.xlane.xlu0 %1594 }
 0x5a5   : > { %v1611_v10 = vsub.f32 %v3404_v20, %v1595_v50  ;;  %v1824_v20 = vadd.f32 %v3443_v30, %v1823_v35 }
 0x5a7   : > { %v3467_v21 = vpop.eup %2569  ;;  %v1622_v25 = vmul.f32 1.442695, %v1611_v10  ;;  %v1883_v60 = vpack.c.bf16 %v1824_v20, %v1822_v9  ;;  %v1760_v20 = vpop.f32.mrf.mxu3 }
 0x5a8   : > { %v1638_v47 = vsel %vm857_vm12, %v3467_v21, 0.0 }
 0x5a9   : > { %2571 = vpow2.f32 %v1622_v25  ;;  %1639 = vadd.xlane.f32.xlu1 %v1638_v47  ;;  %v1904_v15 = vsel %vm787_vm11, %v1883_v60, 0 }
 0x5aa   : > { %v1828_v49 = vpop.f32.mrf.mxu0 }
 0x5ab   : > { %v1829_v11 = vadd.f32 %v3443_v30, %v1828_v49 }
 0x5ac   : > { %v1598_v2 = vpop.xlane.xlu1 %1597 }
 0x5ad   : > { %v1884_v41 = vpack.c.bf16 %v1829_v11, %v1827_v7  ;;  %v1612_v39 = vsub.f32 %v3412_v33, %v1598_v2  ;;  %v1819_v33 = vadd.f32 %v3443_v30, %v1818_v29 }
 0x5af   : > { %v2572_v32 = vpop.eup %2571  ;;  %v1624_v48 = vmul.f32 1.442695, %v1612_v39  ;;  %v1907_v51 = vsel %vm787_vm11, %v1884_v41, 0  ;;  %v1882_v57 = vpack.c.bf16 %v1819_v33, %v1817_v6 }
 0x5b0   : > { %v1641_v63 = vsel %vm857_vm12, %v2572_v32, 0.0  ;;  %1913 = vmatpush.bf16.xpose.msra.mxu2 %v1907_v51  ;;  %v1762_v51 = vpop.f32.mrf.mxu3 }
 0x5b1   : > { %2573 = vpow2.f32 %v1624_v48  ;;  %1642 = vadd.xlane.f32.xlu2 %v1641_v63  ;;  %v1901_v61 = vsel %vm787_vm11, %v1882_v57, 0 }
 0x5b4   : > { %v1601_v16 = vpop.xlane.xlu2 %1600 }
 0x5b5   : > { %v1613_v40 = vsub.f32 %v3420_v23, %v1601_v16 }
 0x5b7   : > { %v2574_v18 = vpop.eup %2573  ;;  %v1626_v42 = vmul.f32 1.442695, %v1613_v40  ;;  %v2480_v40 = vld [vmem:[%s3634_s4 + $0x3] ss:$0 sm:$0xff] }
 0x5b8   : > { %v1644_v0 = vsel %vm857_vm12, %v2574_v18, 0.0  ;;  %1914 = vmatpush.bf16.xpose.msra.mxu2 %v1904_v15  ;;  %v1765_v16 = vpop.f32.mrf.mxu3  ;;  %v1761_v33 = vadd.f32 %v2480_v40, %v1760_v20 }
 0x5b9   : > { %2575 = vpow2.f32 %v1626_v42  ;;  %1645 = vadd.xlane.f32.xlu0 %v1644_v0  ;;  %v1766_v57 = vadd.f32 %v2480_v40, %v1765_v16  ;;  %v2633_v16 = vld [vmem:[%s3640_s10 + $0x20] sm:$0xff] }
 0x5bc   : > { %v1604_v52 = vpop.xlane.xlu0 %1603 }
 0x5bd   : > { %v1614_v31 = vsub.f32 %v3428_v53, %v1604_v52 }
 0x5bf   : > { %v2576_v44 = vpop.eup %2575  ;;  %v1628_v23 = vmul.f32 1.442695, %v1614_v31 }
 0x5c0   : > { %1915 = vmatpush.bf16.xpose.msra.mxu2 %v1901_v61  ;;  %v1647_v29 = vsel %vm857_vm12, %v2576_v44, 0.0  ;;  %v1767_v15 = vpop.f32.mrf.mxu3 }
 0x5c1   : > { %2577 = vpow2.f32 %v1628_v23  ;;  %1648 = vadd.xlane.f32.xlu1 %v1647_v29  ;;  %v1768_v6 = vadd.f32 %v2480_v40, %v1767_v15  ;;  %v2424_v15 = vld [vmem:[%s3639_s9 + $0xe8] sm:$0xff] }
 0x5c3   : > { %v1878_v52 = vpack.c.bf16 %v1768_v6, %v1766_v57 }
 0x5c4   : > { %v1607_v36 = vpop.xlane.xlu1 %1606 }
 0x5c5   : > { %v1615_v27 = vsub.f32 %v3436_v17, %v1607_v36 }
 0x5c7   : > { %v2578_v24 = vpop.eup %2577  ;;  %v1630_v30 = vmul.f32 1.442695, %v1615_v27 }
 0x5c8   : > { %v1650_v53 = vsel %vm857_vm12, %v2578_v24, 0.0  ;;  %1916 = vmatpush.bf16.xpose.msra.mxu2 %v1898_v13  ;;  %v1770_v0 = vpop.f32.mrf.mxu3  ;;  %v1339_v13 = vadd.f32 %v3331_v37, %v3348_v12 }
 0x5c9   : > { %2579 = vpow2.f32 %v1630_v30  ;;  %1651 = vadd.xlane.f32.xlu2 %v1650_v53  ;;  %v1771_v23 = vadd.f32 %v2480_v40, %v1770_v0  ;;  %v2634_v0 = vld [vmem:[%s3640_s10 + $0x28] sm:$0xff] }
 0x5cf   : > { %v2580_v3 = vpop.eup %2579 }
 0x5d0   : > { %v1653_v45 = vsel %vm857_vm12, %v2580_v3, 0.0  ;;  %v1772_v31 = vpop.f32.mrf.mxu3 }
 0x5d1   : > { %1654 = vadd.xlane.f32.xlu0 %v1653_v45  ;;  %v1341_v45 = vadd.f32 %v3340_v43, %v3354_v1 }
 0x5d8   : > { %v1775_v61 = vpop.f32.mrf.mxu3 }
 0x5e0   : > { %v1777_v36 = vpop.f32.mrf.mxu3 }
 0x5e1   : > { %v1778_v27 = vadd.f32 %v2480_v40, %v1777_v36 }
 0x60c   : > { %v1634_v35 = vpop.xlane.xlu2 %1633 }
 0x60d   : > { %2581 = vrcp.f32 %v1634_v35 }
 0x613   : > { %v2582_v17 = vpop.eup %2581 }
 0x614   : > { %v1637_v46 = vpop.xlane.xlu0 %1636  ;;  %v1664_v38 = vmul.f32 %v2582_v17, %v3457_v5  ;;  %v1344_v17 = vadd.f32 %v3342_v54, %v3356_v59 }
 0x615   : > { %2583 = vrcp.f32 %v1637_v46 }
 0x61b   : > { %v2584_v22 = vpop.eup %2583 }
 0x61c   : > { %v1665_v28 = vmul.f32 %v2584_v22, %v3462_v55  ;;  %v1640_v4 = vpop.xlane.xlu1 %1639 }
 0x61d   : > { %2585 = vrcp.f32 %v1640_v4 }
 0x61e   : > { %v1672_v58 = vpack.c.bf16 %v1665_v28, %v1664_v38 }
 0x620   : > { %2361 = vmatmul.msk.bf16.vlgmr.msrb.gmra.mxu2 %vm857_vm12, %v1672_v58 }
 0x623   : > { %v2586_v62 = vpop.eup %2585 }
 0x624   : > { %v1643_v34 = vpop.xlane.xlu2 %1642  ;;  %v1666_v10 = vmul.f32 %v2586_v62, %v3467_v21 }
 0x625   : > { %2587 = vrcp.f32 %v1643_v34 }
 0x62b   : > { %v2588_v50 = vpop.eup %2587 }
 0x62c   : > { %v1667_v25 = vmul.f32 %v2588_v50, %v2572_v32  ;;  %v1646_v49 = vpop.xlane.xlu0 %1645 }
 0x62d   : > { %2589 = vrcp.f32 %v1646_v49 }
 0x62e   : > { %v1673_v47 = vpack.c.bf16 %v1667_v25, %v1666_v10  ;;  %v2630_v25 = vld [vmem:[%s3640_s10 + $0x8] sm:$0xff] }
 0x630   : > { %2362 = vmatmul.msk.bf16.gmra.mxu2 %vm857_vm12, %v1673_v47 }
 0x633   : > { %v2590_v55 = vpop.eup %2589 }
 0x634   : > { %v1649_v5 = vpop.xlane.xlu1 %1648  ;;  %v1668_v11 = vmul.f32 %v2590_v55, %v2574_v18  ;;  %v1763_v18 = vadd.f32 %v2480_v40, %v1762_v51 }
 0x635   : > { %2591 = vrcp.f32 %v1649_v5 }
 0x636   : > { %v1877_v42 = vpack.c.bf16 %v1763_v18, %v1761_v33 }
 0x63b   : > { %v2592_v7 = vpop.eup %2591 }
 0x63c   : > { %v1669_v2 = vmul.f32 %v2592_v7, %v2576_v44  ;;  %v1652_v39 = vpop.xlane.xlu2 %1651  ;;  %v1773_v44 = vadd.f32 %v2480_v40, %v1772_v31  ;;  %v2421_v7 = vld [vmem:[%s3639_s9 + $0xd0] sm:$0xff] }
 0x63d   : > { %2593 = vrcp.f32 %v1652_v39 }
 0x63e   : > { %v1674_v41 = vpack.c.bf16 %v1669_v2, %v1668_v11  ;;  %v1879_v29 = vpack.c.bf16 %v1773_v44, %v1771_v23  ;;  %v2631_v11 = vld [vmem:[%s3640_s10 + $0x10] sm:$0xff] }
 0x63f   : > { %v2425_v44 = vld [vmem:[%s3639_s9 + $0xf0] sm:$0xff] }
 0x640   : > { %2363 = vmatmul.msk.bf16.gmra.mxu2 %vm857_vm12, %v1674_v41  ;;  %v2635_v23 = vld [vmem:[%s3640_s10 + $0x30] sm:$0xff] }
 0x643   : > { %v2594_v21 = vpop.eup %2593 }
 0x644   : > { %v1655_v48 = vpop.xlane.xlu0 %1654  ;;  %v1670_v63 = vmul.f32 %v2594_v21, %v2578_v24  ;;  %v1776_v24 = vadd.f32 %v2480_v40, %v1775_v61  ;;  %v2632_v21 = vld [vmem:[%s3640_s10 + $0x18] sm:$0xff] }
 0x645   : > { %2595 = vrcp.f32 %v1655_v48  ;;  %v2422_v48 = vld [vmem:[%s3639_s9 + $0xd8] sm:$0xff] }
 0x646   : > { %v1880_v30 = vpack.c.bf16 %v1778_v27, %v1776_v24  ;;  %v2426_v24 = vld [vmem:[%s3639_s9 + $0xf8] sm:$0xff] }
 0x64b   : > { %v2596_v32 = vpop.eup %2595 }
 0x64c   : > { %v1671_v9 = vmul.f32 %v2596_v32, %v2580_v3 }
 0x64e   : > { %v1675_v60 = vpack.c.bf16 %v1671_v9, %v1670_v63 }
 0x650   : > { %2364 = vmatmul.msk.bf16.gmra.mxu2 %vm857_vm12, %v1675_v60  ;;  %v2423_v60 = vld [vmem:[%s3639_s9 + $0xe0] sm:$0xff] }
 0x660   : > { %2415 = vmatmul.msk.bf16.vlgmr.msra.gmra.mxu2 %vm787_vm11, %v1877_v42 }
 0x670   : > { %2416 = vmatmul.msk.bf16.gmra.mxu2 %vm787_vm11, %v1878_v52 }
 0x680   : > { %2417 = vmatmul.msk.bf16.gmra.mxu2 %vm787_vm11, %v1879_v29 }
 0x690   : > { %2418 = vmatmul.msk.bf16.gmra.mxu2 %vm787_vm11, %v1880_v30  ;;  %v2636_v30 = vld [vmem:[%s3640_s10 + $0x38] sm:$0xff] }
 0x6a3   : > { %v1701_v53 = vpop.f32.mrf.mxu2 }
 0x6a4   : > { %v3510_v3 = vadd.f32 %v1701_v53, %v1339_v13 }
 0x6ab   : > { %v1703_v35 = vpop.f32.mrf.mxu2 }
 0x6ac   : > { %v3514_v46 = vadd.f32 %v1703_v35, %v1341_v45 }
 0x6b3   : > { %v1706_v22 = vpop.f32.mrf.mxu2 }
 0x6b4   : > { %v3518_v38 = vadd.f32 %v1706_v22, %v1344_v17 }
 0x6bb   : > { %v1708_v28 = vpop.f32.mrf.mxu2 }
 0x6bc   : > { %v3521_v58 = vadd.f32 %v1708_v28, %v3362_v8  ;;  %v2419_v8 = vld [vmem:[%s3639_s9 + $0xc0] sm:$0xff] }
 0x6c3   : > { %v1711_v37 = vpop.f32.mrf.mxu2 }
 0x6c4   : > { %v3524_v12 = vadd.f32 %v1711_v37, %v3364_v26  ;;  %v2629_v26 = vld [vmem:[%s3640_s10] sm:$0xff] }
 0x6cb   : > { %v1713_v4 = vpop.f32.mrf.mxu2 }
 0x6cc   : > { %v3527_v43 = vadd.f32 %v1713_v4, %v3376_v14 }
 0x6d3   : > { %v1716_v1 = vpop.f32.mrf.mxu2 }
 0x6d4   : > { %v3530_v34 = vadd.f32 %v1716_v1, %v3386_v19 }
 0x6db   : > { %v1718_v54 = vpop.f32.mrf.mxu2 }
 0x6dc   : > { %v3533_v59 = vadd.f32 %v1718_v54, %v3398_v56  ;;  %v2420_v56 = vld [vmem:[%s3639_s9 + $0xc8] sm:$0xff] }
 0x6e3   : > { %v1918_v62 = vpop.f32.mrf.mxu2 }
 0x6e4   : > { %v1919_v50 = vadd.f32 %v2629_v26, %v1918_v62 }
 0x6e6   : > { %v1947_v14 = vadd.f32 %v2419_v8, %v1919_v50 }
 0x6e8   : > { %v1955_v10 = vsel %vm857_vm12, %v1947_v14, -inf }
 0x6e9   : > { %1956 = vmax.xlane.f32.xlu1 %v1955_v10 }
 0x6eb   : > { %v1920_v19 = vpop.f32.mrf.mxu2 }
 0x6ec   : > { %v1921_v47 = vadd.f32 %v2630_v25, %v1920_v19 }
 0x6ee   : > { %v1948_v49 = vadd.f32 %v2420_v56, %v1921_v47 }
 0x6f0   : > { %v1958_v5 = vsel %vm857_vm12, %v1948_v49, -inf }
 0x6f1   : > { %1959 = vmax.xlane.f32.xlu2 %v1958_v5 }
 0x6f3   : > { %v1923_v55 = vpop.f32.mrf.mxu2 }
 0x6f4   : > { %v1924_v2 = vadd.f32 %v2631_v11, %v1923_v55 }
 0x6f6   : > { %v1949_v41 = vadd.f32 %v2421_v7, %v1924_v2 }
 0x6f8   : > { %v1961_v39 = vsel %vm857_vm12, %v1949_v41, -inf }
 0x6f9   : > { %1962 = vmax.xlane.f32.xlu0 %v1961_v39 }
 0x6fb   : > { %v1925_v20 = vpop.f32.mrf.mxu2 }
 0x6fc   : > { %v1926_v32 = vadd.f32 %v2632_v21, %v1925_v20 }
 0x6fe   : > { %v1950_v51 = vadd.f32 %v2422_v48, %v1926_v32 }
 0x700   : > { %v1964_v63 = vsel %vm857_vm12, %v1950_v51, -inf }
 0x701   : > { %1965 = vmax.xlane.f32.xlu1 %v1964_v63 }
 0x703   : > { %v1928_v9 = vpop.f32.mrf.mxu2 }
 0x704   : > { %v1929_v40 = vadd.f32 %v2633_v16, %v1928_v9 }
 0x706   : > { %v1951_v18 = vadd.f32 %v2423_v60, %v1929_v40 }
 0x708   : > { %v1967_v33 = vsel %vm857_vm12, %v1951_v18, -inf }
 0x709   : > { %1968 = vmax.xlane.f32.xlu2 %v1967_v33 }
 0x70b   : > { %v1930_v42 = vpop.f32.mrf.mxu2 }
 0x70c   : > { %v1931_v6 = vadd.f32 %v2634_v0, %v1930_v42 }
 0x70e   : > { %v1952_v57 = vadd.f32 %v2424_v15, %v1931_v6 }
 0x710   : > { %v1970_v52 = vsel %vm857_vm12, %v1952_v57, -inf }
 0x711   : > { %1971 = vmax.xlane.f32.xlu0 %v1970_v52 }
 0x713   : > { %v1933_v31 = vpop.f32.mrf.mxu2 }
 0x714   : > { %v1934_v61 = vadd.f32 %v2635_v23, %v1933_v31 }
 0x716   : > { %v1953_v29 = vadd.f32 %v2425_v44, %v1934_v61 }
 0x718   : > { %v1973_v36 = vsel %vm857_vm12, %v1953_v29, -inf }
 0x719   : > { %1974 = vmax.xlane.f32.xlu1 %v1973_v36 }
 0x71b   : > { %v1935_v27 = vpop.f32.mrf.mxu2 }
 0x71c   : > { %v1936_v13 = vadd.f32 %v2636_v30, %v1935_v27 }
 0x71e   : > { %v1954_v53 = vadd.f32 %v2426_v24, %v1936_v13 }
 0x720   : > { %v1976_v45 = vsel %vm857_vm12, %v1954_v53, -inf }
 0x721   : > { %1977 = vmax.xlane.f32.xlu2 %v1976_v45 }
 0x75c   : > { %v1957_v35 = vpop.xlane.xlu1 %1956 }
 0x75d   : > { %v1979_v17 = vsub.f32 %v1947_v14, %v1957_v35 }
 0x75f   : > { %v1987_v22 = vmul.f32 1.442695, %v1979_v17 }
 0x761   : > { %2597 = vpow2.f32 %v1987_v22 }
 0x764   : > { %v1960_v28 = vpop.xlane.xlu2 %1959 }
 0x765   : > { %v1980_v37 = vsub.f32 %v1948_v49, %v1960_v28 }
 0x767   : > { %v2598_v4 = vpop.eup %2597  ;;  %v1989_v1 = vmul.f32 1.442695, %v1980_v37 }
 0x768   : > { %v2003_v54 = vsel %vm857_vm12, %v2598_v4, 0.0 }
 0x769   : > { %2599 = vpow2.f32 %v1989_v1  ;;  %2004 = vadd.xlane.f32.xlu0 %v2003_v54 }
 0x76c   : > { %v1963_v62 = vpop.xlane.xlu0 %1962 }
 0x76d   : > { %v1981_v8 = vsub.f32 %v1949_v41, %v1963_v62 }
 0x76f   : > { %v2600_v26 = vpop.eup %2599  ;;  %v1991_v50 = vmul.f32 1.442695, %v1981_v8 }
 0x770   : > { %v2006_v10 = vsel %vm857_vm12, %v2600_v26, 0.0 }
 0x771   : > { %2601 = vpow2.f32 %v1991_v50  ;;  %2007 = vadd.xlane.f32.xlu1 %v2006_v10  ;;  %v2482_v10 = vld [vmem:[%s3638_s8] ss:$0 sm:$0xff] }
 0x774   : > { %v1966_v19 = vpop.xlane.xlu1 %1965 }
 0x775   : > { %v1982_v14 = vsub.f32 %v1950_v51, %v1966_v19 }
 0x777   : > { %v2602_v56 = vpop.eup %2601  ;;  %v1993_v25 = vmul.f32 1.442695, %v1982_v14 }
 0x778   : > { %v2009_v47 = vsel %vm857_vm12, %v2602_v56, 0.0 }
 0x779   : > { %2603 = vpow2.f32 %v1993_v25  ;;  %2010 = vadd.xlane.f32.xlu2 %v2009_v47 }
 0x77c   : > { %v1969_v49 = vpop.xlane.xlu2 %1968 }
 0x77d   : > { %v1983_v5 = vsub.f32 %v1951_v18, %v1969_v49 }
 0x77f   : > { %v2604_v55 = vpop.eup %2603  ;;  %v1995_v7 = vmul.f32 1.442695, %v1983_v5 }
 0x780   : > { %v2012_v11 = vsel %vm857_vm12, %v2604_v55, 0.0 }
 0x781   : > { %2605 = vpow2.f32 %v1995_v7  ;;  %2013 = vadd.xlane.f32.xlu0 %v2012_v11 }
 0x784   : > { %v1972_v2 = vpop.xlane.xlu0 %1971 }
 0x785   : > { %v1984_v41 = vsub.f32 %v1952_v57, %v1972_v2 }
 0x787   : > { %v2606_v39 = vpop.eup %2605  ;;  %v1997_v20 = vmul.f32 1.442695, %v1984_v41 }
 0x788   : > { %v2015_v48 = vsel %vm857_vm12, %v2606_v39, 0.0 }
 0x789   : > { %2607 = vpow2.f32 %v1997_v20  ;;  %2016 = vadd.xlane.f32.xlu1 %v2015_v48 }
 0x78c   : > { %v1975_v21 = vpop.xlane.xlu1 %1974 }
 0x78d   : > { %v1985_v32 = vsub.f32 %v1953_v29, %v1975_v21 }
 0x78f   : > { %v2608_v51 = vpop.eup %2607  ;;  %v1999_v63 = vmul.f32 1.442695, %v1985_v32 }
 0x790   : > { %v2018_v9 = vsel %vm857_vm12, %v2608_v51, 0.0 }
 0x791   : > { %2609 = vpow2.f32 %v1999_v63  ;;  %2019 = vadd.xlane.f32.xlu2 %v2018_v9 }
 0x794   : > { %v1978_v60 = vpop.xlane.xlu2 %1977 }
 0x795   : > { %v1986_v16 = vsub.f32 %v1954_v53, %v1978_v60 }
 0x797   : > { %v2610_v40 = vpop.eup %2609  ;;  %v2001_v18 = vmul.f32 1.442695, %v1986_v16 }
 0x798   : > { %v2021_v33 = vsel %vm857_vm12, %v2610_v40, 0.0 }
 0x799   : > { %2611 = vpow2.f32 %v2001_v18  ;;  %2022 = vadd.xlane.f32.xlu0 %v2021_v33 }
 0x79f   : > { %v2612_v42 = vpop.eup %2611 }
 0x7a0   : > { %v2024_v15 = vsel %vm857_vm12, %v2612_v42, 0.0 }
 0x7a1   : > { %2025 = vadd.xlane.f32.xlu1 %v2024_v15 }
 0x7dc   : > { %v2005_v0 = vpop.xlane.xlu0 %2004 }
 0x7dd   : > { %2613 = vrcp.f32 %v2005_v0 }
 0x7e3   : > { %v2614_v57 = vpop.eup %2613 }
 0x7e4   : > { %v2008_v6 = vpop.xlane.xlu1 %2007  ;;  %v2035_v31 = vmul.f32 %v2614_v57, %v2598_v4 }
 0x7e5   : > { %2615 = vrcp.f32 %v2008_v6 }
 0x7eb   : > { %v2616_v52 = vpop.eup %2615 }
 0x7ec   : > { %v2036_v44 = vmul.f32 %v2616_v52, %v2600_v26  ;;  %v2011_v61 = vpop.xlane.xlu2 %2010 }
 0x7ed   : > { %2617 = vrcp.f32 %v2011_v61 }
 0x7ee   : > { %v2043_v23 = vpack.c.bf16 %v2036_v44, %v2035_v31 }
 0x7f0   : > { %2427 = vmatmul.msk.bf16.vlgmr.msra.gmra.mxu3 %vm857_vm12, %v2043_v23 }
 0x7f3   : > { %v2618_v36 = vpop.eup %2617 }
 0x7f4   : > { %v2014_v29 = vpop.xlane.xlu0 %2013  ;;  %v2037_v24 = vmul.f32 %v2618_v36, %v2602_v56 }
 0x7f5   : > { %2619 = vrcp.f32 %v2014_v29 }
 0x7fb   : > { %v2620_v27 = vpop.eup %2619 }
 0x7fc   : > { %v2038_v30 = vmul.f32 %v2620_v27, %v2604_v55  ;;  %v2017_v53 = vpop.xlane.xlu1 %2016 }
 0x7fd   : > { %2621 = vrcp.f32 %v2017_v53 }
 0x7fe   : > { %v2044_v13 = vpack.c.bf16 %v2038_v30, %v2037_v24 }
 0x800   : > { %2428 = vmatmul.msk.bf16.gmra.mxu3 %vm857_vm12, %v2044_v13 }
 0x803   : > { %v2622_v35 = vpop.eup %2621 }
 0x804   : > { %v2020_v45 = vpop.xlane.xlu2 %2019  ;;  %v2039_v22 = vmul.f32 %v2622_v35, %v2606_v39 }
 0x805   : > { %2623 = vrcp.f32 %v2020_v45 }
 0x80b   : > { %v2624_v17 = vpop.eup %2623 }
 0x80c   : > { %v2040_v28 = vmul.f32 %v2624_v17, %v2608_v51  ;;  %v2023_v4 = vpop.xlane.xlu0 %2022 }
 0x80d   : > { %2625 = vrcp.f32 %v2023_v4 }
 0x80e   : > { %v2045_v37 = vpack.c.bf16 %v2040_v28, %v2039_v22 }
 0x810   : > { %2429 = vmatmul.msk.bf16.gmra.mxu3 %vm857_vm12, %v2045_v37 }
 0x813   : > { %v2626_v54 = vpop.eup %2625 }
 0x814   : > { %v2026_v1 = vpop.xlane.xlu1 %2025  ;;  %v2041_v8 = vmul.f32 %v2626_v54, %v2610_v40 }
 0x815   : > { %2627 = vrcp.f32 %v2026_v1 }
 0x81b   : > { %v2628_v62 = vpop.eup %2627 }
 0x81c   : > { %v2042_v26 = vmul.f32 %v2628_v62, %v2612_v42 }
 0x81e   : > { %v2046_v50 = vpack.c.bf16 %v2042_v26, %v2041_v8 }
 0x820   : > { %2430 = vmatmul.msk.bf16.gmra.mxu3 %vm857_vm12, %v2046_v50 }
 0x873   : > { %v2072_v19 = vpop.f32.mrf.mxu3 }
 0x874   : > { %v2092_v14 = vadd.f32 %v2072_v19, %v3510_v3 }
 0x876   : > { %v2104_v56 = vadd.f32 %v2482_v10, %v2092_v14 }
 0x878   : > { %2112 = vst.msk [vmem:[%s393_s13] sm:$0xff] %vm404_vm0, %v2104_v56 }
 0x87b   : > { %v2074_v25 = vpop.f32.mrf.mxu3 }
 0x87c   : > { %v2093_v47 = vadd.f32 %v2074_v25, %v3514_v46 }
 0x87e   : > { %v2105_v49 = vadd.f32 %v2482_v10, %v2093_v47 }
 0x880   : > { %2113 = vst.msk [vmem:[%s393_s13 + $0x8] sm:$0xff] %vm404_vm0, %v2105_v49 }
 0x883   : > { %v2077_v5 = vpop.f32.mrf.mxu3 }
 0x884   : > { %v2094_v55 = vadd.f32 %v2077_v5, %v3518_v38 }
 0x886   : > { %v2106_v7 = vadd.f32 %v2482_v10, %v2094_v55 }
 0x888   : > { %2114 = vst.msk [vmem:[%s393_s13 + $0x10] sm:$0xff] %vm404_vm0, %v2106_v7 }
 0x88b   : > { %v2079_v3 = vpop.f32.mrf.mxu3 }
 0x88c   : > { %v2095_v11 = vadd.f32 %v2079_v3, %v3521_v58 }
 0x88e   : > { %v2107_v2 = vadd.f32 %v2482_v10, %v2095_v11 }
 0x890   : > { %2115 = vst.msk [vmem:[%s393_s13 + $0x18] sm:$0xff] %vm404_vm0, %v2107_v2 }
 0x893   : > { %v2082_v41 = vpop.f32.mrf.mxu3 }
 0x894   : > { %v2096_v39 = vadd.f32 %v2082_v41, %v3524_v12 }
 0x896   : > { %v2108_v20 = vadd.f32 %v2482_v10, %v2096_v39 }
 0x898   : > { %2116 = vst.msk [vmem:[%s393_s13 + $0x20] sm:$0xff] %vm404_vm0, %v2108_v20 }
 0x89b   : > { %v2084_v46 = vpop.f32.mrf.mxu3 }
 0x89c   : > { %v2097_v48 = vadd.f32 %v2084_v46, %v3527_v43 }
 0x89e   : > { %v2109_v21 = vadd.f32 %v2482_v10, %v2097_v48 }
 0x8a0   : > { %2117 = vst.msk [vmem:[%s393_s13 + $0x28] sm:$0xff] %vm404_vm0, %v2109_v21 }
 0x8a3   : > { %v2087_v38 = vpop.f32.mrf.mxu3 }
 0x8a4   : > { %v2098_v32 = vadd.f32 %v2087_v38, %v3530_v34 }
 0x8a6   : > { %v2110_v51 = vadd.f32 %v2482_v10, %v2098_v32 }
 0x8a8   : > { %2118 = vst.msk [vmem:[%s393_s13 + $0x30] sm:$0xff] %vm404_vm0, %v2110_v51 }
 0x8ab   : > { %v2089_v58 = vpop.f32.mrf.mxu3 }
 0x8ac   : > { %v2099_v63 = vadd.f32 %v2089_v58, %v3533_v59 }
 0x8ae   : > { %v2111_v9 = vadd.f32 %v2482_v10, %v2099_v63 }
 0x8b0   : > { %2119 = vst.msk [vmem:[%s393_s13 + $0x38] sm:$0xff] %vm404_vm0, %v2111_v9 }
 0x8b1 PF: > { %s21_s17 = sadd.s32 1, %s2643_s17  }
 0x8b2   : > { %p18_p4 = scmp.ge.s32.totalorder %s21_s17, 4  }
 0x8b4   :  { %20 = sbr.rel (!%p18_p4) target bundleno = 1 (0x1), region = 112 }

</bundles_post_ra>
